<compile_context>
chip_gen: v7x
topology: tpu7x:2x2x1
jax: 0.10.0
libtpu: 0.0.40
codegen_flags: <defaults>
</compile_context>

<pallas_src>
import functools

import jax
import jax.numpy as jnp
from jax.experimental import pallas as pl
from jax.experimental.pallas import tpu as pltpu

# Matmul operand dtype (accumulation is always f32). Set to jnp.float32 to
# bit-match an all-f32 reference. pdist / k-NN ranking always runs in f32.
MATMUL_DTYPE = jnp.bfloat16

_VMEM_LIMIT = 48 * 1024 * 1024


# ----------------------------------------------------------------------------
# Kernel 1: pairwise k-NN score (higher = closer).
#   score[i, j] = 2 <x_i, x_j> - ||x_j||^2
# (the per-row constant ||x_i||^2 is dropped: ranking along j is unchanged.)
# x is passed once per cloud; the j-chunk is sliced in-kernel (no duplicate DMA).
# ----------------------------------------------------------------------------
def pdist_kernel(x_ref, sq_ref, o_ref):
    tj = o_ref.shape[2]
    j0 = pl.multiple_of(pl.program_id(1) * tj, tj)
    xi = x_ref[0]                                    # (P,  C) f32
    xj = x_ref[0, pl.ds(j0, tj), :]                  # (tj, C) f32
    g = jax.lax.dot_general(xi, xj, (((1,), (1,)), ((), ())),
                            preferred_element_type=jnp.float32)   # (P, tj)
    o_ref[0] = (2.0 * g - sq_ref[0]).astype(o_ref.dtype)


def _pick_tj(P):
    if P <= 512:
        return P
    for tj in (512, 256, 128):
        if P % tj == 0:
            return tj
    return P                                          # fall back: whole row


def pairwise_score(x):
    """x: (B, P, C) f32 -> (B, P, P) f32, larger = nearer."""
    B, P, C = x.shape
    tj = _pick_tj(P)
    assert P % tj == 0
    sqn = jnp.sum(x * x, axis=-1)[:, None, :]         # (B, 1, P) tiny f32
    return pl.pallas_call(
        pdist_kernel,
        out_shape=jax.ShapeDtypeStruct((B, P, P), jnp.float32),
        grid=(B, P // tj),
        in_specs=[
            pl.BlockSpec((1, P, C), lambda b, j: (b, 0, 0)),
            pl.BlockSpec((1, 1, tj), lambda b, j: (b, 0, j)),
        ],
        out_specs=pl.BlockSpec((1, P, tj), lambda b, j: (b, 0, j)),
        compiler_params=pltpu.CompilerParams(
            dimension_semantics=("parallel", "parallel"),
            vmem_limit_bytes=_VMEM_LIMIT),
    )(x, sqn)


# ----------------------------------------------------------------------------
# Kernel 2: DynamicEdgeConv with fused neighbor gather + fused global max pool.
#   out[i] = max_k  W2 @ relu(W1a x_i + W1b (x_{j_k} - x_i) + b1) + b2
# Folded:  relu( hc[i] + hall[j] ),  hc = x @ (W1a - W1b) + b1,  hall = x @ W1b,
# with hc/hall produced by ONE matmul against the concatenated (Cin, 2H) weight.
# The per-k gather is a (P, P) one-hot matmul; everything in the k-loop lives in
# the transposed (H, P) domain so no per-iteration transposes are needed.
# ----------------------------------------------------------------------------
def _edge_conv_body(x_ref, idx_ref, w1_ref, b1_ref, w2t_ref, b2_ref):
    _, P, _ = x_ref.shape
    K = idx_ref.shape[1]
    H = w1_ref.shape[1] // 2
    mm = w1_ref.dtype

    xs = x_ref[0].astype(mm)                                           # (P, Cin)
    h12 = jnp.dot(xs, w1_ref[...],
                  preferred_element_type=jnp.float32)                  # (P, 2H) f32
    hcT = jnp.transpose(h12[:, :H] + b1_ref[...])                      # (H, P) f32
    hallT = jnp.transpose(h12[:, H:]).astype(mm)                       # (H, P)
    w2t = w2t_ref[...]                                                 # (H, H) = W2^T

    row_iota = jax.lax.broadcasted_iota(jnp.int32, (P, P), 0)          # j on sublanes

    def body(t, accT):
        idx_row = idx_ref[0, pl.ds(t, 1), :]                           # (1, P): j = idx[t, i]
        onehot = jnp.where(row_iota == idx_row, 1.0, 0.0).astype(mm)   # (P src, P dst)
        gathT = jnp.dot(hallT, onehot,
                        preferred_element_type=jnp.float32)            # (H, P) = hall[idx]
        hT = jnp.maximum(gathT + hcT, 0.0)
        eT = jnp.dot(w2t, hT.astype(mm),
                     preferred_element_type=jnp.float32)               # (H, P)
        return jnp.maximum(accT, eT)

    accT = jax.lax.fori_loop(0, K, body,
                             jnp.full((H, P), -jnp.inf, jnp.float32))
    return jnp.transpose(accT) + b2_ref[...]                           # (P, H) f32


def edgeconv_kernel(x_ref, idx_ref, w1_ref, b1_ref, w2t_ref, b2_ref,
                    o_ref, op_ref):
    out = _edge_conv_body(x_ref, idx_ref, w1_ref, b1_ref, w2t_ref, b2_ref)
    o_ref[0] = out.astype(o_ref.dtype)
    op_ref[0] = jnp.max(out, axis=0, keepdims=True).astype(op_ref.dtype)


def edgeconv_pool_kernel(x_ref, idx_ref, w1_ref, b1_ref, w2t_ref, b2_ref,
                         op_ref):
    out = _edge_conv_body(x_ref, idx_ref, w1_ref, b1_ref, w2t_ref, b2_ref)
    op_ref[0] = jnp.max(out, axis=0, keepdims=True).astype(op_ref.dtype)


def edge_conv(x, idx, w1, b1, w2, b2, emit_full=True):
    """x: (B,P,Cin) f32; idx: (B,K,P) int32 neighbor ids within each cloud."""
    B, P, Cin = x.shape
    K = idx.shape[1]
    H = w2.shape[1]
    assert w1.shape == (2 * Cin, H)
    w1a, w1b = w1[:Cin], w1[Cin:]
    w1cat = jnp.concatenate([w1a - w1b, w1b], axis=1).astype(MATMUL_DTYPE)  # (Cin, 2H)
    w2t = jnp.transpose(w2).astype(MATMUL_DTYPE)                            # (H, H)
    args = (x, idx, w1cat, b1.reshape(1, H), w2t, b2.reshape(1, H))
    in_specs = [
        pl.BlockSpec((1, P, Cin), lambda b: (b, 0, 0)),
        pl.BlockSpec((1, K, P), lambda b: (b, 0, 0)),
        pl.BlockSpec((Cin, 2 * H), lambda b: (0, 0)),
        pl.BlockSpec((1, H), lambda b: (0, 0)),
        pl.BlockSpec((H, H), lambda b: (0, 0)),
        pl.BlockSpec((1, H), lambda b: (0, 0)),
    ]
    cp = pltpu.CompilerParams(dimension_semantics=("parallel",),
                              vmem_limit_bytes=_VMEM_LIMIT)
    if emit_full:
        feat, pooled = pl.pallas_call(
            edgeconv_kernel,
            out_shape=(jax.ShapeDtypeStruct((B, P, H), jnp.float32),
                       jax.ShapeDtypeStruct((B, 1, H), jnp.float32)),
            grid=(B,),
            in_specs=in_specs,
            out_specs=(pl.BlockSpec((1, P, H), lambda b: (b, 0, 0)),
                       pl.BlockSpec((1, 1, H), lambda b: (b, 0, 0))),
            compiler_params=cp,
        )(*args)
        return feat, pooled
    pooled = pl.pallas_call(
        edgeconv_pool_kernel,
        out_shape=jax.ShapeDtypeStruct((B, 1, H), jnp.float32),
        grid=(B,),
        in_specs=in_specs,
        out_specs=pl.BlockSpec((1, 1, H), lambda b: (b, 0, 0)),
        compiler_params=cp,
    )(*args)
    return None, pooled


# ----------------------------------------------------------------------------
# Kernel 3: classifier head on the four pooled features.
#   lin1(concat) as 4 partial matmuls + BN(eval) + ReLU + lin2 + log_softmax.
# Single grid step, single dense output store.
# ----------------------------------------------------------------------------
def head_kernel(p1_ref, p2_ref, p3_ref, p4_ref,
                w11_ref, w12_ref, w13_ref, w14_ref, b1_ref,
                scale_ref, shift_ref, w2_ref, b2_ref, o_ref):
    mm = w2_ref.dtype
    h = (jnp.dot(p1_ref[...].astype(mm), w11_ref[...], preferred_element_type=jnp.float32)
         + jnp.dot(p2_ref[...].astype(mm), w12_ref[...], preferred_element_type=jnp.float32)
         + jnp.dot(p3_ref[...].astype(mm), w13_ref[...], preferred_element_type=jnp.float32)
         + jnp.dot(p4_ref[...].astype(mm), w14_ref[...], preferred_element_type=jnp.float32)
         + b1_ref[...])
    h = h * scale_ref[...] + shift_ref[...]                  # BatchNorm1d (eval)
    h = jnp.maximum(h, 0.0)                                  # ReLU
    # TODO(synk): Dropout is eval-mode identity (training RNG mask not ported).
    logits = jnp.dot(h.astype(mm), w2_ref[...],
                     preferred_element_type=jnp.float32) + b2_ref[...]
    m = jnp.max(logits, axis=-1, keepdims=True)
    lse = m + jnp.log(jnp.sum(jnp.exp(logits - m), axis=-1, keepdims=True))
    o_ref[...] = (logits - lse).astype(o_ref.dtype)          # log_softmax


def classifier_head(p1, p2, p3, p4, w1, b1, gamma, beta, rmean, rvar, w2, b2,
                    eps=1e-5):
    B = p1.shape[0]
    F1, F2, F3, F4 = p1.shape[1], p2.shape[1], p3.shape[1], p4.shape[1]
    E = w1.shape[1]
    O = w2.shape[1]
    scale = gamma / jnp.sqrt(rvar + eps)
    shift = beta - rmean * scale
    s0, s1, s2 = F1, F1 + F2, F1 + F2 + F3
    return pl.pallas_call(
        head_kernel,
        out_shape=jax.ShapeDtypeStruct((B, O), jnp.float32),
        grid=(1,),
        in_specs=[
            pl.BlockSpec((B, F1), lambda i: (0, 0)),
            pl.BlockSpec((B, F2), lambda i: (0, 0)),
            pl.BlockSpec((B, F3), lambda i: (0, 0)),
            pl.BlockSpec((B, F4), lambda i: (0, 0)),
            pl.BlockSpec((F1, E), lambda i: (0, 0)),
            pl.BlockSpec((F2, E), lambda i: (0, 0)),
            pl.BlockSpec((F3, E), lambda i: (0, 0)),
            pl.BlockSpec((F4, E), lambda i: (0, 0)),
            pl.BlockSpec((1, E), lambda i: (0, 0)),
            pl.BlockSpec((1, E), lambda i: (0, 0)),
            pl.BlockSpec((1, E), lambda i: (0, 0)),
            pl.BlockSpec((E, O), lambda i: (0, 0)),
            pl.BlockSpec((1, O), lambda i: (0, 0)),
        ],
        out_specs=pl.BlockSpec((B, O), lambda i: (0, 0)),
        compiler_params=pltpu.CompilerParams(dimension_semantics=("arbitrary",)),
    )(p1, p2, p3, p4,
      w1[:s0].astype(MATMUL_DTYPE), w1[s0:s1].astype(MATMUL_DTYPE),
      w1[s1:s2].astype(MATMUL_DTYPE), w1[s2:].astype(MATMUL_DTYPE),
      b1.reshape(1, E), scale.reshape(1, E), shift.reshape(1, E),
      w2.astype(MATMUL_DTYPE), b2.reshape(1, O))


# ----------------------------------------------------------------------------
# Parameter init (deterministic, PyTorch-Linear-like uniform(-1/sqrt(fan_in),.))
# ----------------------------------------------------------------------------
def _linear_init(key, fan_in, fan_out):
    kw, kb = jax.random.split(key)
    bound = 1.0 / jnp.sqrt(float(fan_in))
    w = jax.random.uniform(kw, (fan_in, fan_out), jnp.float32, -bound, bound)
    b = jax.random.uniform(kb, (fan_out,), jnp.float32, -bound, bound)
    return w, b


def init_dgcnn_params(key, emb_dims=128, output_channels=40):
    keys = jax.random.split(key, 8)
    # DynamicEdgeConv MLPs: (2*Cin -> H, ReLU, H -> H)
    conv_dims = [(6, 64), (128, 64), (128, 128), (256, 256)]
    convs = []
    for i, (cin2, h) in enumerate(conv_dims):
        k1, k2 = jax.random.split(keys[i])
        w1, b1 = _linear_init(k1, cin2, h)
        w2, b2 = _linear_init(k2, h, h)
        convs.append((w1, b1, w2, b2))
    lw1, lb1 = _linear_init(keys[4], 512, emb_dims)
    lw2, lb2 = _linear_init(keys[5], emb_dims, output_channels)
    gamma = jax.random.uniform(keys[6], (emb_dims,), jnp.float32, 0.5, 1.5)
    beta = jax.random.uniform(keys[7], (emb_dims,), jnp.float32, -0.1, 0.1)
    rmean = jnp.zeros((emb_dims,), jnp.float32)
    rvar = jnp.ones((emb_dims,), jnp.float32)
    return {"convs": convs,
            "head": (lw1, lb1, gamma, beta, rmean, rvar, lw2, lb2)}


# ----------------------------------------------------------------------------
# Full forward pass.
# ----------------------------------------------------------------------------
@functools.partial(jax.jit, static_argnames=("k",))
def dgcnn_forward(pos, params, k):
    B, P, _ = pos.shape
    x = pos                                               # (B, P, 3)
    convs = params["convs"]
    pooled_feats = []
    for li, (w1, b1, w2, b2) in enumerate(convs):
        score = pairwise_score(x)                         # (B, P, P) f32, bigger=nearer
        # k-NN in feature space; includes the point itself (max score), matching
        # PyG knn semantics inside DynamicEdgeConv.
        # TODO(synk): top-k selection has no fused Pallas TPU path here; done in XLA.
        _, idx = jax.lax.top_k(score, k)                  # (B, P, k) int32
        idx_kp = jnp.transpose(idx, (0, 2, 1))            # (B, k, P) lane-dense int32
        emit_full = li < len(convs) - 1                   # conv4 only needs the pool
        x_next, xp = edge_conv(x, idx_kp, w1, b1, w2, b2, emit_full=emit_full)
        if emit_full:
            x = x_next
        pooled_feats.append(xp.reshape(B, -1))            # (B, H_i)
    return classifier_head(*pooled_feats, *params["head"])   # (B, num_classes)


# ----------------------------------------------------------------------------
if __name__ == "__main__":
    B, P, K = 2, 32, 4          # small: 2 clouds, 32 points each, k=4 neighbors
    EMB, NCLS = 128, 40

    key = jax.random.PRNGKey(0)
    kpos, kparam = jax.random.split(key)
    pos = jax.random.normal(kpos, (B, P, 3), jnp.float32)     # data.pos (dense layout)
    params = init_dgcnn_params(kparam, emb_dims=EMB, output_channels=NCLS)

    out = dgcnn_forward(pos, params, k=K)
    out = jax.block_until_ready(out)

    assert out.shape == (B, NCLS), out.shape
    # log_softmax rows should exponentiate-sum to ~1
    row_sums = jnp.sum(jnp.exp(out), axis=1)
    assert bool(jnp.all(jnp.abs(row_sums - 1.0) < 1e-2)), row_sums

    print("KERNEL_OK")
</pallas_src>

<mosaic_0001>
module attributes {stable_mosaic.version = 11 : i64} {
  func.func @pdist_kernel(%arg0: i32, %arg1: i32, %arg2: memref<1x32x3xf32, #tpu.memory_space<vmem>>, %arg3: memref<1x1x32xf32, #tpu.memory_space<vmem>>, %arg4: memref<1x32x32xf32, #tpu.memory_space<vmem>>) attributes {dimension_semantics = [#tpu.dimension_semantics<parallel>, #tpu.dimension_semantics<parallel>], iteration_bounds = array<i64: 2, 1>, scalar_prefetch = 0 : i64, scratch_operands = 0 : i64, tpu.core_type = #tpu.core_type<tc>, window_params = [{transform_indices = @transform_0, window_bounds = array<i64: 1, 32, 3>}, {transform_indices = @transform_1, window_bounds = array<i64: 1, 1, 32>}, {transform_indices = @transform_2, window_bounds = array<i64: 1, 32, 32>}]} {
    %c32_i32 = arith.constant 32 : i32
    %0 = arith.muli %arg1, %c32_i32 : i32
    %1 = tpu.assume_multiple %0, 32 : i32
    %c0 = arith.constant 0 : index
    %c0_0 = arith.constant 0 : index
    %c0_1 = arith.constant 0 : index
    %2 = vector.load %arg2[%c0, %c0_0, %c0_1] : memref<1x32x3xf32, #tpu.memory_space<vmem>>, vector<1x32x3xf32>
    %3 = vector.shape_cast %2 : vector<1x32x3xf32> to vector<32x3xf32>
    %c0_2 = arith.constant 0 : index
    %4 = arith.index_cast %1 : i32 to index
    %c0_3 = arith.constant 0 : index
    %5 = vector.load %arg2[%c0_2, %4, %c0_3] : memref<1x32x3xf32, #tpu.memory_space<vmem>>, vector<1x32x3xf32>
    %6 = vector.shape_cast %5 : vector<1x32x3xf32> to vector<32x3xf32>
    %cst = arith.constant dense<0.000000e+00> : vector<32x32xf32>
    %7 = tpu.matmul %3, %6, %cst {dimension_numbers = #tpu.dot_dimension_numbers<[1], [1], [0], [0], [0, 0, 1, 0], [], []>} : vector<32x3xf32>, vector<32x3xf32>, vector<32x32xf32> -> vector<32x32xf32>
    %cst_4 = arith.constant 2.000000e+00 : f32
    %8 = vector.broadcast %cst_4 : f32 to vector<32x32xf32>
    %9 = arith.mulf %8, %7 : vector<32x32xf32>
    %c0_5 = arith.constant 0 : index
    %c0_6 = arith.constant 0 : index
    %c0_7 = arith.constant 0 : index
    %10 = vector.load %arg3[%c0_5, %c0_6, %c0_7] : memref<1x1x32xf32, #tpu.memory_space<vmem>>, vector<1x1x32xf32>
    %11 = vector.shape_cast %10 : vector<1x1x32xf32> to vector<1x32xf32>
    %12 = vector.broadcast %11 : vector<1x32xf32> to vector<32x32xf32>
    %13 = arith.subf %9, %12 : vector<32x32xf32>
    %c0_8 = arith.constant 0 : index
    %c0_9 = arith.constant 0 : index
    %c0_10 = arith.constant 0 : index
    %14 = vector.load %arg4[%c0_8, %c0_9, %c0_10] : memref<1x32x32xf32, #tpu.memory_space<vmem>>, vector<1x32x32xf32>
    %15 = vector.shape_cast %14 : vector<1x32x32xf32> to vector<32x32xf32>
    %16 = vector.shape_cast %13 : vector<32x32xf32> to vector<1x32x32xf32>
    tpu.vector_store %arg4[%c0_8, %c0_9, %c0_10], %16 {strides = array<i32>} : memref<1x32x32xf32, #tpu.memory_space<vmem>>, vector<1x32x32xf32>,
    return
  }
  func.func @transform_0(%arg0: i32, %arg1: i32) -> (i32, i32, i32) {
    %c0_i32 = arith.constant 0 : i32
    %c0_i32_0 = arith.constant 0 : i32
    %c0_i32_1 = arith.constant 0 : i32
    return %arg0, %c0_i32, %c0_i32_0 : i32, i32, i32
  }
  func.func @transform_1(%arg0: i32, %arg1: i32) -> (i32, i32, i32) {
    %c0_i32 = arith.constant 0 : i32
    %c0_i32_0 = arith.constant 0 : i32
    return %arg0, %c0_i32, %arg1 : i32, i32, i32
  }
  func.func @transform_2(%arg0: i32, %arg1: i32) -> (i32, i32, i32) {
    %c0_i32 = arith.constant 0 : i32
    %c0_i32_0 = arith.constant 0 : i32
    return %arg0, %c0_i32, %arg1 : i32, i32, i32
  }
}

module attributes {stable_mosaic.version = 11 : i64} {
  func.func @edgeconv_kernel(%arg0: i32, %arg1: memref<1x32x3xf32, #tpu.memory_space<vmem>>, %arg2: memref<1x4x32xi32, #tpu.memory_space<vmem>>, %arg3: memref<3x128xbf16, #tpu.memory_space<vmem>>, %arg4: memref<1x64xf32, #tpu.memory_space<vmem>>, %arg5: memref<64x64xbf16, #tpu.memory_space<vmem>>, %arg6: memref<1x64xf32, #tpu.memory_space<vmem>>, %arg7: memref<1x32x64xf32, #tpu.memory_space<vmem>>, %arg8: memref<1x1x64xf32, #tpu.memory_space<vmem>>) attributes {dimension_semantics = [#tpu.dimension_semantics<parallel>], iteration_bounds = array<i64: 2>, scalar_prefetch = 0 : i64, scratch_operands = 0 : i64, tpu.core_type = #tpu.core_type<tc>, window_params = [{transform_indices = @transform_0, window_bounds = array<i64: 1, 32, 3>}, {transform_indices = @transform_1, window_bounds = array<i64: 1, 4, 32>}, {pipeline_mode = #tpu.pipeline_mode<synchronous>, transform_indices = @transform_2, window_bounds = array<i64: 3, 128>}, {pipeline_mode = #tpu.pipeline_mode<synchronous>, transform_indices = @transform_3, window_bounds = array<i64: 1, 64>}, {pipeline_mode = #tpu.pipeline_mode<synchronous>, transform_indices = @transform_4, window_bounds = array<i64: 64, 64>}, {pipeline_mode = #tpu.pipeline_mode<synchronous>, transform_indices = @transform_5, window_bounds = array<i64: 1, 64>}, {transform_indices = @transform_6, window_bounds = array<i64: 1, 32, 64>}, {transform_indices = @transform_7, window_bounds = array<i64: 1, 1, 64>}]} {
    %c0 = arith.constant 0 : index
    %c0_0 = arith.constant 0 : index
    %c0_1 = arith.constant 0 : index
    %0 = vector.load %arg1[%c0, %c0_0, %c0_1] : memref<1x32x3xf32, #tpu.memory_space<vmem>>, vector<1x32x3xf32>
    %1 = vector.shape_cast %0 : vector<1x32x3xf32> to vector<32x3xf32>
    %2 = arith.truncf %1 : vector<32x3xf32> to vector<32x3xbf16>
    %c0_2 = arith.constant 0 : index
    %c0_3 = arith.constant 0 : index
    %3 = vector.load %arg3[%c0_2, %c0_3] : memref<3x128xbf16, #tpu.memory_space<vmem>>, vector<3x128xbf16>
    %cst = arith.constant dense<0.000000e+00> : vector<32x128xf32>
    %4 = tpu.matmul %2, %3, %cst {dimension_numbers = #tpu.dot_dimension_numbers<[1], [0], [0], [1], [0, 0, 1, 1], [], []>} : vector<32x3xbf16>, vector<3x128xbf16>, vector<32x128xf32> -> vector<32x128xf32>
    %5 = vector.extract_strided_slice %4 {offsets = [0, 0], sizes = [32, 64], strides = [1, 1]} : vector<32x128xf32> to vector<32x64xf32>
    %c0_4 = arith.constant 0 : index
    %c0_5 = arith.constant 0 : index
    %6 = vector.load %arg4[%c0_4, %c0_5] : memref<1x64xf32, #tpu.memory_space<vmem>>, vector<1x64xf32>
    %7 = vector.broadcast %6 : vector<1x64xf32> to vector<32x64xf32>
    %8 = arith.addf %5, %7 : vector<32x64xf32>
    %9 = tpu.transpose %8, [1, 0] : vector<32x64xf32> -> vector<64x32xf32>
    %10 = vector.extract_strided_slice %4 {offsets = [0, 64], sizes = [32, 64], strides = [1, 1]} : vector<32x128xf32> to vector<32x64xf32>
    %11 = tpu.transpose %10, [1, 0] : vector<32x64xf32> -> vector<64x32xf32>
    %12 = arith.truncf %11 : vector<64x32xf32> to vector<64x32xbf16>
    %c0_6 = arith.constant 0 : index
    %c0_7 = arith.constant 0 : index
    %13 = vector.load %arg5[%c0_6, %c0_7] : memref<64x64xbf16, #tpu.memory_space<vmem>>, vector<64x64xbf16>
    %14 = tpu.iota {dimensions = array<i32: 0>} : vector<32x32xi32>
    %cst_8 = arith.constant 0xFF800000 : f32
    %15 = vector.broadcast %cst_8 : f32 to vector<64x32xf32>
    %c0_i32 = arith.constant 0 : i32
    %c4_i32 = arith.constant 4 : i32
    %16 = arith.addi %c0_i32, %c4_i32 : i32
    %c1_i32 = arith.constant 1 : i32
    %17 = scf.for %arg9 = %c0_i32 to %16 step %c1_i32 iter_args(%arg10 = %15) -> (vector<64x32xf32>)  : i32 {
      %c0_19 = arith.constant 0 : index
      %30 = arith.index_cast %arg9 : i32 to index
      %c0_20 = arith.constant 0 : index
      %31 = vector.load %arg2[%c0_19, %30, %c0_20] : memref<1x4x32xi32, #tpu.memory_space<vmem>>, vector<1x1x32xi32>
      %32 = vector.shape_cast %31 : vector<1x1x32xi32> to vector<1x32xi32>
      %33 = vector.broadcast %32 : vector<1x32xi32> to vector<32x32xi32>
      %34 = arith.cmpi eq, %14, %33 : vector<32x32xi32>
      %cst_21 = arith.constant 1.000000e+00 : f32
      %cst_22 = arith.constant 0.000000e+00 : f32
      %35 = vector.broadcast %cst_21 : f32 to vector<32x32xf32>
      %36 = vector.broadcast %cst_22 : f32 to vector<32x32xf32>
      %37 = arith.select %34, %35, %36 : vector<32x32xi1>, vector<32x32xf32>
      %38 = arith.truncf %37 : vector<32x32xf32> to vector<32x32xbf16>
      %cst_23 = arith.constant dense<0.000000e+00> : vector<64x32xf32>
      %39 = tpu.matmul %12, %38, %cst_23 {dimension_numbers = #tpu.dot_dimension_numbers<[1], [0], [0], [1], [0, 0, 1, 1], [], []>} : vector<64x32xbf16>, vector<32x32xbf16>, vector<64x32xf32> -> vector<64x32xf32>
      %40 = arith.addf %39, %9 : vector<64x32xf32>
      %cst_24 = arith.constant 0.000000e+00 : f32
      %41 = vector.broadcast %cst_24 : f32 to vector<64x32xf32>
      %42 = arith.maximumf %40, %41 : vector<64x32xf32>
      %43 = arith.truncf %42 : vector<64x32xf32> to vector<64x32xbf16>
      %cst_25 = arith.constant dense<0.000000e+00> : vector<64x32xf32>
      %44 = tpu.matmul %13, %43, %cst_25 {dimension_numbers = #tpu.dot_dimension_numbers<[1], [0], [0], [1], [0, 0, 1, 1], [], []>} : vector<64x64xbf16>, vector<64x32xbf16>, vector<64x32xf32> -> vector<64x32xf32>
      %45 = arith.maximumf %arg10, %44 : vector<64x32xf32>
      scf.yield %45 : vector<64x32xf32>
    }
    %c4_i32_9 = arith.constant 4 : i32
    %18 = tpu.transpose %17, [1, 0] : vector<64x32xf32> -> vector<32x64xf32>
    %c0_10 = arith.constant 0 : index
    %c0_11 = arith.constant 0 : index
    %19 = vector.load %arg6[%c0_10, %c0_11] : memref<1x64xf32, #tpu.memory_space<vmem>>, vector<1x64xf32>
    %20 = vector.broadcast %19 : vector<1x64xf32> to vector<32x64xf32>
    %21 = arith.addf %18, %20 : vector<32x64xf32>
    %c0_12 = arith.constant 0 : index
    %c0_13 = arith.constant 0 : index
    %c0_14 = arith.constant 0 : index
    %22 = vector.load %arg7[%c0_12, %c0_13, %c0_14] : memref<1x32x64xf32, #tpu.memory_space<vmem>>, vector<1x32x64xf32>
    %23 = vector.shape_cast %22 : vector<1x32x64xf32> to vector<32x64xf32>
    %24 = vector.shape_cast %21 : vector<32x64xf32> to vector<1x32x64xf32>
    tpu.vector_store %arg7[%c0_12, %c0_13, %c0_14], %24 {strides = array<i32>} : memref<1x32x64xf32, #tpu.memory_space<vmem>>, vector<1x32x64xf32>,
    %cst_15 = arith.constant dense<0xFF800000> : vector<64xf32>
    %25 = vector.multi_reduction <maximumf>, %21, %cst_15 [0] : vector<32x64xf32> to vector<64xf32>
    %26 = vector.shape_cast %25 : vector<64xf32> to vector<1x64xf32>
    %c0_16 = arith.constant 0 : index
    %c0_17 = arith.constant 0 : index
    %c0_18 = arith.constant 0 : index
    %27 = vector.load %arg8[%c0_16, %c0_17, %c0_18] : memref<1x1x64xf32, #tpu.memory_space<vmem>>, vector<1x1x64xf32>
    %28 = vector.shape_cast %27 : vector<1x1x64xf32> to vector<1x64xf32>
    %29 = vector.shape_cast %26 : vector<1x64xf32> to vector<1x1x64xf32>
    tpu.vector_store %arg8[%c0_16, %c0_17, %c0_18], %29 {strides = array<i32>} : memref<1x1x64xf32, #tpu.memory_space<vmem>>, vector<1x1x64xf32>,
    return
  }
  func.func @transform_0(%arg0: i32) -> (i32, i32, i32) {
    %c0_i32 = arith.constant 0 : i32
    %c0_i32_0 = arith.constant 0 : i32
    %c0_i32_1 = arith.constant 0 : i32
    return %arg0, %c0_i32, %c0_i32_0 : i32, i32, i32
  }
  func.func @transform_1(%arg0: i32) -> (i32, i32, i32) {
    %c0_i32 = arith.constant 0 : i32
    %c0_i32_0 = arith.constant 0 : i32
    %c0_i32_1 = arith.constant 0 : i32
    return %arg0, %c0_i32, %c0_i32_0 : i32, i32, i32
  }
  func.func @transform_2(%arg0: i32) -> (i32, i32) {
    %c0_i32 = arith.constant 0 : i32
    %c0_i32_0 = arith.constant 0 : i32
    %c0_i32_1 = arith.constant 0 : i32
    return %c0_i32, %c0_i32_0 : i32, i32
  }
  func.func @transform_3(%arg0: i32) -> (i32, i32) {
    %c0_i32 = arith.constant 0 : i32
    %c0_i32_0 = arith.constant 0 : i32
    %c0_i32_1 = arith.constant 0 : i32
    return %c0_i32, %c0_i32_0 : i32, i32
  }
  func.func @transform_4(%arg0: i32) -> (i32, i32) {
    %c0_i32 = arith.constant 0 : i32
    %c0_i32_0 = arith.constant 0 : i32
    %c0_i32_1 = arith.constant 0 : i32
    return %c0_i32, %c0_i32_0 : i32, i32
  }
  func.func @transform_5(%arg0: i32) -> (i32, i32) {
    %c0_i32 = arith.constant 0 : i32
    %c0_i32_0 = arith.constant 0 : i32
    %c0_i32_1 = arith.constant 0 : i32
    return %c0_i32, %c0_i32_0 : i32, i32
  }
  func.func @transform_6(%arg0: i32) -> (i32, i32, i32) {
    %c0_i32 = arith.constant 0 : i32
    %c0_i32_0 = arith.constant 0 : i32
    %c0_i32_1 = arith.constant 0 : i32
    return %arg0, %c0_i32, %c0_i32_0 : i32, i32, i32
  }
  func.func @transform_7(%arg0: i32) -> (i32, i32, i32) {
    %c0_i32 = arith.constant 0 : i32
    %c0_i32_0 = arith.constant 0 : i32
    %c0_i32_1 = arith.constant 0 : i32
    return %arg0, %c0_i32, %c0_i32_0 : i32, i32, i32
  }
}

module attributes {stable_mosaic.version = 11 : i64} {
  func.func @pdist_kernel(%arg0: i32, %arg1: i32, %arg2: memref<1x32x64xf32, #tpu.memory_space<vmem>>, %arg3: memref<1x1x32xf32, #tpu.memory_space<vmem>>, %arg4: memref<1x32x32xf32, #tpu.memory_space<vmem>>) attributes {dimension_semantics = [#tpu.dimension_semantics<parallel>, #tpu.dimension_semantics<parallel>], iteration_bounds = array<i64: 2, 1>, scalar_prefetch = 0 : i64, scratch_operands = 0 : i64, tpu.core_type = #tpu.core_type<tc>, window_params = [{transform_indices = @transform_0, window_bounds = array<i64: 1, 32, 64>}, {transform_indices = @transform_1, window_bounds = array<i64: 1, 1, 32>}, {transform_indices = @transform_2, window_bounds = array<i64: 1, 32, 32>}]} {
    %c32_i32 = arith.constant 32 : i32
    %0 = arith.muli %arg1, %c32_i32 : i32
    %1 = tpu.assume_multiple %0, 32 : i32
    %c0 = arith.constant 0 : index
    %c0_0 = arith.constant 0 : index
    %c0_1 = arith.constant 0 : index
    %2 = vector.load %arg2[%c0, %c0_0, %c0_1] : memref<1x32x64xf32, #tpu.memory_space<vmem>>, vector<1x32x64xf32>
    %3 = vector.shape_cast %2 : vector<1x32x64xf32> to vector<32x64xf32>
    %c0_2 = arith.constant 0 : index
    %4 = arith.index_cast %1 : i32 to index
    %c0_3 = arith.constant 0 : index
    %5 = vector.load %arg2[%c0_2, %4, %c0_3] : memref<1x32x64xf32, #tpu.memory_space<vmem>>, vector<1x32x64xf32>
    %6 = vector.shape_cast %5 : vector<1x32x64xf32> to vector<32x64xf32>
    %cst = arith.constant dense<0.000000e+00> : vector<32x32xf32>
    %7 = tpu.matmul %3, %6, %cst {dimension_numbers = #tpu.dot_dimension_numbers<[1], [1], [0], [0], [0, 0, 1, 0], [], []>} : vector<32x64xf32>, vector<32x64xf32>, vector<32x32xf32> -> vector<32x32xf32>
    %cst_4 = arith.constant 2.000000e+00 : f32
    %8 = vector.broadcast %cst_4 : f32 to vector<32x32xf32>
    %9 = arith.mulf %8, %7 : vector<32x32xf32>
    %c0_5 = arith.constant 0 : index
    %c0_6 = arith.constant 0 : index
    %c0_7 = arith.constant 0 : index
    %10 = vector.load %arg3[%c0_5, %c0_6, %c0_7] : memref<1x1x32xf32, #tpu.memory_space<vmem>>, vector<1x1x32xf32>
    %11 = vector.shape_cast %10 : vector<1x1x32xf32> to vector<1x32xf32>
    %12 = vector.broadcast %11 : vector<1x32xf32> to vector<32x32xf32>
    %13 = arith.subf %9, %12 : vector<32x32xf32>
    %c0_8 = arith.constant 0 : index
    %c0_9 = arith.constant 0 : index
    %c0_10 = arith.constant 0 : index
    %14 = vector.load %arg4[%c0_8, %c0_9, %c0_10] : memref<1x32x32xf32, #tpu.memory_space<vmem>>, vector<1x32x32xf32>
    %15 = vector.shape_cast %14 : vector<1x32x32xf32> to vector<32x32xf32>
    %16 = vector.shape_cast %13 : vector<32x32xf32> to vector<1x32x32xf32>
    tpu.vector_store %arg4[%c0_8, %c0_9, %c0_10], %16 {strides = array<i32>} : memref<1x32x32xf32, #tpu.memory_space<vmem>>, vector<1x32x32xf32>,
    return
  }
  func.func @transform_0(%arg0: i32, %arg1: i32) -> (i32, i32, i32) {
    %c0_i32 = arith.constant 0 : i32
    %c0_i32_0 = arith.constant 0 : i32
    %c0_i32_1 = arith.constant 0 : i32
    return %arg0, %c0_i32, %c0_i32_0 : i32, i32, i32
  }
  func.func @transform_1(%arg0: i32, %arg1: i32) -> (i32, i32, i32) {
    %c0_i32 = arith.constant 0 : i32
    %c0_i32_0 = arith.constant 0 : i32
    return %arg0, %c0_i32, %arg1 : i32, i32, i32
  }
  func.func @transform_2(%arg0: i32, %arg1: i32) -> (i32, i32, i32) {
    %c0_i32 = arith.constant 0 : i32
    %c0_i32_0 = arith.constant 0 : i32
    return %arg0, %c0_i32, %arg1 : i32, i32, i32
  }
}

module attributes {stable_mosaic.version = 11 : i64} {
  func.func @edgeconv_kernel(%arg0: i32, %arg1: memref<1x32x64xf32, #tpu.memory_space<vmem>>, %arg2: memref<1x4x32xi32, #tpu.memory_space<vmem>>, %arg3: memref<64x128xbf16, #tpu.memory_space<vmem>>, %arg4: memref<1x64xf32, #tpu.memory_space<vmem>>, %arg5: memref<64x64xbf16, #tpu.memory_space<vmem>>, %arg6: memref<1x64xf32, #tpu.memory_space<vmem>>, %arg7: memref<1x32x64xf32, #tpu.memory_space<vmem>>, %arg8: memref<1x1x64xf32, #tpu.memory_space<vmem>>) attributes {dimension_semantics = [#tpu.dimension_semantics<parallel>], iteration_bounds = array<i64: 2>, scalar_prefetch = 0 : i64, scratch_operands = 0 : i64, tpu.core_type = #tpu.core_type<tc>, window_params = [{transform_indices = @transform_0, window_bounds = array<i64: 1, 32, 64>}, {transform_indices = @transform_1, window_bounds = array<i64: 1, 4, 32>}, {pipeline_mode = #tpu.pipeline_mode<synchronous>, transform_indices = @transform_2, window_bounds = array<i64: 64, 128>}, {pipeline_mode = #tpu.pipeline_mode<synchronous>, transform_indices = @transform_3, window_bounds = array<i64: 1, 64>}, {pipeline_mode = #tpu.pipeline_mode<synchronous>, transform_indices = @transform_4, window_bounds = array<i64: 64, 64>}, {pipeline_mode = #tpu.pipeline_mode<synchronous>, transform_indices = @transform_5, window_bounds = array<i64: 1, 64>}, {transform_indices = @transform_6, window_bounds = array<i64: 1, 32, 64>}, {transform_indices = @transform_7, window_bounds = array<i64: 1, 1, 64>}]} {
    %c0 = arith.constant 0 : index
    %c0_0 = arith.constant 0 : index
    %c0_1 = arith.constant 0 : index
    %0 = vector.load %arg1[%c0, %c0_0, %c0_1] : memref<1x32x64xf32, #tpu.memory_space<vmem>>, vector<1x32x64xf32>
    %1 = vector.shape_cast %0 : vector<1x32x64xf32> to vector<32x64xf32>
    %2 = arith.truncf %1 : vector<32x64xf32> to vector<32x64xbf16>
    %c0_2 = arith.constant 0 : index
    %c0_3 = arith.constant 0 : index
    %3 = vector.load %arg3[%c0_2, %c0_3] : memref<64x128xbf16, #tpu.memory_space<vmem>>, vector<64x128xbf16>
    %cst = arith.constant dense<0.000000e+00> : vector<32x128xf32>
    %4 = tpu.matmul %2, %3, %cst {dimension_numbers = #tpu.dot_dimension_numbers<[1], [0], [0], [1], [0, 0, 1, 1], [], []>} : vector<32x64xbf16>, vector<64x128xbf16>, vector<32x128xf32> -> vector<32x128xf32>
    %5 = vector.extract_strided_slice %4 {offsets = [0, 0], sizes = [32, 64], strides = [1, 1]} : vector<32x128xf32> to vector<32x64xf32>
    %c0_4 = arith.constant 0 : index
    %c0_5 = arith.constant 0 : index
    %6 = vector.load %arg4[%c0_4, %c0_5] : memref<1x64xf32, #tpu.memory_space<vmem>>, vector<1x64xf32>
    %7 = vector.broadcast %6 : vector<1x64xf32> to vector<32x64xf32>
    %8 = arith.addf %5, %7 : vector<32x64xf32>
    %9 = tpu.transpose %8, [1, 0] : vector<32x64xf32> -> vector<64x32xf32>
    %10 = vector.extract_strided_slice %4 {offsets = [0, 64], sizes = [32, 64], strides = [1, 1]} : vector<32x128xf32> to vector<32x64xf32>
    %11 = tpu.transpose %10, [1, 0] : vector<32x64xf32> -> vector<64x32xf32>
    %12 = arith.truncf %11 : vector<64x32xf32> to vector<64x32xbf16>
    %c0_6 = arith.constant 0 : index
    %c0_7 = arith.constant 0 : index
    %13 = vector.load %arg5[%c0_6, %c0_7] : memref<64x64xbf16, #tpu.memory_space<vmem>>, vector<64x64xbf16>
    %14 = tpu.iota {dimensions = array<i32: 0>} : vector<32x32xi32>
    %cst_8 = arith.constant 0xFF800000 : f32
    %15 = vector.broadcast %cst_8 : f32 to vector<64x32xf32>
    %c0_i32 = arith.constant 0 : i32
    %c4_i32 = arith.constant 4 : i32
    %16 = arith.addi %c0_i32, %c4_i32 : i32
    %c1_i32 = arith.constant 1 : i32
    %17 = scf.for %arg9 = %c0_i32 to %16 step %c1_i32 iter_args(%arg10 = %15) -> (vector<64x32xf32>)  : i32 {
      %c0_19 = arith.constant 0 : index
      %30 = arith.index_cast %arg9 : i32 to index
      %c0_20 = arith.constant 0 : index
      %31 = vector.load %arg2[%c0_19, %30, %c0_20] : memref<1x4x32xi32, #tpu.memory_space<vmem>>, vector<1x1x32xi32>
      %32 = vector.shape_cast %31 : vector<1x1x32xi32> to vector<1x32xi32>
      %33 = vector.broadcast %32 : vector<1x32xi32> to vector<32x32xi32>
      %34 = arith.cmpi eq, %14, %33 : vector<32x32xi32>
      %cst_21 = arith.constant 1.000000e+00 : f32
      %cst_22 = arith.constant 0.000000e+00 : f32
      %35 = vector.broadcast %cst_21 : f32 to vector<32x32xf32>
      %36 = vector.broadcast %cst_22 : f32 to vector<32x32xf32>
      %37 = arith.select %34, %35, %36 : vector<32x32xi1>, vector<32x32xf32>
      %38 = arith.truncf %37 : vector<32x32xf32> to vector<32x32xbf16>
      %cst_23 = arith.constant dense<0.000000e+00> : vector<64x32xf32>
      %39 = tpu.matmul %12, %38, %cst_23 {dimension_numbers = #tpu.dot_dimension_numbers<[1], [0], [0], [1], [0, 0, 1, 1], [], []>} : vector<64x32xbf16>, vector<32x32xbf16>, vector<64x32xf32> -> vector<64x32xf32>
      %40 = arith.addf %39, %9 : vector<64x32xf32>
      %cst_24 = arith.constant 0.000000e+00 : f32
      %41 = vector.broadcast %cst_24 : f32 to vector<64x32xf32>
      %42 = arith.maximumf %40, %41 : vector<64x32xf32>
      %43 = arith.truncf %42 : vector<64x32xf32> to vector<64x32xbf16>
      %cst_25 = arith.constant dense<0.000000e+00> : vector<64x32xf32>
      %44 = tpu.matmul %13, %43, %cst_25 {dimension_numbers = #tpu.dot_dimension_numbers<[1], [0], [0], [1], [0, 0, 1, 1], [], []>} : vector<64x64xbf16>, vector<64x32xbf16>, vector<64x32xf32> -> vector<64x32xf32>
      %45 = arith.maximumf %arg10, %44 : vector<64x32xf32>
      scf.yield %45 : vector<64x32xf32>
    }
    %c4_i32_9 = arith.constant 4 : i32
    %18 = tpu.transpose %17, [1, 0] : vector<64x32xf32> -> vector<32x64xf32>
    %c0_10 = arith.constant 0 : index
    %c0_11 = arith.constant 0 : index
    %19 = vector.load %arg6[%c0_10, %c0_11] : memref<1x64xf32, #tpu.memory_space<vmem>>, vector<1x64xf32>
    %20 = vector.broadcast %19 : vector<1x64xf32> to vector<32x64xf32>
    %21 = arith.addf %18, %20 : vector<32x64xf32>
    %c0_12 = arith.constant 0 : index
    %c0_13 = arith.constant 0 : index
    %c0_14 = arith.constant 0 : index
    %22 = vector.load %arg7[%c0_12, %c0_13, %c0_14] : memref<1x32x64xf32, #tpu.memory_space<vmem>>, vector<1x32x64xf32>
    %23 = vector.shape_cast %22 : vector<1x32x64xf32> to vector<32x64xf32>
    %24 = vector.shape_cast %21 : vector<32x64xf32> to vector<1x32x64xf32>
    tpu.vector_store %arg7[%c0_12, %c0_13, %c0_14], %24 {strides = array<i32>} : memref<1x32x64xf32, #tpu.memory_space<vmem>>, vector<1x32x64xf32>,
    %cst_15 = arith.constant dense<0xFF800000> : vector<64xf32>
    %25 = vector.multi_reduction <maximumf>, %21, %cst_15 [0] : vector<32x64xf32> to vector<64xf32>
    %26 = vector.shape_cast %25 : vector<64xf32> to vector<1x64xf32>
    %c0_16 = arith.constant 0 : index
    %c0_17 = arith.constant 0 : index
    %c0_18 = arith.constant 0 : index
    %27 = vector.load %arg8[%c0_16, %c0_17, %c0_18] : memref<1x1x64xf32, #tpu.memory_space<vmem>>, vector<1x1x64xf32>
    %28 = vector.shape_cast %27 : vector<1x1x64xf32> to vector<1x64xf32>
    %29 = vector.shape_cast %26 : vector<1x64xf32> to vector<1x1x64xf32>
    tpu.vector_store %arg8[%c0_16, %c0_17, %c0_18], %29 {strides = array<i32>} : memref<1x1x64xf32, #tpu.memory_space<vmem>>, vector<1x1x64xf32>,
    return
  }
  func.func @transform_0(%arg0: i32) -> (i32, i32, i32) {
    %c0_i32 = arith.constant 0 : i32
    %c0_i32_0 = arith.constant 0 : i32
    %c0_i32_1 = arith.constant 0 : i32
    return %arg0, %c0_i32, %c0_i32_0 : i32, i32, i32
  }
  func.func @transform_1(%arg0: i32) -> (i32, i32, i32) {
    %c0_i32 = arith.constant 0 : i32
    %c0_i32_0 = arith.constant 0 : i32
    %c0_i32_1 = arith.constant 0 : i32
    return %arg0, %c0_i32, %c0_i32_0 : i32, i32, i32
  }
  func.func @transform_2(%arg0: i32) -> (i32, i32) {
    %c0_i32 = arith.constant 0 : i32
    %c0_i32_0 = arith.constant 0 : i32
    %c0_i32_1 = arith.constant 0 : i32
    return %c0_i32, %c0_i32_0 : i32, i32
  }
  func.func @transform_3(%arg0: i32) -> (i32, i32) {
    %c0_i32 = arith.constant 0 : i32
    %c0_i32_0 = arith.constant 0 : i32
    %c0_i32_1 = arith.constant 0 : i32
    return %c0_i32, %c0_i32_0 : i32, i32
  }
  func.func @transform_4(%arg0: i32) -> (i32, i32) {
    %c0_i32 = arith.constant 0 : i32
    %c0_i32_0 = arith.constant 0 : i32
    %c0_i32_1 = arith.constant 0 : i32
    return %c0_i32, %c0_i32_0 : i32, i32
  }
  func.func @transform_5(%arg0: i32) -> (i32, i32) {
    %c0_i32 = arith.constant 0 : i32
    %c0_i32_0 = arith.constant 0 : i32
    %c0_i32_1 = arith.constant 0 : i32
    return %c0_i32, %c0_i32_0 : i32, i32
  }
  func.func @transform_6(%arg0: i32) -> (i32, i32, i32) {
    %c0_i32 = arith.constant 0 : i32
    %c0_i32_0 = arith.constant 0 : i32
    %c0_i32_1 = arith.constant 0 : i32
    return %arg0, %c0_i32, %c0_i32_0 : i32, i32, i32
  }
  func.func @transform_7(%arg0: i32) -> (i32, i32, i32) {
    %c0_i32 = arith.constant 0 : i32
    %c0_i32_0 = arith.constant 0 : i32
    %c0_i32_1 = arith.constant 0 : i32
    return %arg0, %c0_i32, %c0_i32_0 : i32, i32, i32
  }
}

module attributes {stable_mosaic.version = 11 : i64} {
  func.func @edgeconv_kernel(%arg0: i32, %arg1: memref<1x32x64xf32, #tpu.memory_space<vmem>>, %arg2: memref<1x4x32xi32, #tpu.memory_space<vmem>>, %arg3: memref<64x256xbf16, #tpu.memory_space<vmem>>, %arg4: memref<1x128xf32, #tpu.memory_space<vmem>>, %arg5: memref<128x128xbf16, #tpu.memory_space<vmem>>, %arg6: memref<1x128xf32, #tpu.memory_space<vmem>>, %arg7: memref<1x32x128xf32, #tpu.memory_space<vmem>>, %arg8: memref<1x1x128xf32, #tpu.memory_space<vmem>>) attributes {dimension_semantics = [#tpu.dimension_semantics<parallel>], iteration_bounds = array<i64: 2>, scalar_prefetch = 0 : i64, scratch_operands = 0 : i64, tpu.core_type = #tpu.core_type<tc>, window_params = [{transform_indices = @transform_0, window_bounds = array<i64: 1, 32, 64>}, {transform_indices = @transform_1, window_bounds = array<i64: 1, 4, 32>}, {pipeline_mode = #tpu.pipeline_mode<synchronous>, transform_indices = @transform_2, window_bounds = array<i64: 64, 256>}, {pipeline_mode = #tpu.pipeline_mode<synchronous>, transform_indices = @transform_3, window_bounds = array<i64: 1, 128>}, {pipeline_mode = #tpu.pipeline_mode<synchronous>, transform_indices = @transform_4, window_bounds = array<i64: 128, 128>}, {pipeline_mode = #tpu.pipeline_mode<synchronous>, transform_indices = @transform_5, window_bounds = array<i64: 1, 128>}, {transform_indices = @transform_6, window_bounds = array<i64: 1, 32, 128>}, {transform_indices = @transform_7, window_bounds = array<i64: 1, 1, 128>}]} {
    %c0 = arith.constant 0 : index
    %c0_0 = arith.constant 0 : index
    %c0_1 = arith.constant 0 : index
    %0 = vector.load %arg1[%c0, %c0_0, %c0_1] : memref<1x32x64xf32, #tpu.memory_space<vmem>>, vector<1x32x64xf32>
    %1 = vector.shape_cast %0 : vector<1x32x64xf32> to vector<32x64xf32>
    %2 = arith.truncf %1 : vector<32x64xf32> to vector<32x64xbf16>
    %c0_2 = arith.constant 0 : index
    %c0_3 = arith.constant 0 : index
    %3 = vector.load %arg3[%c0_2, %c0_3] : memref<64x256xbf16, #tpu.memory_space<vmem>>, vector<64x256xbf16>
    %cst = arith.constant dense<0.000000e+00> : vector<32x256xf32>
    %4 = tpu.matmul %2, %3, %cst {dimension_numbers = #tpu.dot_dimension_numbers<[1], [0], [0], [1], [0, 0, 1, 1], [], []>} : vector<32x64xbf16>, vector<64x256xbf16>, vector<32x256xf32> -> vector<32x256xf32>
    %5 = vector.extract_strided_slice %4 {offsets = [0, 0], sizes = [32, 128], strides = [1, 1]} : vector<32x256xf32> to vector<32x128xf32>
    %c0_4 = arith.constant 0 : index
    %c0_5 = arith.constant 0 : index
    %6 = vector.load %arg4[%c0_4, %c0_5] : memref<1x128xf32, #tpu.memory_space<vmem>>, vector<1x128xf32>
    %7 = vector.broadcast %6 : vector<1x128xf32> to vector<32x128xf32>
    %8 = arith.addf %5, %7 : vector<32x128xf32>
    %9 = tpu.transpose %8, [1, 0] : vector<32x128xf32> -> vector<128x32xf32>
    %10 = vector.extract_strided_slice %4 {offsets = [0, 128], sizes = [32, 128], strides = [1, 1]} : vector<32x256xf32> to vector<32x128xf32>
    %11 = tpu.transpose %10, [1, 0] : vector<32x128xf32> -> vector<128x32xf32>
    %12 = arith.truncf %11 : vector<128x32xf32> to vector<128x32xbf16>
    %c0_6 = arith.constant 0 : index
    %c0_7 = arith.constant 0 : index
    %13 = vector.load %arg5[%c0_6, %c0_7] : memref<128x128xbf16, #tpu.memory_space<vmem>>, vector<128x128xbf16>
    %14 = tpu.iota {dimensions = array<i32: 0>} : vector<32x32xi32>
    %cst_8 = arith.constant 0xFF800000 : f32
    %15 = vector.broadcast %cst_8 : f32 to vector<128x32xf32>
    %c0_i32 = arith.constant 0 : i32
    %c4_i32 = arith.constant 4 : i32
    %16 = arith.addi %c0_i32, %c4_i32 : i32
    %c1_i32 = arith.constant 1 : i32
    %17 = scf.for %arg9 = %c0_i32 to %16 step %c1_i32 iter_args(%arg10 = %15) -> (vector<128x32xf32>)  : i32 {
      %c0_19 = arith.constant 0 : index
      %30 = arith.index_cast %arg9 : i32 to index
      %c0_20 = arith.constant 0 : index
      %31 = vector.load %arg2[%c0_19, %30, %c0_20] : memref<1x4x32xi32, #tpu.memory_space<vmem>>, vector<1x1x32xi32>
      %32 = vector.shape_cast %31 : vector<1x1x32xi32> to vector<1x32xi32>
      %33 = vector.broadcast %32 : vector<1x32xi32> to vector<32x32xi32>
      %34 = arith.cmpi eq, %14, %33 : vector<32x32xi32>
      %cst_21 = arith.constant 1.000000e+00 : f32
      %cst_22 = arith.constant 0.000000e+00 : f32
      %35 = vector.broadcast %cst_21 : f32 to vector<32x32xf32>
      %36 = vector.broadcast %cst_22 : f32 to vector<32x32xf32>
      %37 = arith.select %34, %35, %36 : vector<32x32xi1>, vector<32x32xf32>
      %38 = arith.truncf %37 : vector<32x32xf32> to vector<32x32xbf16>
      %cst_23 = arith.constant dense<0.000000e+00> : vector<128x32xf32>
      %39 = tpu.matmul %12, %38, %cst_23 {dimension_numbers = #tpu.dot_dimension_numbers<[1], [0], [0], [1], [0, 0, 1, 1], [], []>} : vector<128x32xbf16>, vector<32x32xbf16>, vector<128x32xf32> -> vector<128x32xf32>
      %40 = arith.addf %39, %9 : vector<128x32xf32>
      %cst_24 = arith.constant 0.000000e+00 : f32
      %41 = vector.broadcast %cst_24 : f32 to vector<128x32xf32>
      %42 = arith.maximumf %40, %41 : vector<128x32xf32>
      %43 = arith.truncf %42 : vector<128x32xf32> to vector<128x32xbf16>
      %cst_25 = arith.constant dense<0.000000e+00> : vector<128x32xf32>
      %44 = tpu.matmul %13, %43, %cst_25 {dimension_numbers = #tpu.dot_dimension_numbers<[1], [0], [0], [1], [0, 0, 1, 1], [], []>} : vector<128x128xbf16>, vector<128x32xbf16>, vector<128x32xf32> -> vector<128x32xf32>
      %45 = arith.maximumf %arg10, %44 : vector<128x32xf32>
      scf.yield %45 : vector<128x32xf32>
    }
    %c4_i32_9 = arith.constant 4 : i32
    %18 = tpu.transpose %17, [1, 0] : vector<128x32xf32> -> vector<32x128xf32>
    %c0_10 = arith.constant 0 : index
    %c0_11 = arith.constant 0 : index
    %19 = vector.load %arg6[%c0_10, %c0_11] : memref<1x128xf32, #tpu.memory_space<vmem>>, vector<1x128xf32>
    %20 = vector.broadcast %19 : vector<1x128xf32> to vector<32x128xf32>
    %21 = arith.addf %18, %20 : vector<32x128xf32>
    %c0_12 = arith.constant 0 : index
    %c0_13 = arith.constant 0 : index
    %c0_14 = arith.constant 0 : index
    %22 = vector.load %arg7[%c0_12, %c0_13, %c0_14] : memref<1x32x128xf32, #tpu.memory_space<vmem>>, vector<1x32x128xf32>
    %23 = vector.shape_cast %22 : vector<1x32x128xf32> to vector<32x128xf32>
    %24 = vector.shape_cast %21 : vector<32x128xf32> to vector<1x32x128xf32>
    tpu.vector_store %arg7[%c0_12, %c0_13, %c0_14], %24 {strides = array<i32>} : memref<1x32x128xf32, #tpu.memory_space<vmem>>, vector<1x32x128xf32>,
    %cst_15 = arith.constant dense<0xFF800000> : vector<128xf32>
    %25 = vector.multi_reduction <maximumf>, %21, %cst_15 [0] : vector<32x128xf32> to vector<128xf32>
    %26 = vector.shape_cast %25 : vector<128xf32> to vector<1x128xf32>
    %c0_16 = arith.constant 0 : index
    %c0_17 = arith.constant 0 : index
    %c0_18 = arith.constant 0 : index
    %27 = vector.load %arg8[%c0_16, %c0_17, %c0_18] : memref<1x1x128xf32, #tpu.memory_space<vmem>>, vector<1x1x128xf32>
    %28 = vector.shape_cast %27 : vector<1x1x128xf32> to vector<1x128xf32>
    %29 = vector.shape_cast %26 : vector<1x128xf32> to vector<1x1x128xf32>
    tpu.vector_store %arg8[%c0_16, %c0_17, %c0_18], %29 {strides = array<i32>} : memref<1x1x128xf32, #tpu.memory_space<vmem>>, vector<1x1x128xf32>,
    return
  }
  func.func @transform_0(%arg0: i32) -> (i32, i32, i32) {
    %c0_i32 = arith.constant 0 : i32
    %c0_i32_0 = arith.constant 0 : i32
    %c0_i32_1 = arith.constant 0 : i32
    return %arg0, %c0_i32, %c0_i32_0 : i32, i32, i32
  }
  func.func @transform_1(%arg0: i32) -> (i32, i32, i32) {
    %c0_i32 = arith.constant 0 : i32
    %c0_i32_0 = arith.constant 0 : i32
    %c0_i32_1 = arith.constant 0 : i32
    return %arg0, %c0_i32, %c0_i32_0 : i32, i32, i32
  }
  func.func @transform_2(%arg0: i32) -> (i32, i32) {
    %c0_i32 = arith.constant 0 : i32
    %c0_i32_0 = arith.constant 0 : i32
    %c0_i32_1 = arith.constant 0 : i32
    return %c0_i32, %c0_i32_0 : i32, i32
  }
  func.func @transform_3(%arg0: i32) -> (i32, i32) {
    %c0_i32 = arith.constant 0 : i32
    %c0_i32_0 = arith.constant 0 : i32
    %c0_i32_1 = arith.constant 0 : i32
    return %c0_i32, %c0_i32_0 : i32, i32
  }
  func.func @transform_4(%arg0: i32) -> (i32, i32) {
    %c0_i32 = arith.constant 0 : i32
    %c0_i32_0 = arith.constant 0 : i32
    %c0_i32_1 = arith.constant 0 : i32
    return %c0_i32, %c0_i32_0 : i32, i32
  }
  func.func @transform_5(%arg0: i32) -> (i32, i32) {
    %c0_i32 = arith.constant 0 : i32
    %c0_i32_0 = arith.constant 0 : i32
    %c0_i32_1 = arith.constant 0 : i32
    return %c0_i32, %c0_i32_0 : i32, i32
  }
  func.func @transform_6(%arg0: i32) -> (i32, i32, i32) {
    %c0_i32 = arith.constant 0 : i32
    %c0_i32_0 = arith.constant 0 : i32
    %c0_i32_1 = arith.constant 0 : i32
    return %arg0, %c0_i32, %c0_i32_0 : i32, i32, i32
  }
  func.func @transform_7(%arg0: i32) -> (i32, i32, i32) {
    %c0_i32 = arith.constant 0 : i32
    %c0_i32_0 = arith.constant 0 : i32
    %c0_i32_1 = arith.constant 0 : i32
    return %arg0, %c0_i32, %c0_i32_0 : i32, i32, i32
  }
}

module attributes {stable_mosaic.version = 11 : i64} {
  func.func @pdist_kernel(%arg0: i32, %arg1: i32, %arg2: memref<1x32x128xf32, #tpu.memory_space<vmem>>, %arg3: memref<1x1x32xf32, #tpu.memory_space<vmem>>, %arg4: memref<1x32x32xf32, #tpu.memory_space<vmem>>) attributes {dimension_semantics = [#tpu.dimension_semantics<parallel>, #tpu.dimension_semantics<parallel>], iteration_bounds = array<i64: 2, 1>, scalar_prefetch = 0 : i64, scratch_operands = 0 : i64, tpu.core_type = #tpu.core_type<tc>, window_params = [{transform_indices = @transform_0, window_bounds = array<i64: 1, 32, 128>}, {transform_indices = @transform_1, window_bounds = array<i64: 1, 1, 32>}, {transform_indices = @transform_2, window_bounds = array<i64: 1, 32, 32>}]} {
    %c32_i32 = arith.constant 32 : i32
    %0 = arith.muli %arg1, %c32_i32 : i32
    %1 = tpu.assume_multiple %0, 32 : i32
    %c0 = arith.constant 0 : index
    %c0_0 = arith.constant 0 : index
    %c0_1 = arith.constant 0 : index
    %2 = vector.load %arg2[%c0, %c0_0, %c0_1] : memref<1x32x128xf32, #tpu.memory_space<vmem>>, vector<1x32x128xf32>
    %3 = vector.shape_cast %2 : vector<1x32x128xf32> to vector<32x128xf32>
    %c0_2 = arith.constant 0 : index
    %4 = arith.index_cast %1 : i32 to index
    %c0_3 = arith.constant 0 : index
    %5 = vector.load %arg2[%c0_2, %4, %c0_3] : memref<1x32x128xf32, #tpu.memory_space<vmem>>, vector<1x32x128xf32>
    %6 = vector.shape_cast %5 : vector<1x32x128xf32> to vector<32x128xf32>
    %cst = arith.constant dense<0.000000e+00> : vector<32x32xf32>
    %7 = tpu.matmul %3, %6, %cst {dimension_numbers = #tpu.dot_dimension_numbers<[1], [1], [0], [0], [0, 0, 1, 0], [], []>} : vector<32x128xf32>, vector<32x128xf32>, vector<32x32xf32> -> vector<32x32xf32>
    %cst_4 = arith.constant 2.000000e+00 : f32
    %8 = vector.broadcast %cst_4 : f32 to vector<32x32xf32>
    %9 = arith.mulf %8, %7 : vector<32x32xf32>
    %c0_5 = arith.constant 0 : index
    %c0_6 = arith.constant 0 : index
    %c0_7 = arith.constant 0 : index
    %10 = vector.load %arg3[%c0_5, %c0_6, %c0_7] : memref<1x1x32xf32, #tpu.memory_space<vmem>>, vector<1x1x32xf32>
    %11 = vector.shape_cast %10 : vector<1x1x32xf32> to vector<1x32xf32>
    %12 = vector.broadcast %11 : vector<1x32xf32> to vector<32x32xf32>
    %13 = arith.subf %9, %12 : vector<32x32xf32>
    %c0_8 = arith.constant 0 : index
    %c0_9 = arith.constant 0 : index
    %c0_10 = arith.constant 0 : index
    %14 = vector.load %arg4[%c0_8, %c0_9, %c0_10] : memref<1x32x32xf32, #tpu.memory_space<vmem>>, vector<1x32x32xf32>
    %15 = vector.shape_cast %14 : vector<1x32x32xf32> to vector<32x32xf32>
    %16 = vector.shape_cast %13 : vector<32x32xf32> to vector<1x32x32xf32>
    tpu.vector_store %arg4[%c0_8, %c0_9, %c0_10], %16 {strides = array<i32>} : memref<1x32x32xf32, #tpu.memory_space<vmem>>, vector<1x32x32xf32>,
    return
  }
  func.func @transform_0(%arg0: i32, %arg1: i32) -> (i32, i32, i32) {
    %c0_i32 = arith.constant 0 : i32
    %c0_i32_0 = arith.constant 0 : i32
    %c0_i32_1 = arith.constant 0 : i32
    return %arg0, %c0_i32, %c0_i32_0 : i32, i32, i32
  }
  func.func @transform_1(%arg0: i32, %arg1: i32) -> (i32, i32, i32) {
    %c0_i32 = arith.constant 0 : i32
    %c0_i32_0 = arith.constant 0 : i32
    return %arg0, %c0_i32, %arg1 : i32, i32, i32
  }
  func.func @transform_2(%arg0: i32, %arg1: i32) -> (i32, i32, i32) {
    %c0_i32 = arith.constant 0 : i32
    %c0_i32_0 = arith.constant 0 : i32
    return %arg0, %c0_i32, %arg1 : i32, i32, i32
  }
}

module attributes {stable_mosaic.version = 11 : i64} {
  func.func @edgeconv_pool_kernel(%arg0: i32, %arg1: memref<1x32x128xf32, #tpu.memory_space<vmem>>, %arg2: memref<1x4x32xi32, #tpu.memory_space<vmem>>, %arg3: memref<128x512xbf16, #tpu.memory_space<vmem>>, %arg4: memref<1x256xf32, #tpu.memory_space<vmem>>, %arg5: memref<256x256xbf16, #tpu.memory_space<vmem>>, %arg6: memref<1x256xf32, #tpu.memory_space<vmem>>, %arg7: memref<1x1x256xf32, #tpu.memory_space<vmem>>) attributes {dimension_semantics = [#tpu.dimension_semantics<parallel>], iteration_bounds = array<i64: 2>, scalar_prefetch = 0 : i64, scratch_operands = 0 : i64, tpu.core_type = #tpu.core_type<tc>, window_params = [{transform_indices = @transform_0, window_bounds = array<i64: 1, 32, 128>}, {transform_indices = @transform_1, window_bounds = array<i64: 1, 4, 32>}, {pipeline_mode = #tpu.pipeline_mode<synchronous>, transform_indices = @transform_2, window_bounds = array<i64: 128, 512>}, {pipeline_mode = #tpu.pipeline_mode<synchronous>, transform_indices = @transform_3, window_bounds = array<i64: 1, 256>}, {pipeline_mode = #tpu.pipeline_mode<synchronous>, transform_indices = @transform_4, window_bounds = array<i64: 256, 256>}, {pipeline_mode = #tpu.pipeline_mode<synchronous>, transform_indices = @transform_5, window_bounds = array<i64: 1, 256>}, {transform_indices = @transform_6, window_bounds = array<i64: 1, 1, 256>}]} {
    %c0 = arith.constant 0 : index
    %c0_0 = arith.constant 0 : index
    %c0_1 = arith.constant 0 : index
    %0 = vector.load %arg1[%c0, %c0_0, %c0_1] : memref<1x32x128xf32, #tpu.memory_space<vmem>>, vector<1x32x128xf32>
    %1 = vector.shape_cast %0 : vector<1x32x128xf32> to vector<32x128xf32>
    %2 = arith.truncf %1 : vector<32x128xf32> to vector<32x128xbf16>
    %c0_2 = arith.constant 0 : index
    %c0_3 = arith.constant 0 : index
    %3 = vector.load %arg3[%c0_2, %c0_3] : memref<128x512xbf16, #tpu.memory_space<vmem>>, vector<128x512xbf16>
    %cst = arith.constant dense<0.000000e+00> : vector<32x512xf32>
    %4 = tpu.matmul %2, %3, %cst {dimension_numbers = #tpu.dot_dimension_numbers<[1], [0], [0], [1], [0, 0, 1, 1], [], []>} : vector<32x128xbf16>, vector<128x512xbf16>, vector<32x512xf32> -> vector<32x512xf32>
    %5 = vector.extract_strided_slice %4 {offsets = [0, 0], sizes = [32, 256], strides = [1, 1]} : vector<32x512xf32> to vector<32x256xf32>
    %c0_4 = arith.constant 0 : index
    %c0_5 = arith.constant 0 : index
    %6 = vector.load %arg4[%c0_4, %c0_5] : memref<1x256xf32, #tpu.memory_space<vmem>>, vector<1x256xf32>
    %7 = vector.broadcast %6 : vector<1x256xf32> to vector<32x256xf32>
    %8 = arith.addf %5, %7 : vector<32x256xf32>
    %9 = tpu.transpose %8, [1, 0] : vector<32x256xf32> -> vector<256x32xf32>
    %10 = vector.extract_strided_slice %4 {offsets = [0, 256], sizes = [32, 256], strides = [1, 1]} : vector<32x512xf32> to vector<32x256xf32>
    %11 = tpu.transpose %10, [1, 0] : vector<32x256xf32> -> vector<256x32xf32>
    %12 = arith.truncf %11 : vector<256x32xf32> to vector<256x32xbf16>
    %c0_6 = arith.constant 0 : index
    %c0_7 = arith.constant 0 : index
    %13 = vector.load %arg5[%c0_6, %c0_7] : memref<256x256xbf16, #tpu.memory_space<vmem>>, vector<256x256xbf16>
    %14 = tpu.iota {dimensions = array<i32: 0>} : vector<32x32xi32>
    %cst_8 = arith.constant 0xFF800000 : f32
    %15 = vector.broadcast %cst_8 : f32 to vector<256x32xf32>
    %c0_i32 = arith.constant 0 : i32
    %c4_i32 = arith.constant 4 : i32
    %16 = arith.addi %c0_i32, %c4_i32 : i32
    %c1_i32 = arith.constant 1 : i32
    %17 = scf.for %arg8 = %c0_i32 to %16 step %c1_i32 iter_args(%arg9 = %15) -> (vector<256x32xf32>)  : i32 {
      %c0_16 = arith.constant 0 : index
      %27 = arith.index_cast %arg8 : i32 to index
      %c0_17 = arith.constant 0 : index
      %28 = vector.load %arg2[%c0_16, %27, %c0_17] : memref<1x4x32xi32, #tpu.memory_space<vmem>>, vector<1x1x32xi32>
      %29 = vector.shape_cast %28 : vector<1x1x32xi32> to vector<1x32xi32>
      %30 = vector.broadcast %29 : vector<1x32xi32> to vector<32x32xi32>
      %31 = arith.cmpi eq, %14, %30 : vector<32x32xi32>
      %cst_18 = arith.constant 1.000000e+00 : f32
      %cst_19 = arith.constant 0.000000e+00 : f32
      %32 = vector.broadcast %cst_18 : f32 to vector<32x32xf32>
      %33 = vector.broadcast %cst_19 : f32 to vector<32x32xf32>
      %34 = arith.select %31, %32, %33 : vector<32x32xi1>, vector<32x32xf32>
      %35 = arith.truncf %34 : vector<32x32xf32> to vector<32x32xbf16>
      %cst_20 = arith.constant dense<0.000000e+00> : vector<256x32xf32>
      %36 = tpu.matmul %12, %35, %cst_20 {dimension_numbers = #tpu.dot_dimension_numbers<[1], [0], [0], [1], [0, 0, 1, 1], [], []>} : vector<256x32xbf16>, vector<32x32xbf16>, vector<256x32xf32> -> vector<256x32xf32>
      %37 = arith.addf %36, %9 : vector<256x32xf32>
      %cst_21 = arith.constant 0.000000e+00 : f32
      %38 = vector.broadcast %cst_21 : f32 to vector<256x32xf32>
      %39 = arith.maximumf %37, %38 : vector<256x32xf32>
      %40 = arith.truncf %39 : vector<256x32xf32> to vector<256x32xbf16>
      %cst_22 = arith.constant dense<0.000000e+00> : vector<256x32xf32>
      %41 = tpu.matmul %13, %40, %cst_22 {dimension_numbers = #tpu.dot_dimension_numbers<[1], [0], [0], [1], [0, 0, 1, 1], [], []>} : vector<256x256xbf16>, vector<256x32xbf16>, vector<256x32xf32> -> vector<256x32xf32>
      %42 = arith.maximumf %arg9, %41 : vector<256x32xf32>
      scf.yield %42 : vector<256x32xf32>
    }
    %c4_i32_9 = arith.constant 4 : i32
    %18 = tpu.transpose %17, [1, 0] : vector<256x32xf32> -> vector<32x256xf32>
    %c0_10 = arith.constant 0 : index
    %c0_11 = arith.constant 0 : index
    %19 = vector.load %arg6[%c0_10, %c0_11] : memref<1x256xf32, #tpu.memory_space<vmem>>, vector<1x256xf32>
    %20 = vector.broadcast %19 : vector<1x256xf32> to vector<32x256xf32>
    %21 = arith.addf %18, %20 : vector<32x256xf32>
    %cst_12 = arith.constant dense<0xFF800000> : vector<256xf32>
    %22 = vector.multi_reduction <maximumf>, %21, %cst_12 [0] : vector<32x256xf32> to vector<256xf32>
    %23 = vector.shape_cast %22 : vector<256xf32> to vector<1x256xf32>
    %c0_13 = arith.constant 0 : index
    %c0_14 = arith.constant 0 : index
    %c0_15 = arith.constant 0 : index
    %24 = vector.load %arg7[%c0_13, %c0_14, %c0_15] : memref<1x1x256xf32, #tpu.memory_space<vmem>>, vector<1x1x256xf32>
    %25 = vector.shape_cast %24 : vector<1x1x256xf32> to vector<1x256xf32>
    %26 = vector.shape_cast %23 : vector<1x256xf32> to vector<1x1x256xf32>
    tpu.vector_store %arg7[%c0_13, %c0_14, %c0_15], %26 {strides = array<i32>} : memref<1x1x256xf32, #tpu.memory_space<vmem>>, vector<1x1x256xf32>,
    return
  }
  func.func @transform_0(%arg0: i32) -> (i32, i32, i32) {
    %c0_i32 = arith.constant 0 : i32
    %c0_i32_0 = arith.constant 0 : i32
    %c0_i32_1 = arith.constant 0 : i32
    return %arg0, %c0_i32, %c0_i32_0 : i32, i32, i32
  }
  func.func @transform_1(%arg0: i32) -> (i32, i32, i32) {
    %c0_i32 = arith.constant 0 : i32
    %c0_i32_0 = arith.constant 0 : i32
    %c0_i32_1 = arith.constant 0 : i32
    return %arg0, %c0_i32, %c0_i32_0 : i32, i32, i32
  }
  func.func @transform_2(%arg0: i32) -> (i32, i32) {
    %c0_i32 = arith.constant 0 : i32
    %c0_i32_0 = arith.constant 0 : i32
    %c0_i32_1 = arith.constant 0 : i32
    return %c0_i32, %c0_i32_0 : i32, i32
  }
  func.func @transform_3(%arg0: i32) -> (i32, i32) {
    %c0_i32 = arith.constant 0 : i32
    %c0_i32_0 = arith.constant 0 : i32
    %c0_i32_1 = arith.constant 0 : i32
    return %c0_i32, %c0_i32_0 : i32, i32
  }
  func.func @transform_4(%arg0: i32) -> (i32, i32) {
    %c0_i32 = arith.constant 0 : i32
    %c0_i32_0 = arith.constant 0 : i32
    %c0_i32_1 = arith.constant 0 : i32
    return %c0_i32, %c0_i32_0 : i32, i32
  }
  func.func @transform_5(%arg0: i32) -> (i32, i32) {
    %c0_i32 = arith.constant 0 : i32
    %c0_i32_0 = arith.constant 0 : i32
    %c0_i32_1 = arith.constant 0 : i32
    return %c0_i32, %c0_i32_0 : i32, i32
  }
  func.func @transform_6(%arg0: i32) -> (i32, i32, i32) {
    %c0_i32 = arith.constant 0 : i32
    %c0_i32_0 = arith.constant 0 : i32
    %c0_i32_1 = arith.constant 0 : i32
    return %arg0, %c0_i32, %c0_i32_0 : i32, i32, i32
  }
}

module attributes {stable_mosaic.version = 11 : i64} {
  func.func @head_kernel(%arg0: i32, %arg1: memref<2x64xf32, #tpu.memory_space<vmem>>, %arg2: memref<2x64xf32, #tpu.memory_space<vmem>>, %arg3: memref<2x128xf32, #tpu.memory_space<vmem>>, %arg4: memref<2x256xf32, #tpu.memory_space<vmem>>, %arg5: memref<64x128xbf16, #tpu.memory_space<vmem>>, %arg6: memref<64x128xbf16, #tpu.memory_space<vmem>>, %arg7: memref<128x128xbf16, #tpu.memory_space<vmem>>, %arg8: memref<256x128xbf16, #tpu.memory_space<vmem>>, %arg9: memref<1x128xf32, #tpu.memory_space<vmem>>, %arg10: memref<1x128xf32, #tpu.memory_space<vmem>>, %arg11: memref<1x128xf32, #tpu.memory_space<vmem>>, %arg12: memref<128x40xbf16, #tpu.memory_space<vmem>>, %arg13: memref<1x40xf32, #tpu.memory_space<vmem>>, %arg14: memref<2x40xf32, #tpu.memory_space<vmem>>) attributes {dimension_semantics = [#tpu.dimension_semantics<arbitrary>], iteration_bounds = array<i64: 1>, scalar_prefetch = 0 : i64, scratch_operands = 0 : i64, tpu.core_type = #tpu.core_type<tc>, window_params = [{pipeline_mode = #tpu.pipeline_mode<synchronous>, transform_indices = @transform_0, window_bounds = array<i64: 2, 64>}, {pipeline_mode = #tpu.pipeline_mode<synchronous>, transform_indices = @transform_1, window_bounds = array<i64: 2, 64>}, {pipeline_mode = #tpu.pipeline_mode<synchronous>, transform_indices = @transform_2, window_bounds = array<i64: 2, 128>}, {pipeline_mode = #tpu.pipeline_mode<synchronous>, transform_indices = @transform_3, window_bounds = array<i64: 2, 256>}, {pipeline_mode = #tpu.pipeline_mode<synchronous>, transform_indices = @transform_4, window_bounds = array<i64: 64, 128>}, {pipeline_mode = #tpu.pipeline_mode<synchronous>, transform_indices = @transform_5, window_bounds = array<i64: 64, 128>}, {pipeline_mode = #tpu.pipeline_mode<synchronous>, transform_indices = @transform_6, window_bounds = array<i64: 128, 128>}, {pipeline_mode = #tpu.pipeline_mode<synchronous>, transform_indices = @transform_7, window_bounds = array<i64: 256, 128>}, {pipeline_mode = #tpu.pipeline_mode<synchronous>, transform_indices = @transform_8, window_bounds = array<i64: 1, 128>}, {pipeline_mode = #tpu.pipeline_mode<synchronous>, transform_indices = @transform_9, window_bounds = array<i64: 1, 128>}, {pipeline_mode = #tpu.pipeline_mode<synchronous>, transform_indices = @transform_10, window_bounds = array<i64: 1, 128>}, {pipeline_mode = #tpu.pipeline_mode<synchronous>, transform_indices = @transform_11, window_bounds = array<i64: 128, 40>}, {pipeline_mode = #tpu.pipeline_mode<synchronous>, transform_indices = @transform_12, window_bounds = array<i64: 1, 40>}, {pipeline_mode = #tpu.pipeline_mode<synchronous>, transform_indices = @transform_13, window_bounds = array<i64: 2, 40>}]} {
    %c0 = arith.constant 0 : index
    %c0_0 = arith.constant 0 : index
    %0 = vector.load %arg1[%c0, %c0_0] : memref<2x64xf32, #tpu.memory_space<vmem>>, vector<2x64xf32>
    %1 = arith.truncf %0 : vector<2x64xf32> to vector<2x64xbf16>
    %c0_1 = arith.constant 0 : index
    %c0_2 = arith.constant 0 : index
    %2 = vector.load %arg5[%c0_1, %c0_2] : memref<64x128xbf16, #tpu.memory_space<vmem>>, vector<64x128xbf16>
    %cst = arith.constant dense<0.000000e+00> : vector<2x128xf32>
    %3 = tpu.matmul %1, %2, %cst {dimension_numbers = #tpu.dot_dimension_numbers<[1], [0], [0], [1], [0, 0, 1, 1], [], []>} : vector<2x64xbf16>, vector<64x128xbf16>, vector<2x128xf32> -> vector<2x128xf32>
    %c0_3 = arith.constant 0 : index
    %c0_4 = arith.constant 0 : index
    %4 = vector.load %arg2[%c0_3, %c0_4] : memref<2x64xf32, #tpu.memory_space<vmem>>, vector<2x64xf32>
    %5 = arith.truncf %4 : vector<2x64xf32> to vector<2x64xbf16>
    %c0_5 = arith.constant 0 : index
    %c0_6 = arith.constant 0 : index
    %6 = vector.load %arg6[%c0_5, %c0_6] : memref<64x128xbf16, #tpu.memory_space<vmem>>, vector<64x128xbf16>
    %cst_7 = arith.constant dense<0.000000e+00> : vector<2x128xf32>
    %7 = tpu.matmul %5, %6, %cst_7 {dimension_numbers = #tpu.dot_dimension_numbers<[1], [0], [0], [1], [0, 0, 1, 1], [], []>} : vector<2x64xbf16>, vector<64x128xbf16>, vector<2x128xf32> -> vector<2x128xf32>
    %8 = arith.addf %3, %7 : vector<2x128xf32>
    %c0_8 = arith.constant 0 : index
    %c0_9 = arith.constant 0 : index
    %9 = vector.load %arg3[%c0_8, %c0_9] : memref<2x128xf32, #tpu.memory_space<vmem>>, vector<2x128xf32>
    %10 = arith.truncf %9 : vector<2x128xf32> to vector<2x128xbf16>
    %c0_10 = arith.constant 0 : index
    %c0_11 = arith.constant 0 : index
    %11 = vector.load %arg7[%c0_10, %c0_11] : memref<128x128xbf16, #tpu.memory_space<vmem>>, vector<128x128xbf16>
    %cst_12 = arith.constant dense<0.000000e+00> : vector<2x128xf32>
    %12 = tpu.matmul %10, %11, %cst_12 {dimension_numbers = #tpu.dot_dimension_numbers<[1], [0], [0], [1], [0, 0, 1, 1], [], []>} : vector<2x128xbf16>, vector<128x128xbf16>, vector<2x128xf32> -> vector<2x128xf32>
    %13 = arith.addf %8, %12 : vector<2x128xf32>
    %c0_13 = arith.constant 0 : index
    %c0_14 = arith.constant 0 : index
    %14 = vector.load %arg4[%c0_13, %c0_14] : memref<2x256xf32, #tpu.memory_space<vmem>>, vector<2x256xf32>
    %15 = arith.truncf %14 : vector<2x256xf32> to vector<2x256xbf16>
    %c0_15 = arith.constant 0 : index
    %c0_16 = arith.constant 0 : index
    %16 = vector.load %arg8[%c0_15, %c0_16] : memref<256x128xbf16, #tpu.memory_space<vmem>>, vector<256x128xbf16>
    %cst_17 = arith.constant dense<0.000000e+00> : vector<2x128xf32>
    %17 = tpu.matmul %15, %16, %cst_17 {dimension_numbers = #tpu.dot_dimension_numbers<[1], [0], [0], [1], [0, 0, 1, 1], [], []>} : vector<2x256xbf16>, vector<256x128xbf16>, vector<2x128xf32> -> vector<2x128xf32>
    %18 = arith.addf %13, %17 : vector<2x128xf32>
    %c0_18 = arith.constant 0 : index
    %c0_19 = arith.constant 0 : index
    %19 = vector.load %arg9[%c0_18, %c0_19] : memref<1x128xf32, #tpu.memory_space<vmem>>, vector<1x128xf32>
    %20 = vector.broadcast %19 : vector<1x128xf32> to vector<2x128xf32>
    %21 = arith.addf %18, %20 : vector<2x128xf32>
    %c0_20 = arith.constant 0 : index
    %c0_21 = arith.constant 0 : index
    %22 = vector.load %arg10[%c0_20, %c0_21] : memref<1x128xf32, #tpu.memory_space<vmem>>, vector<1x128xf32>
    %23 = vector.broadcast %22 : vector<1x128xf32> to vector<2x128xf32>
    %24 = arith.mulf %21, %23 : vector<2x128xf32>
    %c0_22 = arith.constant 0 : index
    %c0_23 = arith.constant 0 : index
    %25 = vector.load %arg11[%c0_22, %c0_23] : memref<1x128xf32, #tpu.memory_space<vmem>>, vector<1x128xf32>
    %26 = vector.broadcast %25 : vector<1x128xf32> to vector<2x128xf32>
    %27 = arith.addf %24, %26 : vector<2x128xf32>
    %cst_24 = arith.constant 0.000000e+00 : f32
    %28 = vector.broadcast %cst_24 : f32 to vector<2x128xf32>
    %29 = arith.maximumf %27, %28 : vector<2x128xf32>
    %30 = arith.truncf %29 : vector<2x128xf32> to vector<2x128xbf16>
    %c0_25 = arith.constant 0 : index
    %c0_26 = arith.constant 0 : index
    %31 = vector.load %arg12[%c0_25, %c0_26] : memref<128x40xbf16, #tpu.memory_space<vmem>>, vector<128x40xbf16>
    %cst_27 = arith.constant dense<0.000000e+00> : vector<2x40xf32>
    %32 = tpu.matmul %30, %31, %cst_27 {dimension_numbers = #tpu.dot_dimension_numbers<[1], [0], [0], [1], [0, 0, 1, 1], [], []>} : vector<2x128xbf16>, vector<128x40xbf16>, vector<2x40xf32> -> vector<2x40xf32>
    %c0_28 = arith.constant 0 : index
    %c0_29 = arith.constant 0 : index
    %33 = vector.load %arg13[%c0_28, %c0_29] : memref<1x40xf32, #tpu.memory_space<vmem>>, vector<1x40xf32>
    %34 = vector.broadcast %33 : vector<1x40xf32> to vector<2x40xf32>
    %35 = arith.addf %32, %34 : vector<2x40xf32>
    %cst_30 = arith.constant dense<0xFF800000> : vector<2xf32>
    %36 = vector.multi_reduction <maximumf>, %35, %cst_30 [1] : vector<2x40xf32> to vector<2xf32>
    %37 = vector.shape_cast %36 : vector<2xf32> to vector<2x1xf32>
    %38 = vector.broadcast %37 : vector<2x1xf32> to vector<2x40xf32>
    %39 = arith.subf %35, %38 : vector<2x40xf32>
    %40 = math.exp %39 : vector<2x40xf32>
    %cst_31 = arith.constant dense<0.000000e+00> : vector<2xf32>
    %41 = vector.multi_reduction <add>, %40, %cst_31 [1] : vector<2x40xf32> to vector<2xf32>
    %42 = vector.shape_cast %41 : vector<2xf32> to vector<2x1xf32>
    %43 = math.log %42 : vector<2x1xf32>
    %44 = arith.addf %37, %43 : vector<2x1xf32>
    %45 = vector.broadcast %44 : vector<2x1xf32> to vector<2x40xf32>
    %46 = arith.subf %35, %45 : vector<2x40xf32>
    %c0_32 = arith.constant 0 : index
    %c0_33 = arith.constant 0 : index
    %47 = vector.load %arg14[%c0_32, %c0_33] : memref<2x40xf32, #tpu.memory_space<vmem>>, vector<2x40xf32>
    tpu.vector_store %arg14[%c0_32, %c0_33], %46 {strides = array<i32>} : memref<2x40xf32, #tpu.memory_space<vmem>>, vector<2x40xf32>,
    return
  }
  func.func @transform_0(%arg0: i32) -> (i32, i32) {
    %c0_i32 = arith.constant 0 : i32
    %c0_i32_0 = arith.constant 0 : i32
    %c0_i32_1 = arith.constant 0 : i32
    return %c0_i32, %c0_i32_0 : i32, i32
  }
  func.func @transform_1(%arg0: i32) -> (i32, i32) {
    %c0_i32 = arith.constant 0 : i32
    %c0_i32_0 = arith.constant 0 : i32
    %c0_i32_1 = arith.constant 0 : i32
    return %c0_i32, %c0_i32_0 : i32, i32
  }
  func.func @transform_2(%arg0: i32) -> (i32, i32) {
    %c0_i32 = arith.constant 0 : i32
    %c0_i32_0 = arith.constant 0 : i32
    %c0_i32_1 = arith.constant 0 : i32
    return %c0_i32, %c0_i32_0 : i32, i32
  }
  func.func @transform_3(%arg0: i32) -> (i32, i32) {
    %c0_i32 = arith.constant 0 : i32
    %c0_i32_0 = arith.constant 0 : i32
    %c0_i32_1 = arith.constant 0 : i32
    return %c0_i32, %c0_i32_0 : i32, i32
  }
  func.func @transform_4(%arg0: i32) -> (i32, i32) {
    %c0_i32 = arith.constant 0 : i32
    %c0_i32_0 = arith.constant 0 : i32
    %c0_i32_1 = arith.constant 0 : i32
    return %c0_i32, %c0_i32_0 : i32, i32
  }
  func.func @transform_5(%arg0: i32) -> (i32, i32) {
    %c0_i32 = arith.constant 0 : i32
    %c0_i32_0 = arith.constant 0 : i32
    %c0_i32_1 = arith.constant 0 : i32
    return %c0_i32, %c0_i32_0 : i32, i32
  }
  func.func @transform_6(%arg0: i32) -> (i32, i32) {
    %c0_i32 = arith.constant 0 : i32
    %c0_i32_0 = arith.constant 0 : i32
    %c0_i32_1 = arith.constant 0 : i32
    return %c0_i32, %c0_i32_0 : i32, i32
  }
  func.func @transform_7(%arg0: i32) -> (i32, i32) {
    %c0_i32 = arith.constant 0 : i32
    %c0_i32_0 = arith.constant 0 : i32
    %c0_i32_1 = arith.constant 0 : i32
    return %c0_i32, %c0_i32_0 : i32, i32
  }
  func.func @transform_8(%arg0: i32) -> (i32, i32) {
    %c0_i32 = arith.constant 0 : i32
    %c0_i32_0 = arith.constant 0 : i32
    %c0_i32_1 = arith.constant 0 : i32
    return %c0_i32, %c0_i32_0 : i32, i32
  }
  func.func @transform_9(%arg0: i32) -> (i32, i32) {
    %c0_i32 = arith.constant 0 : i32
    %c0_i32_0 = arith.constant 0 : i32
    %c0_i32_1 = arith.constant 0 : i32
    return %c0_i32, %c0_i32_0 : i32, i32
  }
  func.func @transform_10(%arg0: i32) -> (i32, i32) {
    %c0_i32 = arith.constant 0 : i32
    %c0_i32_0 = arith.constant 0 : i32
    %c0_i32_1 = arith.constant 0 : i32
    return %c0_i32, %c0_i32_0 : i32, i32
  }
  func.func @transform_11(%arg0: i32) -> (i32, i32) {
    %c0_i32 = arith.constant 0 : i32
    %c0_i32_0 = arith.constant 0 : i32
    %c0_i32_1 = arith.constant 0 : i32
    return %c0_i32, %c0_i32_0 : i32, i32
  }
  func.func @transform_12(%arg0: i32) -> (i32, i32) {
    %c0_i32 = arith.constant 0 : i32
    %c0_i32_0 = arith.constant 0 : i32
    %c0_i32_1 = arith.constant 0 : i32
    return %c0_i32, %c0_i32_0 : i32, i32
  }
  func.func @transform_13(%arg0: i32) -> (i32, i32) {
    %c0_i32 = arith.constant 0 : i32
    %c0_i32_0 = arith.constant 0 : i32
    %c0_i32_1 = arith.constant 0 : i32
    return %c0_i32, %c0_i32_0 : i32, i32
  }
}

</mosaic_0001>

<bundles_post_ra>
// kernel: dgcnn_forward.9
= control target key start
LH: loop header
LB: loop body
LE: loop exit
PB: predicated region body
PF: predicated region fallthrough
CT: control target
= control target key end

     0   :  { %s543_s9 = smov 0   ;;  %s545_s10 = smov 0   ;;  %s613_s0 = inlined_call_operand.vmem [shape: f32[2,32,3], index: 0, kind: input, shape index: {}]   ;;  %s614_s1 = inlined_call_operand.vmem [shape: f32[2,1,32], index: 1, kind: input, shape index: {}]   ;;  %s615_s2 = inlined_call_operand.vmem [shape: f32[2,32,32], index: 2, kind: output, shape index: {}]  }
   0x1   :  { %s547_s11 = smov 0  }
   0x2 LB: > { %s24_s12 = sadd.s32 1, %s522_s10  ;;  %p424_p0 = scmp.ge.s32.totalorder %s526_s11, 1  ;;  %s526_s11 = sphi %s547_s11, %s12_s11   ;;  %s522_s10 = sphi %s545_s10, %s619_s10   ;;  %s518_s9 = sphi %s543_s9, %s618_s9  }
   0x3   : > { %p26_p1 = scmp.ge.s32.totalorder %s24_s12, 2  ;;  %p139_p2 = scmp.lt.s32.totalorder %s526_s11, 3 }
   0x5   : > { %s621_s12 = smov (%p26_p1, %s24_s12), 0  ;;  %p140_p3 = pnand %p424_p0, %p139_p2 }
   0x6   : > { %p170_p4 = scmp.lt.s32.totalorder (!%p140_p3), %s518_s9, 1  ;;  %vm199_vm0 = vcmask (!%p140_p3), 23552   ;;  %vm324_vm2 = vcmask (!%p140_p3), 261120  }
   0x7   : > { %143 = sbr.rel (%p140_p3) target bundleno = 254 (0xfe), region = 28  ;;  %vm571_vm1 = vmpackc.low (!%p140_p3), %vm199_vm0, %vm199_vm0 }
   0xe   : > { %s623_s9 = smov (!%p170_p4, %s518_s9), 1 }
   0xf   : > { %s440_s13 = sshll.u32 %s623_s9, 5  ;;  %s180_s19 = scalar_lea.vmem %s614_s1, %s623_s9 }
  0x10   : > { %s174_s16 = scalar_lea.vmem %s613_s0, %s440_s13  ;;  %v437_v8 = vld [vmem:[%s180_s19] ss:$0 sm:$0xff]  ;;  %s188_s22 = scalar_lea.vmem %s615_s2, %s440_s13 }
  0x11   : > { %v195_v1 = vld [vmem:[%s174_s16] sm:$0xff]  ;;  %v196_v2 = vld [vmem:[%s174_s16 + $0x8] sm:$0xff]  ;;  %v197_v3 = vld [vmem:[%s174_s16 + $0x10] sm:$0xff] }
  0x12   : > { %v464_v4 = vpack.c.bf16 %v196_v2, %v195_v1  ;;  %v198_v5 = vld [vmem:[%s174_s16 + $0x18] sm:$0xff]  ;;  %458 = vmatprep.mubr.msk.f32.mxu0 %vm199_vm0, %v195_v1  ;;  %461 = vmatprep.mubr.msk.f32.mxu1 %vm199_vm0, %v197_v3 }
  0x13   : > { %v470_v6 = vpack.c.bf16 %v198_v5, %v197_v3 }
  0x14   : > { %466 = vmatprep.subr.msk.bf16.mxu0 %vm571_vm1, %v464_v4  ;;  %476 = vmatprep.subr.msk.bf16.mxu1 %vm571_vm1, %v464_v4 }
  0x15   : > { %469 = vmatpush3.bf16.xpose.msk.msra.mxu0 %vm571_vm1, %v464_v4  ;;  %478 = vmatpush3.bf16.xpose.msk.msra.mxu1 %vm571_vm1, %v464_v4 }
  0x16   : > { %472 = vmatprep.subr.msk.bf16.mxu0 %vm571_vm1, %v470_v6  ;;  %477 = vmatprep.subr.msk.bf16.mxu1 %vm571_vm1, %v470_v6 }
  0x1d   : > { %475 = vmatpush3.bf16.xpose.msk.msra.mxu0 %vm571_vm1, %v470_v6  ;;  %479 = vmatpush3.bf16.xpose.msk.msra.mxu1 %vm571_vm1, %v470_v6 }
  0x24   : > { %459 = vmatmul.mubr.msk.f32.vlgmr.msra.gmra.mrb[0].mxu0 %vm199_vm0, %v196_v2  ;;  %462 = vmatmul.mubr.msk.f32.vlgmr.msra.gmra.mrb[0].mxu1 %vm199_vm0, %v198_v5 }
  0xf7   : > { %v460_v7 = vpop.f32.mrb[0].mxu0  ;;  %v463_v9 = vpop.f32.mrb[0].mxu1 }
  0xf8   : > { %v310_v10 = vmul.f32 2.0, %v460_v7  ;;  %v312_v11 = vmul.f32 2.0, %v463_v9  ;;  %v290_v12 = vpop.f32.mrb[1].mxu0  ;;  %v300_v13 = vpop.f32.mrb[1].mxu1 }
  0xf9   : > { %v309_v14 = vmul.f32 2.0, %v290_v12  ;;  %v311_v15 = vmul.f32 2.0, %v300_v13 }
  0xfa   : > { %v321_v16 = vsub.f32 %v310_v10, %v437_v8  ;;  %v323_v17 = vsub.f32 %v312_v11, %v437_v8 }
  0xfb   : > { %v320_v18 = vsub.f32 %v309_v14, %v437_v8  ;;  %v322_v19 = vsub.f32 %v311_v15, %v437_v8 }
  0xfc   : > { %326 = vst.msk [vmem:[%s188_s22 + $0x8] sm:$0xff] %vm324_vm2, %v321_v16  ;;  %328 = vst.msk [vmem:[%s188_s22 + $0x18] sm:$0xff] %vm324_vm2, %v323_v17 }
  0xfd   : > { %325 = vst.msk [vmem:[%s188_s22] sm:$0xff] %vm324_vm2, %v320_v18  ;;  %327 = vst.msk [vmem:[%s188_s22 + $0x10] sm:$0xff] %vm324_vm2, %v322_v19 }
  0xfe PF: > { %s12_s11 = sadd.s32 1, %s526_s11   ;;  %s618_s9 = smov %s522_s10 }
  0xff   : > { %p9_p5 = scmp.ge.s32.totalorder %s12_s11, 4   ;;  %s619_s10 = smov %s621_s12 }
 0x101   :  { %11 = sbr.rel (!%p9_p5) target bundleno = 2 (0x2), region = 62 }

// kernel: dgcnn_forward.11
= control target key start
LH: loop header
LB: loop body
LE: loop exit
PB: predicated region body
PF: predicated region fallthrough
CT: control target
= control target key end

     0   :  { %s543_s9 = smov 0   ;;  %s545_s10 = smov 0   ;;  %s613_s0 = inlined_call_operand.vmem [shape: f32[2,32,64], index: 0, kind: input, shape index: {}]   ;;  %s614_s1 = inlined_call_operand.vmem [shape: f32[2,1,32], index: 1, kind: input, shape index: {}]   ;;  %s615_s2 = inlined_call_operand.vmem [shape: f32[2,32,32], index: 2, kind: output, shape index: {}]  }
   0x1   :  { %s547_s11 = smov 0  }
   0x2 LB: > { %s24_s12 = sadd.s32 1, %s522_s10  ;;  %p424_p0 = scmp.ge.s32.totalorder %s526_s11, 1  ;;  %s526_s11 = sphi %s547_s11, %s12_s11   ;;  %s522_s10 = sphi %s545_s10, %s619_s10   ;;  %s518_s9 = sphi %s543_s9, %s618_s9  }
   0x3   : > { %p26_p1 = scmp.ge.s32.totalorder %s24_s12, 2  ;;  %p139_p2 = scmp.lt.s32.totalorder %s526_s11, 3 }
   0x5   : > { %s621_s12 = smov (%p26_p1, %s24_s12), 0  ;;  %p140_p3 = pnand %p424_p0, %p139_p2 }
   0x6   : > { %p170_p4 = scmp.lt.s32.totalorder (!%p140_p3), %s518_s9, 1  ;;  %vm199_vm0 = vcmask (!%p140_p3), 523264   ;;  %vm324_vm2 = vcmask (!%p140_p3), 261120  }
   0x7   : > { %143 = sbr.rel (%p140_p3) target bundleno = 254 (0xfe), region = 28  ;;  %vm571_vm1 = vmpackc.low (!%p140_p3), %vm199_vm0, %vm199_vm0 }
   0xe   : > { %s623_s9 = smov (!%p170_p4, %s518_s9), 1 }
   0xf   : > { %s440_s13 = sshll.u32 %s623_s9, 5  ;;  %s180_s19 = scalar_lea.vmem %s614_s1, %s623_s9 }
  0x10   : > { %s174_s16 = scalar_lea.vmem %s613_s0, %s440_s13  ;;  %v437_v8 = vld [vmem:[%s180_s19] ss:$0 sm:$0xff]  ;;  %s188_s22 = scalar_lea.vmem %s615_s2, %s440_s13 }
  0x11   : > { %v195_v1 = vld [vmem:[%s174_s16] sm:$0xff]  ;;  %v196_v2 = vld [vmem:[%s174_s16 + $0x8] sm:$0xff]  ;;  %v197_v3 = vld [vmem:[%s174_s16 + $0x10] sm:$0xff] }
  0x12   : > { %v464_v4 = vpack.c.bf16 %v196_v2, %v195_v1  ;;  %v198_v5 = vld [vmem:[%s174_s16 + $0x18] sm:$0xff]  ;;  %458 = vmatprep.mubr.msk.f32.mxu0 %vm199_vm0, %v195_v1  ;;  %461 = vmatprep.mubr.msk.f32.mxu1 %vm199_vm0, %v197_v3 }
  0x13   : > { %v470_v6 = vpack.c.bf16 %v198_v5, %v197_v3 }
  0x14   : > { %466 = vmatprep.subr.msk.bf16.mxu0 %vm571_vm1, %v464_v4  ;;  %476 = vmatprep.subr.msk.bf16.mxu1 %vm571_vm1, %v464_v4 }
  0x15   : > { %469 = vmatpush3.bf16.xpose.msk.msra.mxu0 %vm571_vm1, %v464_v4  ;;  %478 = vmatpush3.bf16.xpose.msk.msra.mxu1 %vm571_vm1, %v464_v4 }
  0x16   : > { %472 = vmatprep.subr.msk.bf16.mxu0 %vm571_vm1, %v470_v6  ;;  %477 = vmatprep.subr.msk.bf16.mxu1 %vm571_vm1, %v470_v6 }
  0x1d   : > { %475 = vmatpush3.bf16.xpose.msk.msra.mxu0 %vm571_vm1, %v470_v6  ;;  %479 = vmatpush3.bf16.xpose.msk.msra.mxu1 %vm571_vm1, %v470_v6 }
  0x24   : > { %459 = vmatmul.mubr.msk.f32.vlgmr.msra.gmra.mrb[0].mxu0 %vm199_vm0, %v196_v2  ;;  %462 = vmatmul.mubr.msk.f32.vlgmr.msra.gmra.mrb[0].mxu1 %vm199_vm0, %v198_v5 }
  0xf7   : > { %v460_v7 = vpop.f32.mrb[0].mxu0  ;;  %v463_v9 = vpop.f32.mrb[0].mxu1 }
  0xf8   : > { %v310_v10 = vmul.f32 2.0, %v460_v7  ;;  %v312_v11 = vmul.f32 2.0, %v463_v9  ;;  %v290_v12 = vpop.f32.mrb[1].mxu0  ;;  %v300_v13 = vpop.f32.mrb[1].mxu1 }
  0xf9   : > { %v309_v14 = vmul.f32 2.0, %v290_v12  ;;  %v311_v15 = vmul.f32 2.0, %v300_v13 }
  0xfa   : > { %v321_v16 = vsub.f32 %v310_v10, %v437_v8  ;;  %v323_v17 = vsub.f32 %v312_v11, %v437_v8 }
  0xfb   : > { %v320_v18 = vsub.f32 %v309_v14, %v437_v8  ;;  %v322_v19 = vsub.f32 %v311_v15, %v437_v8 }
  0xfc   : > { %326 = vst.msk [vmem:[%s188_s22 + $0x8] sm:$0xff] %vm324_vm2, %v321_v16  ;;  %328 = vst.msk [vmem:[%s188_s22 + $0x18] sm:$0xff] %vm324_vm2, %v323_v17 }
  0xfd   : > { %325 = vst.msk [vmem:[%s188_s22] sm:$0xff] %vm324_vm2, %v320_v18  ;;  %327 = vst.msk [vmem:[%s188_s22 + $0x10] sm:$0xff] %vm324_vm2, %v322_v19 }
  0xfe PF: > { %s12_s11 = sadd.s32 1, %s526_s11   ;;  %s618_s9 = smov %s522_s10 }
  0xff   : > { %p9_p5 = scmp.ge.s32.totalorder %s12_s11, 4   ;;  %s619_s10 = smov %s621_s12 }
 0x101   :  { %11 = sbr.rel (!%p9_p5) target bundleno = 2 (0x2), region = 62 }

// kernel: dgcnn_forward.10
= control target key start
LH: loop header
LB: loop body
LE: loop exit
PB: predicated region body
PF: predicated region fallthrough
CT: control target
= control target key end

     0   :  { %s1188_s24 = smov 0   ;;  %s1451_s0 = inlined_call_operand.vmem [shape: f32[2,32,3], index: 0, kind: input, shape index: {}]   ;;  %s1452_s1 = inlined_call_operand.vmem [shape: s32[2,4,32], index: 1, kind: input, shape index: {}]   ;;  %s1453_s2 = inlined_call_operand.vmem [shape: bf16[3,128], index: 2, kind: input, shape index: {}]   ;;  %s1454_s3 = inlined_call_operand.vmem [shape: f32[1,64], index: 3, kind: input, shape index: {}]   ;;  %s1455_s4 = inlined_call_operand.vmem [shape: bf16[64,64], index: 4, kind: input, shape index: {}]   ;;  %s1456_s5 = inlined_call_operand.vmem [shape: f32[1,64], index: 5, kind: input, shape index: {}]   ;;  %s1457_s6 = inlined_call_operand.vmem [shape: f32[2,32,64], index: 6, kind: output, shape index: {0}]   ;;  %s1458_s7 = inlined_call_operand.vmem [shape: f32[2,1,64], index: 7, kind: output, shape index: {1}]  }
   0x1 LB: > { %s895_s25 = sadd.s32 4294967295, %s1107_s24   ;;  %p899_p0 = scmp.ge.s32.totalorder %s1107_s24, 1  ;;  %s1107_s24 = sphi %s1188_s24, %s18_s24  }
   0x2   : > { %p249_p1 = scmp.lt.s32.totalorder %s1107_s24, 3 }
   0x4   : > { %p250_p2 = pnand %p899_p0, %p249_p1 }
   0x5   : > { %v312_v0 = vld [vmem:[%s1453_s2] sm:$0x3] (!%p250_p2)  ;;  %vm320_vm0 = vcmask (!%p250_p2), 1040384   ;;  %vm321_vm1 = vcmask (!%p250_p2), 1041408   ;;  %p288_p3 = scmp.lt.s32.totalorder (!%p250_p2), %s895_s25, 1  ;;  %v1145_v1 = vmov (!%p250_p2), 65535   ;;  %v479_v24 = vlaneseq (!%p250_p2) }
   0x6   : > { %253 = sbr.rel (%p250_p2) target bundleno = 1131 (0x46b), region = 44  ;;  %v322_v2 = vsel (!%p250_p2), %vm320_vm0, 4294967295, %v1145_v1  ;;  %vm313_vm2 = vcmask (!%p250_p2), 23552   ;;  %s1146_s19 = smov (!%p250_p2), 64   ;;  %v907_v15 = vld [vmem:[%s1454_s3] ss:$0 sm:$0xff] (!%p250_p2) }
   0x7   : > { %v323_v3 = vsel (!%p250_p2), %vm321_vm1, %v322_v2, 0  ;;  %v1223_v25 = vshrl.u32 (!%p250_p2), %v479_v24, 7  ;;  %v1228_v26 = vld [vmem:[%s1455_s4] sm:$0xf] (!%p250_p2)  ;;  %v1233_v27 = vld [vmem:[%s1455_s4 + $0x4] sm:$0xf] (!%p250_p2) }
   0x8   : > { %v325_v4 = vand.u32 (!%p250_p2), %v323_v3, %v312_v0  ;;  %v1241_v29 = vld [vmem:[%s1455_s4 + $0x8] sm:$0xf] (!%p250_p2)  ;;  %v1246_v30 = vld [vmem:[%s1455_s4 + $0xc] sm:$0xf] (!%p250_p2)  ;;  %v1251_v31 = vld [vmem:[%s1455_s4 + $0x10] sm:$0xf] (!%p250_p2) }
   0x9   : > { %v1236_v28 = vadd.s32 (!%p250_p2), 8, %v1223_v25  ;;  %v1256_v32 = vld [vmem:[%s1455_s4 + $0x14] sm:$0xf] (!%p250_p2)  ;;  %v1261_v33 = vld [vmem:[%s1455_s4 + $0x18] sm:$0xf] (!%p250_p2)  ;;  %v1269_v35 = vadd.s32 (!%p250_p2), 16, %v1223_v25 }
   0xa   : > { %947 = vmatprep.subr.bf16.mxu0 (!%p250_p2), %v325_v4  ;;  %v1266_v34 = vld [vmem:[%s1455_s4 + $0x1c] sm:$0xf] (!%p250_p2)  ;;  %v1272_v36 = vadd.s32 (!%p250_p2), 24, %v1223_v25  ;;  %v1314_v57 = vmov (!%p250_p2), -inf   ;;  %v1316_v58 = vmov (!%p250_p2), -inf   ;;  %v1318_v59 = vmov (!%p250_p2), -inf  }
   0xb   : > { %948 = vmatpush3.bf16.msra.mxu0 (!%p250_p2), %v325_v4  ;;  %v1320_v60 = vmov (!%p250_p2), -inf   ;;  %v1322_v61 = vmov (!%p250_p2), -inf   ;;  %v1324_v62 = vmov (!%p250_p2), -inf   ;;  %v1326_v63 = vmov (!%p250_p2), -inf   ;;  %s1330_s20 = smov (!%p250_p2), 0  }
   0xc   : > { %v1328_v0 = vmov (!%p250_p2), -inf  }
   0xd   : > { %s1468_s25 = smov (!%p288_p3, %s895_s25), 1 }
   0xe   : > { %s928_s28 = sshll.u32 %s1468_s25, 5  ;;  %s902_s29 = sshll.u32 %s1468_s25, 2 }
   0xf   : > { %s292_s9 = scalar_lea.vmem %s1451_s0, %s928_s28  ;;  %s1209_s12 = scalar_lea.vmem %s1452_s1, %s902_s29 }
  0x10   : > { %s1214_s15 = scalar_lea.vmem %s1457_s6, %s928_s28  ;;  %s304_s18 = scalar_lea.vmem %s1458_s7, %s1468_s25  ;;  %v306_v5 = vld [vmem:[%s292_s9] sm:$0xff]  ;;  %v307_v6 = vld [vmem:[%s292_s9 + $0x8] sm:$0xff]  ;;  %v308_v7 = vld [vmem:[%s292_s9 + $0x10] sm:$0xff] }
  0x11   : > { %v310_v8 = vpack.c.bf16 %v307_v6, %v306_v5  ;;  %v309_v9 = vld [vmem:[%s292_s9 + $0x18] sm:$0xff] }
  0x12   : > { %v311_v10 = vpack.c.bf16 %v309_v9, %v308_v7 }
  0x13   : > { %949 = vmatprep.mubr.msk.bf16.mxu0 %vm313_vm2, %v310_v8 }
  0x14   : > { %950 = vmatmul.mubr.msk.bf16.vlgmr.msra.gmra.mrb[0].mxu0 %vm313_vm2, %v311_v10 }
  0xe7   : > { %v951_v11 = vpop.f32.mrb[0].mxu0 }
  0xe8   : > { %427 = vrot.lane.b32.xlu1 %v951_v11, %s1146_s19  ;;  %v361_v12 = vpop.f32.mrb[1].mxu0  ;;  %v385_v18 = vadd.f32 %v951_v11, %v907_v15 }
  0xe9   : > { %423 = vrot.lane.b32.xlu0 %v361_v12, %s1146_s19  ;;  %v952_v13 = vpop.f32.mrb[2].mxu0  ;;  %v383_v16 = vadd.f32 %v907_v15, %v361_v12 }
  0xea   : > { %v364_v14 = vpop.f32.mrb[3].mxu0  ;;  %v386_v19 = vadd.f32 %v952_v13, %v907_v15 }
  0xeb   : > { %v384_v17 = vadd.f32 %v907_v15, %v364_v14 }
  0xec   : > { %429 = vrot.lane.b32.xlu1 %v952_v13, %s1146_s19 }
  0xed   : > { %425 = vrot.lane.b32.xlu0 %v364_v14, %s1146_s19 }
 0x10b   : > { %387 = vxpose.xlu0.b32.start [1/4] (short) (narrow) %v383_v16, 64 }
 0x10f   : > { %388 = vxpose.xlu0.b32.cont [2/4] (short) (narrow) %v384_v17, 64 }
 0x113   : > { %389 = vxpose.xlu0.b32.cont [3/4] (short) (narrow) %v385_v18, 64 }
 0x117   : > { %390 = vxpose.xlu0.b32.end [4/4] (short) (narrow) %v386_v19, 64 }
 0x15a   : > { %v428_v22 = vpop.permute.xlu1 %427 }
 0x15b   : > { %v424_v20 = vpop.permute.xlu0 %423 }
 0x15c   : > { %435 = vxpose.xlu1.b32.start [1/4] (short) (narrow) %v424_v20, 64 }
 0x15e   : > { %v430_v23 = vpop.permute.xlu1 %429 }
 0x15f   : > { %v426_v21 = vpop.permute.xlu0 %425 }
 0x160   : > { %436 = vxpose.xlu1.b32.cont [2/4] (short) (narrow) %v426_v21, 64 }
 0x164   : > { %437 = vxpose.xlu1.b32.cont [3/4] (short) (narrow) %v428_v22, 64 }
 0x168   : > { %438 = vxpose.xlu1.b32.end [4/4] (short) (narrow) %v430_v23, 64 }
 0x18b   : > { %v1274_v37 = vpop.trf.xlu0 }
 0x18f   : > { %v1276_v38 = vpop.trf.xlu0 }
 0x193   : > { %v1278_v39 = vpop.trf.xlu0 }
 0x197   : > { %v1280_v40 = vpop.trf.xlu0 }
 0x19b   : > { %v1282_v41 = vpop.trf.xlu0 }
 0x19f   : > { %v1284_v42 = vpop.trf.xlu0 }
 0x1a3   : > { %v1286_v43 = vpop.trf.xlu0 }
 0x1a7   : > { %v1288_v44 = vpop.trf.xlu0 }
 0x1dc   : > { %v1290_v45 = vpop.trf.xlu1 }
 0x1e0   : > { %v1292_v46 = vpop.trf.xlu1 }
 0x1e1   : > { %v467_v47 = vpack.c.bf16 %v1292_v46, %v1290_v45 }
 0x1e4   : > { %v1296_v48 = vpop.trf.xlu1 }
 0x1e8   : > { %v1298_v49 = vpop.trf.xlu1 }
 0x1e9   : > { %v468_v50 = vpack.c.bf16 %v1298_v49, %v1296_v48 }
 0x1ec   : > { %v1302_v51 = vpop.trf.xlu1 }
 0x1f0   : > { %v1304_v52 = vpop.trf.xlu1 }
 0x1f1   : > { %v469_v53 = vpack.c.bf16 %v1304_v52, %v1302_v51 }
 0x1f4   : > { %v1308_v54 = vpop.trf.xlu1 }
 0x1f8   : > { %v1310_v55 = vpop.trf.xlu1 }
 0x1f9   : > { %v470_v56 = vpack.c.bf16 %v1310_v55, %v1308_v54 }
 0x1fa LB: >> { %vm514_vm3 = vcmask 261120   ;;  %s498_s21 = scalar_lea.vmem %s1209_s12, %s1143_s20  ;;  %v1147_v2 = vmov 1.0|1.0   ;;  %v917_v3 = vcombine.low %v1228_v26, %v1233_v27  ;;  %vm624_vm10 = vcmask 523264   ;;  %s489_s20 = sadd.s32 1, %s1143_s20   ;;  %s1143_s20 = sphi %s1330_s20, %s489_s20   ;;  %v1139_v0 = vphi %v1328_v0, %v1466_v0   ;;  %v1135_v63 = vphi %v1326_v63, %v1465_v63   ;;  %v1131_v62 = vphi %v1324_v62, %v1464_v62   ;;  %v1127_v61 = vphi %v1322_v61, %v1463_v61   ;;  %v1123_v60 = vphi %v1320_v60, %v1462_v60   ;;  %v1119_v59 = vphi %v1318_v59, %v1461_v59   ;;  %v1115_v58 = vphi %v1316_v58, %v1460_v58   ;;  %v1111_v57 = vphi %v1314_v57, %v1459_v57  }
 0x1fb   : >> { %957 = vmatprep.mubr.msk.bf16.mxu0 %vm514_vm3, %v467_v47  ;;  %v908_v1 = vld [vmem:[%s498_s21] ss:$0 sm:$0xff]  ;;  %p486_p4 = scmp.ge.s32.totalorder %s489_s20, 4  }
 0x1fc   : >> { %vm504_vm4 = vcmp.eq.s32.totalorder %v1223_v25, %v908_v1  ;;  %vm505_vm5 = vcmp.eq.s32.totalorder %v1236_v28, %v908_v1  ;;  %vm506_vm6 = vcmp.eq.s32.totalorder %v1269_v35, %v908_v1  ;;  %vm507_vm7 = vcmp.eq.s32.totalorder %v1272_v36, %v908_v1  ;;  %973 = vmatprep.mubr.msk.bf16.mxu1 %vm624_vm10, %v917_v3 }
 0x1fd   : >> { %vm909_vm8 = vmpackc.low %vm505_vm5, %vm504_vm4  ;;  %vm771_vm11 = vcmask (%p486_p4), 516096  }
 0x1fe   : >> { %953 = vmatprep.subr.msk.bf16.mxu0 %vm909_vm8, %v1147_v2  ;;  %vm911_vm9 = vmpackc.low %vm507_vm7, %vm506_vm6 }
 0x1ff   : >> { %954 = vmatpush3.bf16.msk.msra.mxu0 %vm909_vm8, %v1147_v2 }
 0x200   : >> { %955 = vmatprep.subr.msk.bf16.mxu0 %vm911_vm9, %v1147_v2 }
 0x203   : >> { %956 = vmatpush3.bf16.msk.msra.mxu0 %vm911_vm9, %v1147_v2 }
 0x206   : >> { %958 = vmatmul.mubr.msk.bf16.vlgmr.msra.gmra.mrb[0].mxu0 %vm514_vm3, %v468_v50 }
 0x207   : >> { %961 = vmatprep.mubr.msk.bf16.mxu0 %vm514_vm3, %v469_v53 }
 0x20e   : >> { %962 = vmatmul.mubr.msk.bf16.gmra.mrb[4].mxu0 %vm514_vm3, %v470_v56 }
 0x2d9   : >> { %v959_v4 = vpop.f32.mrb[0].mxu0 }
 0x2da   : >> { %v570_v5 = vadd.f32 %v959_v4, %v1278_v39  ;;  %v561_v6 = vpop.f32.mrb[1].mxu0 }
 0x2db   : >> { %v562_v7 = vadd.f32 %v561_v6, %v1274_v37  ;;  %v960_v8 = vpop.f32.mrb[2].mxu0 }
 0x2dc   : >> { %v573_v9 = vadd.f32 %v960_v8, %v1280_v40  ;;  %v564_v10 = vpop.f32.mrb[3].mxu0  ;;  %v594_v12 = vmax.f32 %v570_v5, 0.0  ;;  %v918_v8 = vcombine.low %v1241_v29, %v1246_v30 }
 0x2dd   : >> { %v565_v11 = vadd.f32 %v564_v10, %v1276_v38  ;;  %v592_v14 = vmax.f32 %v562_v7, 0.0  ;;  %v920_v10 = vcombine.low %v1261_v33, %v1266_v34 }
 0x2de   : >> { %v595_v13 = vmax.f32 %v573_v9, 0.0  ;;  %v919_v9 = vcombine.low %v1251_v31, %v1256_v32 }
 0x2df   : >> { %v593_v15 = vmax.f32 %v565_v11, 0.0 }
 0x2e0   : >> { %v601_v16 = vpack.c.bf16 %v595_v13, %v594_v12 }
 0x2e1   : >> { %v963_v17 = vpop.f32.mrb[4].mxu0  ;;  %v600_v18 = vpack.c.bf16 %v593_v15, %v592_v14 }
 0x2e2   : >> { %v586_v19 = vadd.f32 %v963_v17, %v1286_v43  ;;  %v577_v20 = vpop.f32.mrb[5].mxu0 }
 0x2e3   : >> { %v578_v21 = vadd.f32 %v577_v20, %v1282_v41  ;;  %v964_v22 = vpop.f32.mrb[6].mxu0  ;;  %965 = vmatprep.subr.bf16.mxu1 %v600_v18 }
 0x2e4   : >> { %v589_v23 = vadd.f32 %v964_v22, %v1288_v44  ;;  %v580_v24 = vpop.f32.mrb[7].mxu0  ;;  %966 = vmatpush3.bf16.msra.mxu1 %v600_v18  ;;  %v598_v2 = vmax.f32 %v586_v19, 0.0 }
 0x2e5   : >> { %v581_v1 = vadd.f32 %v580_v24, %v1284_v42  ;;  %967 = vmatprep.subr.bf16.mxu1 %v601_v16  ;;  %v596_v4 = vmax.f32 %v578_v21, 0.0 }
 0x2e6   : >> { %v599_v3 = vmax.f32 %v589_v23, 0.0 }
 0x2e7   : >> { %v597_v5 = vmax.f32 %v581_v1, 0.0 }
 0x2e8   : >> { %v603_v6 = vpack.c.bf16 %v599_v3, %v598_v2  ;;  %968 = vmatpush3.bf16.msra.mxu1 %v601_v16 }
 0x2e9   : >> { %v602_v7 = vpack.c.bf16 %v597_v5, %v596_v4 }
 0x2eb   : >> { %969 = vmatprep.subr.bf16.mxu1 %v602_v7 }
 0x2ec   : >> { %970 = vmatpush3.bf16.msra.mxu1 %v602_v7 }
 0x2ed   : >> { %971 = vmatprep.subr.bf16.mxu1 %v603_v6 }
 0x2f0   : >> { %972 = vmatpush3.bf16.msra.mxu1 %v603_v6 }
 0x2f3   : >> { %974 = vmatmul.mubr.msk.bf16.vlgmr.msra.gmra.mrb[0].mxu1 %vm624_vm10, %v918_v8 }
 0x2f4   : >> { %977 = vmatprep.mubr.msk.bf16.mxu1 %vm624_vm10, %v919_v9 }
 0x2fb   : >> { %978 = vmatmul.mubr.msk.bf16.gmra.mrb[4].mxu1 %vm624_vm10, %v920_v10 }
 0x3c6   : >> { %v975_v11 = vpop.f32.mrb[0].mxu1 }
 0x3c7   : >> { %v704_v12 = vmax.f32 %v1131_v62, %v975_v11   ;;  %v671_v13 = vpop.f32.mrb[1].mxu1 }
 0x3c8   : >> { %v702_v14 = vmax.f32 %v1139_v0, %v671_v13   ;;  %v976_v15 = vpop.f32.mrb[2].mxu1 }
 0x3c9   : >> { %v705_v16 = vmax.f32 %v1127_v61, %v976_v15   ;;  %v674_v17 = vpop.f32.mrb[3].mxu1  ;;  %v1464_v62 = vmov %v704_v12 }
 0x3ca   : >> { %v703_v18 = vmax.f32 %v1135_v63, %v674_v17   ;;  %v1466_v0 = vmov %v702_v14  ;;  %710 = vxpose.xlu0.b32.start [1/8] (short) (narrow) (%p486_p4), %v702_v14, 32 }
 0x3cb   : >> { %v1463_v61 = vmov %v705_v16  ;;  %v925_v0 = vld [vmem:[%s1456_s5] ss:$0 sm:$0xff] (%p486_p4) }
 0x3cc   : >> { %v1465_v63 = vmov %v703_v18 }
 0x3ce   : >> { %v979_v19 = vpop.f32.mrb[4].mxu1  ;;  %488 = sbr.rel (!%p486_p4) target bundleno = 506 (0x1fa), region = 97  ;;  %711 = vxpose.xlu0.b32.cont [2/8] (short) (narrow) (%p486_p4), %v703_v18, 32 }
 0x3cf   : >> { %v708_v20 = vmax.f32 %v1115_v58, %v979_v19   ;;  %v687_v21 = vpop.f32.mrb[5].mxu1 }
 0x3d0   : >> { %v706_v22 = vmax.f32 %v1123_v60, %v687_v21   ;;  %v980_v23 = vpop.f32.mrb[6].mxu1 }
 0x3d1   : >> { %v709_v24 = vmax.f32 %v1111_v57, %v980_v23   ;;  %v690_v1 = vpop.f32.mrb[7].mxu1  ;;  %v1460_v58 = vmov %v708_v20 }
 0x3d2   : >> { %v707_v2 = vmax.f32 %v1119_v59, %v690_v1   ;;  %v1462_v60 = vmov %v706_v22  ;;  %712 = vxpose.xlu0.b32.cont [3/8] (short) (narrow) (%p486_p4), %v704_v12, 32 }
 0x3d3   : >> { %v1459_v57 = vmov %v709_v24 }
 0x3d4   : >> { %v1461_v59 = vmov %v707_v2 }
 0x3d6   : > { %713 = vxpose.xlu0.b32.cont [4/8] (short) (narrow) %v705_v16, 32 }
 0x3da   : > { %714 = vxpose.xlu0.b32.cont [5/8] (short) (narrow) %v706_v22, 32 }
 0x3de   : > { %715 = vxpose.xlu0.b32.cont [6/8] (short) (narrow) %v707_v2, 32 }
 0x3e2   : > { %716 = vxpose.xlu0.b32.cont [7/8] (short) (narrow) %v708_v20, 32 }
 0x3e6   : > { %717 = vxpose.xlu0.b32.end [8/8] (short) (narrow) %v709_v24, 32 }
 0x44a   : > { %v726_v3 = vpop.trf.xlu0 }
 0x44b   : > { %v749_v4 = vadd.f32 %v925_v0, %v726_v3 }
 0x44d   : > { %754 = vst.msk [vmem:[%s1214_s15] sm:$0xff] %vm624_vm10, %v749_v4  ;;  %v758_v32 = vsel %vm624_vm10, %v749_v4, -inf }
 0x44e   : > { %v727_v25 = vpop.trf.xlu0 }
 0x44f   : > { %v750_v26 = vadd.f32 %v925_v0, %v727_v25 }
 0x451   : > { %755 = vst.msk [vmem:[%s1214_s15 + $0x8] sm:$0xff] %vm624_vm10, %v750_v26  ;;  %v759_v30 = vsel %vm624_vm10, %v750_v26, -inf }
 0x452   : > { %v728_v27 = vpop.trf.xlu0  ;;  %v762_v35 = vmax.f32 %v758_v32, %v759_v30 }
 0x453   : > { %v751_v28 = vadd.f32 %v925_v0, %v728_v27 }
 0x455   : > { %756 = vst.msk [vmem:[%s1214_s15 + $0x10] sm:$0xff] %vm624_vm10, %v751_v28  ;;  %v760_v33 = vsel %vm624_vm10, %v751_v28, -inf }
 0x456   : > { %v729_v29 = vpop.trf.xlu0 }
 0x457   : > { %v752_v31 = vadd.f32 %v925_v0, %v729_v29 }
 0x459   : > { %757 = vst.msk [vmem:[%s1214_s15 + $0x18] sm:$0xff] %vm624_vm10, %v752_v31  ;;  %v761_v34 = vsel %vm624_vm10, %v752_v31, -inf }
 0x45a   : > { %v763_v36 = vmax.f32 %v760_v33, %v761_v34 }
 0x45c   : > { %v764_v37 = vmax.f32 %v762_v35, %v763_v36 }
 0x45e   : > { %v765_v38 = vrot.slane %v764_v37, 4 }
 0x460   : > { %v766_v39 = vmax.f32 %v764_v37, %v765_v38 }
 0x462   : > { %v767_v40 = vrot.slane %v766_v39, 2 }
 0x464   : > { %v768_v41 = vmax.f32 %v766_v39, %v767_v40 }
 0x466   : > { %v769_v42 = vrot.slane %v768_v41, 1 }
 0x468   : > { %v770_v43 = vmax.f32 %v768_v41, %v769_v42 }
 0x46a   : > { %772 = vst.msk [vmem:[%s304_s18] sm:$0x1] %vm771_vm11, %v770_v43 }
 0x46b PF: > { %s18_s24 = sadd.s32 1, %s1107_s24  }
 0x46c   : > { %p15_p5 = scmp.ge.s32.totalorder %s18_s24, 4  }
 0x46e   :  { %17 = sbr.rel (!%p15_p5) target bundleno = 1 (0x1), region = 108 }

// kernel: dgcnn_forward.12
= control target key start
LH: loop header
LB: loop body
LE: loop exit
PB: predicated region body
PF: predicated region fallthrough
CT: control target
= control target key end

     0   :  { %s1225_s24 = smov 0   ;;  %s1499_s0 = inlined_call_operand.vmem [shape: f32[2,32,64], index: 0, kind: input, shape index: {}]   ;;  %s1500_s1 = inlined_call_operand.vmem [shape: s32[2,4,32], index: 1, kind: input, shape index: {}]   ;;  %s1501_s2 = inlined_call_operand.vmem [shape: bf16[64,128], index: 2, kind: input, shape index: {}]   ;;  %s1502_s3 = inlined_call_operand.vmem [shape: f32[1,64], index: 3, kind: input, shape index: {}]   ;;  %s1503_s4 = inlined_call_operand.vmem [shape: bf16[64,64], index: 4, kind: input, shape index: {}]   ;;  %s1504_s5 = inlined_call_operand.vmem [shape: f32[1,64], index: 5, kind: input, shape index: {}]   ;;  %s1505_s6 = inlined_call_operand.vmem [shape: f32[2,32,64], index: 6, kind: output, shape index: {0}]   ;;  %s1506_s7 = inlined_call_operand.vmem [shape: f32[2,1,64], index: 7, kind: output, shape index: {1}]  }
   0x1 LB: > { %s917_s25 = sadd.s32 4294967295, %s1145_s24   ;;  %p921_p0 = scmp.ge.s32.totalorder %s1145_s24, 1  ;;  %s1145_s24 = sphi %s1225_s24, %s18_s24  }
   0x2   : > { %p249_p1 = scmp.lt.s32.totalorder %s1145_s24, 3 }
   0x4   : > { %p250_p2 = pnand %p921_p0, %p249_p1 }
   0x5   : > { %v1099_v0 = vld [vmem:[%s1501_s2] sm:$0xff] (!%p250_p2)   ;;  %p288_p3 = scmp.lt.s32.totalorder (!%p250_p2), %s917_s25, 1  ;;  %v1100_v1 = vld [vmem:[%s1501_s2 + $0x8] sm:$0xff] (!%p250_p2)   ;;  %v1101_v2 = vld [vmem:[%s1501_s2 + $0x10] sm:$0xff] (!%p250_p2)   ;;  %vm344_vm0 = vcmask (!%p250_p2), 523264   ;;  %s1183_s27 = smov (!%p250_p2), 64   ;;  %v503_v23 = vlaneseq (!%p250_p2) }
   0x6   : > { %253 = sbr.rel (%p250_p2) target bundleno = 1133 (0x46d), region = 44  ;;  %976 = vmatprep.subr.bf16.mxu0 (!%p250_p2), %v1099_v0  ;;  %v1102_v6 = vld [vmem:[%s1501_s2 + $0x18] sm:$0xff] (!%p250_p2)   ;;  %v933_v14 = vld [vmem:[%s1502_s3] ss:$0 sm:$0xff] (!%p250_p2)  ;;  %v1281_v26 = vld [vmem:[%s1503_s4 + $0x4] sm:$0xf] (!%p250_p2) }
   0x7   : > { %977 = vmatpush3.bf16.msra.mxu0 (!%p250_p2), %v1099_v0  ;;  %v1271_v24 = vshrl.u32 (!%p250_p2), %v503_v23, 7  ;;  %v1276_v25 = vld [vmem:[%s1503_s4] sm:$0xf] (!%p250_p2)  ;;  %v1289_v28 = vld [vmem:[%s1503_s4 + $0x8] sm:$0xf] (!%p250_p2)  ;;  %v1362_v56 = vmov (!%p250_p2), -inf  }
   0x8   : > { %978 = vmatprep.subr.bf16.mxu0 (!%p250_p2), %v1100_v1  ;;  %v1294_v29 = vld [vmem:[%s1503_s4 + $0xc] sm:$0xf] (!%p250_p2)  ;;  %v1299_v30 = vld [vmem:[%s1503_s4 + $0x10] sm:$0xf] (!%p250_p2)  ;;  %v1304_v31 = vld [vmem:[%s1503_s4 + $0x14] sm:$0xf] (!%p250_p2) }
   0x9   : > { %v1284_v27 = vadd.s32 (!%p250_p2), 8, %v1271_v24  ;;  %v1309_v32 = vld [vmem:[%s1503_s4 + $0x18] sm:$0xf] (!%p250_p2)  ;;  %v1314_v33 = vld [vmem:[%s1503_s4 + $0x1c] sm:$0xf] (!%p250_p2)  ;;  %v1317_v34 = vadd.s32 (!%p250_p2), 16, %v1271_v24 }
   0xa   : > { %v1320_v35 = vadd.s32 (!%p250_p2), 24, %v1271_v24  ;;  %v1364_v57 = vmov (!%p250_p2), -inf   ;;  %v1366_v58 = vmov (!%p250_p2), -inf   ;;  %v1368_v59 = vmov (!%p250_p2), -inf   ;;  %s1378_s28 = smov (!%p250_p2), 0  }
   0xb   : > { %979 = vmatpush3.bf16.msra.mxu0 (!%p250_p2), %v1100_v1  ;;  %v1370_v60 = vmov (!%p250_p2), -inf   ;;  %v1372_v61 = vmov (!%p250_p2), -inf   ;;  %v1374_v62 = vmov (!%p250_p2), -inf   ;;  %v1376_v63 = vmov (!%p250_p2), -inf  }
   0xc   : > { %980 = vmatprep.subr.bf16.mxu0 (!%p250_p2), %v1101_v2 }
   0xd   : > { %s1516_s25 = smov (!%p288_p3, %s917_s25), 1 }
   0xe   : > { %s954_s9 = sshll.u32 %s1516_s25, 5  ;;  %s924_s10 = sshll.u32 %s1516_s25, 2 }
   0xf   : > { %s292_s13 = scalar_lea.vmem %s1499_s0, %s954_s9  ;;  %s1252_s16 = scalar_lea.vmem %s1500_s1, %s924_s10  ;;  %981 = vmatpush3.bf16.msra.mxu0 %v1101_v2 }
  0x10   : > { %s1257_s19 = scalar_lea.vmem %s1505_s6, %s954_s9  ;;  %s304_s22 = scalar_lea.vmem %s1506_s7, %s1516_s25  ;;  %v306_v3 = vld [vmem:[%s292_s13] sm:$0xff]  ;;  %v307_v4 = vld [vmem:[%s292_s13 + $0x8] sm:$0xff]  ;;  %v308_v7 = vld [vmem:[%s292_s13 + $0x10] sm:$0xff]  ;;  %982 = vmatprep.subr.bf16.mxu0 %v1102_v6 }
  0x11   : > { %v310_v5 = vpack.c.bf16 %v307_v4, %v306_v3  ;;  %v309_v8 = vld [vmem:[%s292_s13 + $0x18] sm:$0xff] }
  0x12   : > { %v311_v9 = vpack.c.bf16 %v309_v8, %v308_v7 }
  0x13   : > { %984 = vmatprep.mubr.msk.bf16.mxu0 %vm344_vm0, %v310_v5  ;;  %983 = vmatpush3.bf16.msra.mxu0 %v1102_v6 }
  0x16   : > { %985 = vmatmul.mubr.msk.bf16.vlgmr.msra.gmra.mrb[0].mxu0 %vm344_vm0, %v311_v9 }
  0xe9   : > { %v986_v10 = vpop.f32.mrb[0].mxu0 }
  0xea   : > { %451 = vrot.lane.b32.xlu1 %v986_v10, %s1183_s27  ;;  %v385_v11 = vpop.f32.mrb[1].mxu0  ;;  %v409_v17 = vadd.f32 %v986_v10, %v933_v14 }
  0xeb   : > { %447 = vrot.lane.b32.xlu0 %v385_v11, %s1183_s27  ;;  %v987_v12 = vpop.f32.mrb[2].mxu0  ;;  %v407_v15 = vadd.f32 %v933_v14, %v385_v11 }
  0xec   : > { %v388_v13 = vpop.f32.mrb[3].mxu0  ;;  %v410_v18 = vadd.f32 %v987_v12, %v933_v14 }
  0xed   : > { %v408_v16 = vadd.f32 %v933_v14, %v388_v13 }
  0xee   : > { %453 = vrot.lane.b32.xlu1 %v987_v12, %s1183_s27 }
  0xef   : > { %449 = vrot.lane.b32.xlu0 %v388_v13, %s1183_s27 }
 0x10d   : > { %411 = vxpose.xlu0.b32.start [1/4] (short) (narrow) %v407_v15, 64 }
 0x111   : > { %412 = vxpose.xlu0.b32.cont [2/4] (short) (narrow) %v408_v16, 64 }
 0x115   : > { %413 = vxpose.xlu0.b32.cont [3/4] (short) (narrow) %v409_v17, 64 }
 0x119   : > { %414 = vxpose.xlu0.b32.end [4/4] (short) (narrow) %v410_v18, 64 }
 0x15c   : > { %v452_v21 = vpop.permute.xlu1 %451 }
 0x15d   : > { %v448_v19 = vpop.permute.xlu0 %447 }
 0x15e   : > { %459 = vxpose.xlu1.b32.start [1/4] (short) (narrow) %v448_v19, 64 }
 0x160   : > { %v454_v22 = vpop.permute.xlu1 %453 }
 0x161   : > { %v450_v20 = vpop.permute.xlu0 %449 }
 0x162   : > { %460 = vxpose.xlu1.b32.cont [2/4] (short) (narrow) %v450_v20, 64 }
 0x166   : > { %461 = vxpose.xlu1.b32.cont [3/4] (short) (narrow) %v452_v21, 64 }
 0x16a   : > { %462 = vxpose.xlu1.b32.end [4/4] (short) (narrow) %v454_v22, 64 }
 0x18d   : > { %v1322_v36 = vpop.trf.xlu0 }
 0x191   : > { %v1324_v37 = vpop.trf.xlu0 }
 0x195   : > { %v1326_v38 = vpop.trf.xlu0 }
 0x199   : > { %v1328_v39 = vpop.trf.xlu0 }
 0x19d   : > { %v1330_v40 = vpop.trf.xlu0 }
 0x1a1   : > { %v1332_v41 = vpop.trf.xlu0 }
 0x1a5   : > { %v1334_v42 = vpop.trf.xlu0 }
 0x1a9   : > { %v1336_v43 = vpop.trf.xlu0 }
 0x1de   : > { %v1338_v44 = vpop.trf.xlu1 }
 0x1e2   : > { %v1340_v45 = vpop.trf.xlu1 }
 0x1e3   : > { %v491_v46 = vpack.c.bf16 %v1340_v45, %v1338_v44 }
 0x1e6   : > { %v1344_v47 = vpop.trf.xlu1 }
 0x1ea   : > { %v1346_v48 = vpop.trf.xlu1 }
 0x1eb   : > { %v492_v49 = vpack.c.bf16 %v1346_v48, %v1344_v47 }
 0x1ee   : > { %v1350_v50 = vpop.trf.xlu1 }
 0x1f2   : > { %v1352_v51 = vpop.trf.xlu1 }
 0x1f3   : > { %v493_v52 = vpack.c.bf16 %v1352_v51, %v1350_v50 }
 0x1f6   : > { %v1356_v53 = vpop.trf.xlu1 }
 0x1fa   : > { %v1358_v54 = vpop.trf.xlu1 }
 0x1fb   : > { %v494_v55 = vpack.c.bf16 %v1358_v54, %v1356_v53 }
 0x1fc LB: >> { %vm538_vm1 = vcmask 261120   ;;  %s522_s29 = scalar_lea.vmem %s1252_s16, %s1181_s28  ;;  %v1184_v1 = vmov 1.0|1.0   ;;  %v943_v2 = vcombine.low %v1276_v25, %v1281_v26  ;;  %s513_s28 = sadd.s32 1, %s1181_s28   ;;  %s1181_s28 = sphi %s1378_s28, %s513_s28   ;;  %v1177_v63 = vphi %v1376_v63, %v1514_v63   ;;  %v1173_v62 = vphi %v1374_v62, %v1513_v62   ;;  %v1169_v61 = vphi %v1372_v61, %v1512_v61   ;;  %v1165_v60 = vphi %v1370_v60, %v1511_v60   ;;  %v1161_v59 = vphi %v1368_v59, %v1510_v59   ;;  %v1157_v58 = vphi %v1366_v58, %v1509_v58   ;;  %v1153_v57 = vphi %v1364_v57, %v1508_v57   ;;  %v1149_v56 = vphi %v1362_v56, %v1507_v56  }
 0x1fd   : >> { %992 = vmatprep.mubr.msk.bf16.mxu0 %vm538_vm1, %v491_v46  ;;  %v934_v0 = vld [vmem:[%s522_s29] ss:$0 sm:$0xff]  ;;  %p510_p4 = scmp.ge.s32.totalorder %s513_s28, 4  }
 0x1fe   : >> { %vm528_vm2 = vcmp.eq.s32.totalorder %v1271_v24, %v934_v0  ;;  %vm529_vm3 = vcmp.eq.s32.totalorder %v1284_v27, %v934_v0  ;;  %vm530_vm4 = vcmp.eq.s32.totalorder %v1317_v34, %v934_v0  ;;  %vm531_vm5 = vcmp.eq.s32.totalorder %v1320_v35, %v934_v0  ;;  %1008 = vmatprep.mubr.msk.bf16.mxu1 %vm344_vm0, %v943_v2 }
 0x1ff   : >> { %vm935_vm6 = vmpackc.low %vm529_vm3, %vm528_vm2  ;;  %vm793_vm8 = vcmask (%p510_p4), 516096  }
 0x200   : >> { %988 = vmatprep.subr.msk.bf16.mxu0 %vm935_vm6, %v1184_v1  ;;  %vm937_vm7 = vmpackc.low %vm531_vm5, %vm530_vm4 }
 0x201   : >> { %989 = vmatpush3.bf16.msk.msra.mxu0 %vm935_vm6, %v1184_v1 }
 0x202   : >> { %990 = vmatprep.subr.msk.bf16.mxu0 %vm937_vm7, %v1184_v1 }
 0x205   : >> { %991 = vmatpush3.bf16.msk.msra.mxu0 %vm937_vm7, %v1184_v1 }
 0x208   : >> { %993 = vmatmul.mubr.msk.bf16.vlgmr.msra.gmra.mrb[0].mxu0 %vm538_vm1, %v492_v49 }
 0x209   : >> { %996 = vmatprep.mubr.msk.bf16.mxu0 %vm538_vm1, %v493_v52 }
 0x210   : >> { %997 = vmatmul.mubr.msk.bf16.gmra.mrb[4].mxu0 %vm538_vm1, %v494_v55 }
 0x2db   : >> { %v994_v3 = vpop.f32.mrb[0].mxu0 }
 0x2dc   : >> { %v594_v4 = vadd.f32 %v994_v3, %v1326_v38  ;;  %v585_v5 = vpop.f32.mrb[1].mxu0 }
 0x2dd   : >> { %v586_v6 = vadd.f32 %v585_v5, %v1322_v36  ;;  %v995_v7 = vpop.f32.mrb[2].mxu0 }
 0x2de   : >> { %v597_v8 = vadd.f32 %v995_v7, %v1328_v39  ;;  %v588_v9 = vpop.f32.mrb[3].mxu0  ;;  %v618_v11 = vmax.f32 %v594_v4, 0.0  ;;  %v944_v7 = vcombine.low %v1289_v28, %v1294_v29 }
 0x2df   : >> { %v589_v10 = vadd.f32 %v588_v9, %v1324_v37  ;;  %v616_v13 = vmax.f32 %v586_v6, 0.0  ;;  %v946_v9 = vcombine.low %v1309_v32, %v1314_v33 }
 0x2e0   : >> { %v619_v12 = vmax.f32 %v597_v8, 0.0  ;;  %v945_v8 = vcombine.low %v1299_v30, %v1304_v31 }
 0x2e1   : >> { %v617_v14 = vmax.f32 %v589_v10, 0.0 }
 0x2e2   : >> { %v625_v15 = vpack.c.bf16 %v619_v12, %v618_v11 }
 0x2e3   : >> { %v998_v16 = vpop.f32.mrb[4].mxu0  ;;  %v624_v17 = vpack.c.bf16 %v617_v14, %v616_v13 }
 0x2e4   : >> { %v610_v18 = vadd.f32 %v998_v16, %v1334_v42  ;;  %v601_v19 = vpop.f32.mrb[5].mxu0 }
 0x2e5   : >> { %v602_v20 = vadd.f32 %v601_v19, %v1330_v40  ;;  %v999_v21 = vpop.f32.mrb[6].mxu0  ;;  %1000 = vmatprep.subr.bf16.mxu1 %v624_v17 }
 0x2e6   : >> { %v613_v22 = vadd.f32 %v999_v21, %v1336_v43  ;;  %v604_v23 = vpop.f32.mrb[7].mxu0  ;;  %1001 = vmatpush3.bf16.msra.mxu1 %v624_v17  ;;  %v622_v1 = vmax.f32 %v610_v18, 0.0 }
 0x2e7   : >> { %v605_v0 = vadd.f32 %v604_v23, %v1332_v41  ;;  %1002 = vmatprep.subr.bf16.mxu1 %v625_v15  ;;  %v620_v3 = vmax.f32 %v602_v20, 0.0 }
 0x2e8   : >> { %v623_v2 = vmax.f32 %v613_v22, 0.0 }
 0x2e9   : >> { %v621_v4 = vmax.f32 %v605_v0, 0.0 }
 0x2ea   : >> { %v627_v5 = vpack.c.bf16 %v623_v2, %v622_v1  ;;  %1003 = vmatpush3.bf16.msra.mxu1 %v625_v15 }
 0x2eb   : >> { %v626_v6 = vpack.c.bf16 %v621_v4, %v620_v3 }
 0x2ed   : >> { %1004 = vmatprep.subr.bf16.mxu1 %v626_v6 }
 0x2ee   : >> { %1005 = vmatpush3.bf16.msra.mxu1 %v626_v6 }
 0x2ef   : >> { %1006 = vmatprep.subr.bf16.mxu1 %v627_v5 }
 0x2f2   : >> { %1007 = vmatpush3.bf16.msra.mxu1 %v627_v5 }
 0x2f5   : >> { %1009 = vmatmul.mubr.msk.bf16.vlgmr.msra.gmra.mrb[0].mxu1 %vm344_vm0, %v944_v7 }
 0x2f6   : >> { %1012 = vmatprep.mubr.msk.bf16.mxu1 %vm344_vm0, %v945_v8 }
 0x2fd   : >> { %1013 = vmatmul.mubr.msk.bf16.gmra.mrb[4].mxu1 %vm344_vm0, %v946_v9 }
 0x3c8   : >> { %v1010_v10 = vpop.f32.mrb[0].mxu1 }
 0x3c9   : >> { %v727_v11 = vmax.f32 %v1169_v61, %v1010_v10   ;;  %v694_v12 = vpop.f32.mrb[1].mxu1 }
 0x3ca   : >> { %v725_v13 = vmax.f32 %v1177_v63, %v694_v12   ;;  %v1011_v14 = vpop.f32.mrb[2].mxu1 }
 0x3cb   : >> { %v728_v15 = vmax.f32 %v1165_v60, %v1011_v14   ;;  %v697_v16 = vpop.f32.mrb[3].mxu1  ;;  %v1512_v61 = vmov %v727_v11 }
 0x3cc   : >> { %v726_v17 = vmax.f32 %v1173_v62, %v697_v16   ;;  %v1514_v63 = vmov %v725_v13  ;;  %733 = vxpose.xlu0.b32.start [1/8] (short) (narrow) (%p510_p4), %v725_v13, 32 }
 0x3cd   : >> { %v1511_v60 = vmov %v728_v15  ;;  %v951_v63 = vld [vmem:[%s1504_s5] ss:$0 sm:$0xff] (%p510_p4) }
 0x3ce   : >> { %v1513_v62 = vmov %v726_v17 }
 0x3d0   : >> { %v1014_v18 = vpop.f32.mrb[4].mxu1  ;;  %512 = sbr.rel (!%p510_p4) target bundleno = 508 (0x1fc), region = 97  ;;  %734 = vxpose.xlu0.b32.cont [2/8] (short) (narrow) (%p510_p4), %v726_v17, 32 }
 0x3d1   : >> { %v731_v19 = vmax.f32 %v1153_v57, %v1014_v18   ;;  %v710_v20 = vpop.f32.mrb[5].mxu1 }
 0x3d2   : >> { %v729_v21 = vmax.f32 %v1161_v59, %v710_v20   ;;  %v1015_v22 = vpop.f32.mrb[6].mxu1 }
 0x3d3   : >> { %v732_v23 = vmax.f32 %v1149_v56, %v1015_v22   ;;  %v713_v0 = vpop.f32.mrb[7].mxu1  ;;  %v1508_v57 = vmov %v731_v19 }
 0x3d4   : >> { %v730_v1 = vmax.f32 %v1157_v58, %v713_v0   ;;  %v1510_v59 = vmov %v729_v21  ;;  %735 = vxpose.xlu0.b32.cont [3/8] (short) (narrow) (%p510_p4), %v727_v11, 32 }
 0x3d5   : >> { %v1507_v56 = vmov %v732_v23 }
 0x3d6   : >> { %v1509_v58 = vmov %v730_v1 }
 0x3d8   : > { %736 = vxpose.xlu0.b32.cont [4/8] (short) (narrow) %v728_v15, 32 }
 0x3dc   : > { %737 = vxpose.xlu0.b32.cont [5/8] (short) (narrow) %v729_v21, 32 }
 0x3e0   : > { %738 = vxpose.xlu0.b32.cont [6/8] (short) (narrow) %v730_v1, 32 }
 0x3e4   : > { %739 = vxpose.xlu0.b32.cont [7/8] (short) (narrow) %v731_v19, 32 }
 0x3e8   : > { %740 = vxpose.xlu0.b32.end [8/8] (short) (narrow) %v732_v23, 32 }
 0x44c   : > { %v749_v2 = vpop.trf.xlu0 }
 0x44d   : > { %v772_v3 = vadd.f32 %v951_v63, %v749_v2 }
 0x44f   : > { %776 = vst.msk [vmem:[%s1257_s19] sm:$0xff] %vm344_vm0, %v772_v3  ;;  %v780_v31 = vsel %vm344_vm0, %v772_v3, -inf }
 0x450   : > { %v750_v24 = vpop.trf.xlu0 }
 0x451   : > { %v773_v25 = vadd.f32 %v951_v63, %v750_v24 }
 0x453   : > { %777 = vst.msk [vmem:[%s1257_s19 + $0x8] sm:$0xff] %vm344_vm0, %v773_v25  ;;  %v781_v29 = vsel %vm344_vm0, %v773_v25, -inf }
 0x454   : > { %v751_v26 = vpop.trf.xlu0  ;;  %v784_v34 = vmax.f32 %v780_v31, %v781_v29 }
 0x455   : > { %v774_v27 = vadd.f32 %v951_v63, %v751_v26 }
 0x457   : > { %778 = vst.msk [vmem:[%s1257_s19 + $0x10] sm:$0xff] %vm344_vm0, %v774_v27  ;;  %v782_v32 = vsel %vm344_vm0, %v774_v27, -inf }
 0x458   : > { %v752_v28 = vpop.trf.xlu0 }
 0x459   : > { %v775_v30 = vadd.f32 %v951_v63, %v752_v28 }
 0x45b   : > { %779 = vst.msk [vmem:[%s1257_s19 + $0x18] sm:$0xff] %vm344_vm0, %v775_v30  ;;  %v783_v33 = vsel %vm344_vm0, %v775_v30, -inf }
 0x45c   : > { %v785_v35 = vmax.f32 %v782_v32, %v783_v33 }
 0x45e   : > { %v786_v36 = vmax.f32 %v784_v34, %v785_v35 }
 0x460   : > { %v787_v37 = vrot.slane %v786_v36, 4 }
 0x462   : > { %v788_v38 = vmax.f32 %v786_v36, %v787_v37 }
 0x464   : > { %v789_v39 = vrot.slane %v788_v38, 2 }
 0x466   : > { %v790_v40 = vmax.f32 %v788_v38, %v789_v39 }
 0x468   : > { %v791_v41 = vrot.slane %v790_v40, 1 }
 0x46a   : > { %v792_v42 = vmax.f32 %v790_v40, %v791_v41 }
 0x46c   : > { %794 = vst.msk [vmem:[%s304_s22] sm:$0x1] %vm793_vm8, %v792_v42 }
 0x46d PF: > { %s18_s24 = sadd.s32 1, %s1145_s24  }
 0x46e   : > { %p15_p5 = scmp.ge.s32.totalorder %s18_s24, 4  }
 0x470   :  { %17 = sbr.rel (!%p15_p5) target bundleno = 1 (0x1), region = 108 }

// kernel: dgcnn_forward.14
= control target key start
LH: loop header
LB: loop body
LE: loop exit
PB: predicated region body
PF: predicated region fallthrough
CT: control target
= control target key end

     0   :  { %s1566_s24 = smov 0   ;;  %s2020_s0 = inlined_call_operand.vmem [shape: f32[2,32,64], index: 0, kind: input, shape index: {}]   ;;  %s2021_s1 = inlined_call_operand.vmem [shape: s32[2,4,32], index: 1, kind: input, shape index: {}]   ;;  %s2022_s2 = inlined_call_operand.vmem [shape: bf16[64,256], index: 2, kind: input, shape index: {}]   ;;  %s2023_s3 = inlined_call_operand.vmem [shape: f32[1,128], index: 3, kind: input, shape index: {}]   ;;  %s2024_s4 = inlined_call_operand.vmem [shape: bf16[128,128], index: 4, kind: input, shape index: {}]   ;;  %s2025_s5 = inlined_call_operand.vmem [shape: f32[1,128], index: 5, kind: input, shape index: {}]   ;;  %s2026_s6 = inlined_call_operand.vmem [shape: f32[2,32,128], index: 6, kind: output, shape index: {0}]   ;;  %s2027_s7 = inlined_call_operand.vmem [shape: f32[2,1,128], index: 7, kind: output, shape index: {1}]  }
   0x1 LB: > { %s1072_s25 = sadd.s32 4294967295, %s1454_s24   ;;  %p1076_p0 = scmp.ge.s32.totalorder %s1454_s24, 1  ;;  %s1454_s24 = sphi %s1566_s24, %s18_s24  }
   0x2   : > { %p249_p1 = scmp.lt.s32.totalorder %s1454_s24, 3 }
   0x4   : > { %p250_p2 = pnand %p1076_p0, %p249_p1 }
   0x6   : > { %253 = sbr.rel (%p250_p2) target bundleno = 1075 (0x433), region = 44 }
   0xd   : > { %v1368_v0 = vld [vmem:[%s2022_s2 + $0x4] ss:$8 sps:$4 sm:$0xff]   ;;  %p288_p3 = scmp.lt.s32.totalorder %s1072_s25, 1  ;;  %v1370_v1 = vld [vmem:[%s2022_s2] ss:$8 sps:$4 sm:$0xff]   ;;  %v1524_v2 = vmov 0   ;;  %v519_v28 = vlaneseq }
   0xe   : > { %399 = vmatprep.mubr.bf16.mxu0 %v1524_v2  ;;  %409 = vmatprep.mubr.bf16.mxu1 %v1524_v2  ;;  %v1371_v3 = vld [vmem:[%s2022_s2 + $0x14] ss:$8 sps:$4 sm:$0xff]   ;;  %v1373_v4 = vld [vmem:[%s2022_s2 + $0x10] ss:$8 sps:$4 sm:$0xff]   ;;  %v1374_v5 = vld [vmem:[%s2022_s2 + $0x24] ss:$8 sps:$4 sm:$0xff]  }
   0xf   : > { %367 = vmatprep.subr.bf16.mxu0 %v1368_v0  ;;  %1197 = vmatprep.subr.bf16.mxu1 %v1368_v0  ;;  %s2111_s25 = smov (!%p288_p3, %s1072_s25), 1  ;;  %v1376_v6 = vld [vmem:[%s2022_s2 + $0x20] ss:$8 sps:$4 sm:$0xff]   ;;  %v1377_v7 = vld [vmem:[%s2022_s2 + $0x34] ss:$8 sps:$4 sm:$0xff]   ;;  %vm360_vm0 = vcmask 523264  }
  0x10   : > { %368 = vmatpush1.bf16.msra.mxu0 %v1370_v1  ;;  %1201 = vmatpush1.bf16.msra.mxu1 %v1370_v1  ;;  %s1117_s13 = sshll.u32 %s2111_s25, 5  ;;  %s1079_s14 = sshll.u32 %s2111_s25, 2  ;;  %v1379_v8 = vld [vmem:[%s2022_s2 + $0x30] ss:$8 sps:$4 sm:$0xff]   ;;  %v1092_v15 = vld [vmem:[%s2023_s3] ss:$0 sm:$0xff] }
  0x11   : > { %369 = vmatprep.subr.bf16.mxu0 %v1371_v3  ;;  %1198 = vmatprep.subr.bf16.mxu1 %v1371_v3  ;;  %s1596_s17 = scalar_lea.vmem %s2021_s1, %s1079_s14  ;;  %s1601_s20 = scalar_lea.vmem %s2026_s6, %s1117_s13  ;;  %v1622_v29 = vshrl.u32 %v519_v28, 7  ;;  %v1627_v30 = vld [vmem:[%s2024_s4] sm:$0xf]  ;;  %v1632_v31 = vld [vmem:[%s2024_s4 + $0x4] sm:$0xf]  ;;  %v1799_v28 = vmov -inf  }
  0x12   : > { %s304_s23 = scalar_lea.vmem %s2027_s7, %s2111_s25  ;;  %s292_s30 = scalar_lea.vmem %s2020_s0, %s1117_s13  ;;  %2040 = vst [vmem:[#allocation3_spill] sm:$0xff] %v1627_v30  ;;  %2041 = vst [vmem:[#allocation4_spill] sm:$0xff] %v1632_v31  ;;  %v1637_v32 = vld [vmem:[%s2024_s4 + $0x8] sm:$0xf]  ;;  %v1642_v33 = vld [vmem:[%s2024_s4 + $0xc] sm:$0xf] }
  0x13   : > { %v306_v9 = vld [vmem:[%s292_s30] sm:$0xff]  ;;  %v307_v10 = vld [vmem:[%s292_s30 + $0x8] sm:$0xff]  ;;  %v308_v11 = vld [vmem:[%s292_s30 + $0x10] sm:$0xff]  ;;  %2039 = vst [vmem:[#allocation2_spill] sm:$0xff] %v1622_v29  ;;  %v1705_v46 = vadd.s32 8, %v1622_v29  ;;  %v1708_v47 = vadd.s32 16, %v1622_v29 }
  0x14   : > { %370 = vmatpush1.bf16.msra.mxu0 %v1373_v4  ;;  %1202 = vmatpush1.bf16.msra.mxu1 %v1373_v4  ;;  %v309_v12 = vld [vmem:[%s292_s30 + $0x18] sm:$0xff]  ;;  %v310_v13 = vpack.c.bf16 %v307_v10, %v306_v9  ;;  %v1647_v34 = vld [vmem:[%s2024_s4 + $0x10] sm:$0xf]  ;;  %v1652_v35 = vld [vmem:[%s2024_s4 + $0x14] sm:$0xf]  ;;  %v1711_v48 = vadd.s32 24, %v1622_v29 }
  0x15   : > { %371 = vmatprep.subr.bf16.mxu0 %v1374_v5  ;;  %1199 = vmatprep.subr.bf16.mxu1 %v1374_v5  ;;  %v311_v14 = vpack.c.bf16 %v309_v12, %v308_v11  ;;  %2042 = vst [vmem:[#allocation5_spill] sm:$0xff] %v1647_v34  ;;  %v1657_v36 = vld [vmem:[%s2024_s4 + $0x18] sm:$0xf]  ;;  %v1662_v37 = vld [vmem:[%s2024_s4 + $0x1c] sm:$0xf]  ;;  %2047 = vst [vmem:[#allocation10_spill] sm:$0xff] %v1705_v46 }
  0x16   : > { %v1667_v38 = vld [vmem:[%s2024_s4 + $0x20] sm:$0xf]  ;;  %v1672_v39 = vld [vmem:[%s2024_s4 + $0x24] sm:$0xf]  ;;  %v1677_v40 = vld [vmem:[%s2024_s4 + $0x28] sm:$0xf] }
  0x17   : > { %v1682_v41 = vld [vmem:[%s2024_s4 + $0x2c] sm:$0xf]  ;;  %v1687_v42 = vld [vmem:[%s2024_s4 + $0x30] sm:$0xf]  ;;  %v1692_v43 = vld [vmem:[%s2024_s4 + $0x34] sm:$0xf] }
  0x18   : > { %372 = vmatpush1.bf16.msra.mxu0 %v1376_v6  ;;  %1203 = vmatpush1.bf16.msra.mxu1 %v1376_v6  ;;  %2043 = vst [vmem:[#allocation6_spill] sm:$0xff] %v1687_v42  ;;  %2044 = vst [vmem:[#allocation7_spill] sm:$0xff] %v1692_v43  ;;  %v1697_v44 = vld [vmem:[%s2024_s4 + $0x38] sm:$0xf]  ;;  %v1702_v45 = vld [vmem:[%s2024_s4 + $0x3c] sm:$0xf] }
  0x19   : > { %373 = vmatprep.subr.bf16.mxu0 %v1377_v7  ;;  %1200 = vmatprep.subr.bf16.mxu1 %v1377_v7  ;;  %2045 = vst [vmem:[#allocation8_spill] sm:$0xff] %v1697_v44  ;;  %2046 = vst [vmem:[#allocation9_spill] sm:$0xff] %v1702_v45  ;;  %v1807_v3 = vmov -inf   ;;  %v1809_v62 = vmov -inf   ;;  %v1813_v57 = vmov -inf   ;;  %v1815_v52 = vmov -inf  }
  0x1a   : > { %v1817_v44 = vmov -inf   ;;  %v1819_v45 = vmov -inf   ;;  %v1821_v42 = vmov -inf   ;;  %v1823_v43 = vmov -inf   ;;  %s1825_s10 = smov 0  }
  0x1c   : > { %374 = vmatpush1.bf16.msra.mxu0 %v1379_v8  ;;  %1204 = vmatpush1.bf16.msra.mxu1 %v1379_v8  ;;  %v1805_v8 = vmov -inf  }
  0x1f   : > { %1090 = vmatmul.mubr.msk.bf16.vlgmr.msra.gmra.mrb[0].mxu0 %vm360_vm0, %v310_v13  ;;  %1091 = vmatmul.mubr.msk.bf16.vlgmr.msra.gmra.mrb[0].mxu1 %vm360_vm0, %v311_v14  ;;  %v1803_v13 = vmov -inf  }
  0xf2   : > { %v401_v16 = vpop.f32.mrb[0].mxu0  ;;  %v411_v17 = vpop.f32.mrb[0].mxu1 }
  0xf3   : > { %v403_v18 = vpop.f32.mrb[1].mxu0  ;;  %v427_v19 = vadd.f32 %v1092_v15, %v401_v16  ;;  %v413_v20 = vpop.f32.mrb[1].mxu1  ;;  %v429_v26 = vadd.f32 %v1092_v15, %v411_v17 }
  0xf4   : > { %463 = vxpose.xlu0.b32.start [1/4] (short) %v403_v18, 128  ;;  %v405_v21 = vpop.f32.mrb[2].mxu0  ;;  %v415_v22 = vpop.f32.mrb[2].mxu1  ;;  %v1801_v18 = vmov -inf  }
  0xf5   : > { %431 = vxpose.xlu1.b32.start [1/4] (short) %v427_v19, 128  ;;  %v407_v23 = vpop.f32.mrb[3].mxu0  ;;  %v417_v24 = vpop.f32.mrb[3].mxu1  ;;  %v428_v25 = vadd.f32 %v1092_v15, %v405_v21  ;;  %v430_v27 = vadd.f32 %v1092_v15, %v415_v22 }
  0xf8   : > { %464 = vxpose.xlu0.b32.cont [2/4] (short) %v407_v23, 128  ;;  %v1811_v23 = vmov -inf  }
  0xf9   : > { %432 = vxpose.xlu1.b32.cont [2/4] (short) %v428_v25, 128  ;;  %v1793_v25 = vmov -inf  }
  0xfc   : > { %465 = vxpose.xlu0.b32.cont [3/4] (short) %v413_v20, 128 }
  0xfd   : > { %433 = vxpose.xlu1.b32.cont [3/4] (short) %v429_v26, 128  ;;  %v1795_v26 = vmov -inf  }
 0x100   : > { %466 = vxpose.xlu0.b32.end [4/4] (short) %v417_v24, 128 }
 0x101   : > { %434 = vxpose.xlu1.b32.end [4/4] (short) %v430_v27, 128  ;;  %v1797_v27 = vmov -inf  }
 0x174   : > { %v1713_v49 = vpop.trf.xlu0 }
 0x175   : > { %v1715_v50 = vpop.trf.xlu1 }
 0x178   : > { %v1717_v51 = vpop.trf.xlu0 }
 0x179   : > { %v1721_v53 = vpop.trf.xlu1 }
 0x17c   : > { %v1723_v54 = vpop.trf.xlu0 }
 0x17d   : > { %v1725_v55 = vpop.trf.xlu1 }
 0x180   : > { %v1727_v56 = vpop.trf.xlu0 }
 0x181   : > { %v1731_v58 = vpop.trf.xlu1 }
 0x184   : > { %v1733_v59 = vpop.trf.xlu0 }
 0x185   : > { %v1735_v60 = vpop.trf.xlu1 }
 0x188   : > { %v1737_v61 = vpop.trf.xlu0 }
 0x189   : > { %v1741_v63 = vpop.trf.xlu1 }
 0x18c   : > { %v1743_v0 = vpop.trf.xlu0 }
 0x18d   : > { %2048 = vst [vmem:[#allocation11_spill] sm:$0xff] %v1743_v0  ;;  %v1745_v1 = vpop.trf.xlu1 }
 0x18e   : > { %2049 = vst [vmem:[#allocation12_spill] sm:$0xff] %v1745_v1 }
 0x190   : > { %v1747_v2 = vpop.trf.xlu0 }
 0x191   : > { %2050 = vst [vmem:[#allocation13_spill] sm:$0xff] %v1747_v2  ;;  %v1751_v4 = vpop.trf.xlu1 }
 0x194   : > { %v1753_v5 = vpop.trf.xlu0 }
 0x195   : > { %2051 = vst [vmem:[#allocation14_spill] sm:$0xff] %v1753_v5  ;;  %v1755_v6 = vpop.trf.xlu1 }
 0x198   : > { %v1757_v7 = vpop.trf.xlu0 }
 0x199   : > { %2052 = vst [vmem:[#allocation15_spill] sm:$0xff] %v1757_v7  ;;  %v1761_v9 = vpop.trf.xlu1 }
 0x19c   : > { %v1763_v10 = vpop.trf.xlu0 }
 0x19d   : > { %2053 = vst [vmem:[#allocation16_spill] sm:$0xff] %v1763_v10  ;;  %v1765_v11 = vpop.trf.xlu1 }
 0x1a0   : > { %v1767_v12 = vpop.trf.xlu0 }
 0x1a1   : > { %2054 = vst [vmem:[#allocation17_spill] sm:$0xff] %v1767_v12  ;;  %v1771_v14 = vpop.trf.xlu1 }
 0x1a4   : > { %v1773_v15 = vpop.trf.xlu0 }
 0x1a5   : > { %2055 = vst [vmem:[#allocation18_spill] sm:$0xff] %v1773_v15  ;;  %v1775_v16 = vpop.trf.xlu1 }
 0x1a8   : > { %v1777_v17 = vpop.trf.xlu0 }
 0x1a9   : > { %2056 = vst [vmem:[#allocation19_spill] sm:$0xff] %v1777_v17  ;;  %v1781_v19 = vpop.trf.xlu1 }
 0x1ac   : > { %v1783_v20 = vpop.trf.xlu0 }
 0x1ad   : > { %2057 = vst [vmem:[#allocation20_spill] sm:$0xff] %v1783_v20  ;;  %v1785_v21 = vpop.trf.xlu1 }
 0x1b0   : > { %v1787_v22 = vpop.trf.xlu0 }
 0x1b1   : > { %2058 = vst [vmem:[#allocation21_spill] sm:$0xff] %v1787_v22  ;;  %v1791_v24 = vpop.trf.xlu1 }
 0x1b2 LB: >> { %2059 = vst [vmem:[#allocation22_spill] sm:$0xff] %v1458_v25  ;;  %2060 = vst [vmem:[#allocation23_spill] sm:$0xff] %v1466_v27  ;;  %vm562_vm1 = vcmask 261120   ;;  %v2062_v27 = vpack.c.bf16 %v1717_v51, %v1713_v49  ;;  %s546_s11 = scalar_lea.vmem %s1596_s17, %s1522_s10  ;;  %v2063_v29 = vld [vmem:[#allocation2_spill] sm:$0xff]  ;;  %v2067_v2 = vld [vmem:[#allocation13_spill] sm:$0xff]  ;;  %s529_s10 = sadd.s32 1, %s1522_s10   ;;  %s1522_s10 = sphi %s1825_s10, %s529_s10   ;;  %v1518_v43 = vphi %v1823_v43, %v2109_v43   ;;  %v1514_v42 = vphi %v1821_v42, %v2108_v42   ;;  %v1510_v45 = vphi %v1819_v45, %v2107_v45   ;;  %v1506_v44 = vphi %v1817_v44, %v2106_v44   ;;  %v1502_v52 = vphi %v1815_v52, %v2105_v52   ;;  %v1498_v57 = vphi %v1813_v57, %v2104_v57   ;;  %v1494_v23 = vphi %v1811_v23, %v2103_v23   ;;  %v1490_v62 = vphi %v1809_v62, %v2102_v62   ;;  %v1486_v3 = vphi %v1807_v3, %v2101_v3   ;;  %v1482_v8 = vphi %v1805_v8, %v2100_v8   ;;  %v1478_v13 = vphi %v1803_v13, %v2099_v13   ;;  %v1474_v18 = vphi %v1801_v18, %v2098_v18   ;;  %v1470_v28 = vphi %v1799_v28, %v2097_v28   ;;  %v1466_v27 = vphi %v1797_v27, %v2096_v27   ;;  %v1462_v26 = vphi %v1795_v26, %v2095_v26   ;;  %v1458_v25 = vphi %v1793_v25, %v2094_v25  }
 0x1b3   : >> { %2061 = vst [vmem:[#allocation24_spill] sm:$0xff] %v1470_v28  ;;  %v1093_v25 = vld [vmem:[%s546_s11] ss:$0 sm:$0xff]  ;;  %v1525_v28 = vmov 1.0|1.0   ;;  %v2068_v0 = vld [vmem:[#allocation11_spill] sm:$0xff] }
 0x1b4   : >> { %1149 = vmatprep.mubr.msk.bf16.mxu0 %vm562_vm1, %v2062_v27  ;;  %vm552_vm2 = vcmp.eq.s32.totalorder %v2063_v29, %v1093_v25  ;;  %v2064_v46 = vld [vmem:[#allocation10_spill] sm:$0xff]  ;;  %vm554_vm4 = vcmp.eq.s32.totalorder %v1708_v47, %v1093_v25  ;;  %vm555_vm5 = vcmp.eq.s32.totalorder %v1711_v48, %v1093_v25  ;;  %v2065_v27 = vpack.c.bf16 %v1727_v56, %v1723_v54  ;;  %v2070_v7 = vld [vmem:[#allocation15_spill] sm:$0xff]  ;;  %v2073_v12 = vld [vmem:[#allocation17_spill] sm:$0xff]  ;;  %p1965_p4 = scmp.ge.s32.totalorder %s529_s10, 4  }
 0x1b5   : >> { %vm553_vm3 = vcmp.eq.s32.totalorder %v2064_v46, %v1093_v25  ;;  %vm1096_vm7 = vmpackc.low %vm555_vm5, %vm554_vm4  ;;  %v2066_v29 = vpack.c.bf16 %v1737_v61, %v1733_v59  ;;  %v2069_v25 = vpack.c.bf16 %v2067_v2, %v2068_v0  ;;  %v2071_v5 = vld [vmem:[#allocation14_spill] sm:$0xff]  ;;  %v2074_v10 = vld [vmem:[#allocation16_spill] sm:$0xff] }
 0x1b6   : >> { %vm1094_vm6 = vmpackc.low %vm553_vm3, %vm552_vm2  ;;  %v2072_v46 = vpack.c.bf16 %v2070_v7, %v2071_v5  ;;  %v2076_v17 = vld [vmem:[#allocation19_spill] sm:$0xff]  ;;  %v2077_v15 = vld [vmem:[#allocation18_spill] sm:$0xff] }
 0x1b7   : >> { %1145 = vmatprep.subr.msk.bf16.mxu0 %vm1094_vm6, %v1525_v28  ;;  %v2080_v20 = vld [vmem:[#allocation20_spill] sm:$0xff]  ;;  %v2082_v34 = vld [vmem:[#allocation5_spill] sm:$0xff]  ;;  %v2084_v30 = vld [vmem:[#allocation3_spill] sm:$0xff] }
 0x1b8   : >> { %1146 = vmatpush3.bf16.msk.msra.mxu0 %vm1094_vm6, %v1525_v28  ;;  %v2079_v22 = vld [vmem:[#allocation21_spill] sm:$0xff]  ;;  %v2083_v31 = vld [vmem:[#allocation4_spill] sm:$0xff] }
 0x1b9   : >> { %1147 = vmatprep.subr.msk.bf16.mxu0 %vm1096_vm7, %v1525_v28  ;;  %v2085_v1 = vld [vmem:[#allocation12_spill] sm:$0xff] }
 0x1bc   : >> { %1148 = vmatpush3.bf16.msk.msra.mxu0 %vm1096_vm7, %v1525_v28  ;;  %v2075_v28 = vpack.c.bf16 %v2073_v12, %v2074_v10 }
 0x1bf   : >> { %1150 = vmatmul.mubr.msk.bf16.vlgmr.msra.gmra.mrb[0].mxu0 %vm562_vm1, %v2065_v27  ;;  %v2078_v27 = vpack.c.bf16 %v2076_v17, %v2077_v15 }
 0x1c0   : >> { %1153 = vmatprep.mubr.msk.bf16.mxu0 %vm562_vm1, %v2066_v29  ;;  %v2081_v29 = vpack.c.bf16 %v2079_v22, %v2080_v20 }
 0x1c7   : >> { %1154 = vmatmul.mubr.msk.bf16.gmra.mrb[4].mxu0 %vm562_vm1, %v2069_v25  ;;  %v1108_v25 = vcombine.low %v2082_v34, %v1652_v35 }
 0x1c8   : >> { %1157 = vmatprep.mubr.msk.bf16.mxu0 %vm562_vm1, %v2072_v46  ;;  %v1106_v46 = vcombine.low %v2084_v30, %v2083_v31 }
 0x1c9   : >> { %1185 = vmatprep.mubr.bf16.mxu1 %v1108_v25 }
 0x1cf   : >> { %1158 = vmatmul.mubr.msk.bf16.gmra.mrb[8].mxu0 %vm562_vm1, %v2075_v28 }
 0x1d0   : >> { %1161 = vmatprep.mubr.msk.bf16.mxu0 %vm562_vm1, %v2078_v27 }
 0x1d7   : >> { %1162 = vmatmul.mubr.msk.bf16.gmra.mrb[12].mxu0 %vm562_vm1, %v2081_v29 }
 0x1d8   : >> { %1181 = vmatprep.mubr.bf16.mxu0 %v1106_v46 }
 0x292   : >> { %v1151_v0 = vpop.f32.mrb[0].mxu0 }
 0x293   : >> { %v630_v28 = vadd.f32 %v1151_v0, %v1725_v55  ;;  %v621_v2 = vpop.f32.mrb[1].mxu0 }
 0x294   : >> { %v622_v5 = vadd.f32 %v621_v2, %v1715_v50  ;;  %v1152_v27 = vpop.f32.mrb[2].mxu0 }
 0x295   : >> { %v633_v7 = vadd.f32 %v1152_v27, %v1731_v58  ;;  %v624_v10 = vpop.f32.mrb[3].mxu0  ;;  %v686_v12 = vmax.f32 %v630_v28, 0.0 }
 0x296   : >> { %v625_v29 = vadd.f32 %v624_v10, %v1721_v53  ;;  %v684_v17 = vmax.f32 %v622_v5, 0.0 }
 0x297   : >> { %v687_v15 = vmax.f32 %v633_v7, 0.0 }
 0x298   : >> { %v685_v25 = vmax.f32 %v625_v29, 0.0 }
 0x299   : >> { %v701_v20 = vpack.c.bf16 %v687_v15, %v686_v12 }
 0x29a   : >> { %v700_v22 = vpack.c.bf16 %v685_v25, %v684_v17  ;;  %v1155_v30 = vpop.f32.mrb[4].mxu0 }
 0x29b   : >> { %v646_v46 = vadd.f32 %v1155_v30, %v2085_v1  ;;  %v637_v31 = vpop.f32.mrb[5].mxu0 }
 0x29c   : >> { %v638_v0 = vadd.f32 %v637_v31, %v1735_v60  ;;  %v1156_v34 = vpop.f32.mrb[6].mxu0  ;;  %1165 = vmatprep.subr.bf16.mxu0 %v700_v22  ;;  %1205 = vmatprep.subr.bf16.mxu1 %v700_v22 }
 0x29d   : >> { %v649_v2 = vadd.f32 %v1156_v34, %v1751_v4  ;;  %v640_v27 = vpop.f32.mrb[7].mxu0  ;;  %1166 = vmatpush3.bf16.msra.mxu0 %v700_v22  ;;  %1213 = vmatpush3.bf16.msra.mxu1 %v700_v22  ;;  %v690_v5 = vmax.f32 %v646_v46, 0.0 }
 0x29e   : >> { %v641_v7 = vadd.f32 %v640_v27, %v1741_v63  ;;  %1167 = vmatprep.subr.bf16.mxu0 %v701_v20  ;;  %1206 = vmatprep.subr.bf16.mxu1 %v701_v20  ;;  %v688_v12 = vmax.f32 %v638_v0, 0.0 }
 0x29f   : >> { %v691_v10 = vmax.f32 %v649_v2, 0.0 }
 0x2a0   : >> { %v689_v15 = vmax.f32 %v641_v7, 0.0 }
 0x2a1   : >> { %v703_v30 = vpack.c.bf16 %v691_v10, %v690_v5  ;;  %1168 = vmatpush3.bf16.msra.mxu0 %v701_v20  ;;  %1214 = vmatpush3.bf16.msra.mxu1 %v701_v20 }
 0x2a2   : >> { %v702_v31 = vpack.c.bf16 %v689_v15, %v688_v12  ;;  %v1159_v17 = vpop.f32.mrb[8].mxu0 }
 0x2a3   : >> { %v662_v28 = vadd.f32 %v1159_v17, %v1765_v11  ;;  %v653_v29 = vpop.f32.mrb[9].mxu0 }
 0x2a4   : >> { %v654_v34 = vadd.f32 %v653_v29, %v1755_v6  ;;  %v1160_v25 = vpop.f32.mrb[10].mxu0  ;;  %1169 = vmatprep.subr.bf16.mxu0 %v702_v31  ;;  %1207 = vmatprep.subr.bf16.mxu1 %v702_v31 }
 0x2a5   : >> { %v665_v22 = vadd.f32 %v1160_v25, %v1771_v14  ;;  %v656_v27 = vpop.f32.mrb[11].mxu0  ;;  %1170 = vmatpush3.bf16.msra.mxu0 %v702_v31  ;;  %1215 = vmatpush3.bf16.msra.mxu1 %v702_v31  ;;  %v694_v20 = vmax.f32 %v662_v28, 0.0 }
 0x2a6   : >> { %v657_v46 = vadd.f32 %v656_v27, %v1761_v9  ;;  %1171 = vmatprep.subr.bf16.mxu0 %v703_v30  ;;  %1208 = vmatprep.subr.bf16.mxu1 %v703_v30  ;;  %v692_v2 = vmax.f32 %v654_v34, 0.0 }
 0x2a7   : >> { %v695_v0 = vmax.f32 %v665_v22, 0.0 }
 0x2a8   : >> { %v693_v7 = vmax.f32 %v657_v46, 0.0 }
 0x2a9   : >> { %v705_v5 = vpack.c.bf16 %v695_v0, %v694_v20  ;;  %1172 = vmatpush3.bf16.msra.mxu0 %v703_v30  ;;  %1216 = vmatpush3.bf16.msra.mxu1 %v703_v30 }
 0x2aa   : >> { %v704_v10 = vpack.c.bf16 %v693_v7, %v692_v2  ;;  %v1163_v12 = vpop.f32.mrb[12].mxu0  ;;  %v1109_v2 = vcombine.low %v1657_v36, %v1662_v37  ;;  %v1107_v7 = vcombine.low %v1637_v32, %v1642_v33  ;;  %v1114_v32 = vld [vmem:[%s2025_s5] ss:$0 sm:$0xff] (%p1965_p4) }
 0x2ab   : >> { %v678_v15 = vadd.f32 %v1163_v12, %v1785_v21  ;;  %v669_v17 = vpop.f32.mrb[13].mxu0  ;;  %v2086_v12 = vld [vmem:[#allocation7_spill] sm:$0xff] }
 0x2ac   : >> { %v670_v29 = vadd.f32 %v669_v17, %v1775_v16  ;;  %v1164_v25 = vpop.f32.mrb[14].mxu0  ;;  %1173 = vmatprep.subr.bf16.mxu0 %v704_v10  ;;  %1209 = vmatprep.subr.bf16.mxu1 %v704_v10 }
 0x2ad   : >> { %v681_v31 = vadd.f32 %v1164_v25, %v1791_v24  ;;  %v672_v27 = vpop.f32.mrb[15].mxu0  ;;  %1174 = vmatpush3.bf16.msra.mxu0 %v704_v10  ;;  %1217 = vmatpush3.bf16.msra.mxu1 %v704_v10  ;;  %v698_v30 = vmax.f32 %v678_v15, 0.0  ;;  %v1110_v10 = vcombine.low %v1667_v38, %v1672_v39  ;;  %v2087_v15 = vld [vmem:[#allocation6_spill] sm:$0xff]  ;;  %v2089_v25 = vld [vmem:[#allocation8_spill] sm:$0xff] }
 0x2ae   : >> { %v673_v28 = vadd.f32 %v672_v27, %v1781_v19  ;;  %1175 = vmatprep.subr.bf16.mxu0 %v705_v5  ;;  %1210 = vmatprep.subr.bf16.mxu1 %v705_v5  ;;  %v696_v22 = vmax.f32 %v670_v29, 0.0  ;;  %v1112_v17 = vcombine.low %v2087_v15, %v2086_v12  ;;  %v2088_v29 = vld [vmem:[#allocation9_spill] sm:$0xff] }
 0x2af   : >> { %v699_v34 = vmax.f32 %v681_v31, 0.0  ;;  %v1113_v31 = vcombine.low %v2089_v25, %v2088_v29  ;;  %v2090_v25 = vld [vmem:[#allocation24_spill] sm:$0xff] }
 0x2b0   : >> { %v697_v46 = vmax.f32 %v673_v28, 0.0 }
 0x2b1   : >> { %v707_v20 = vpack.c.bf16 %v699_v34, %v698_v30  ;;  %1176 = vmatpush3.bf16.msra.mxu0 %v705_v5  ;;  %1218 = vmatpush3.bf16.msra.mxu1 %v705_v5  ;;  %v1111_v5 = vcombine.low %v1677_v40, %v1682_v41 }
 0x2b2   : >> { %v706_v0 = vpack.c.bf16 %v697_v46, %v696_v22 }
 0x2b4   : >> { %1177 = vmatprep.subr.bf16.mxu0 %v706_v0  ;;  %1211 = vmatprep.subr.bf16.mxu1 %v706_v0 }
 0x2b5   : >> { %1178 = vmatpush3.bf16.msra.mxu0 %v706_v0  ;;  %1219 = vmatpush3.bf16.msra.mxu1 %v706_v0 }
 0x2b6   : >> { %1179 = vmatprep.subr.bf16.mxu0 %v707_v20  ;;  %1212 = vmatprep.subr.bf16.mxu1 %v707_v20 }
 0x2b9   : >> { %1180 = vmatpush3.bf16.msra.mxu0 %v707_v20  ;;  %1220 = vmatpush3.bf16.msra.mxu1 %v707_v20 }
 0x2bc   : >> { %1186 = vmatmul.mubr.bf16.vlgmr.msra.gmra.mrb[0].mxu1 %v1109_v2  ;;  %1182 = vmatmul.mubr.bf16.vlgmr.msra.gmra.mrb[16].mxu0 %v1107_v7 }
 0x2bd   : >> { %1189 = vmatprep.mubr.bf16.mxu1 %v1110_v10 }
 0x2c4   : >> { %1190 = vmatmul.mubr.bf16.gmra.mrb[4].mxu1 %v1111_v5 }
 0x2c5   : >> { %1193 = vmatprep.mubr.bf16.mxu1 %v1112_v17 }
 0x2cc   : >> { %1194 = vmatmul.mubr.bf16.gmra.mrb[8].mxu1 %v1113_v31 }
 0x38f   : >> { %v1187_v27 = vpop.f32.mrb[0].mxu1  ;;  %v1183_v28 = vpop.f32.mrb[16].mxu0 }
 0x390   : >> { %v859_v30 = vmax.f32 %v1494_v23, %v1187_v27   ;;  %v806_v34 = vpop.f32.mrb[1].mxu1  ;;  %v855_v22 = vmax.f32 %v1510_v45, %v1183_v28   ;;  %v790_v46 = vpop.f32.mrb[17].mxu0 }
 0x391   : >> { %v857_v20 = vmax.f32 %v1502_v52, %v806_v34   ;;  %v1188_v0 = vpop.f32.mrb[2].mxu1  ;;  %v853_v2 = vmax.f32 %v1518_v43, %v790_v46   ;;  %v1184_v7 = vpop.f32.mrb[18].mxu0 }
 0x392   : >> { %v860_v10 = vmax.f32 %v1490_v62, %v1188_v0   ;;  %v809_v5 = vpop.f32.mrb[3].mxu1  ;;  %v856_v12 = vmax.f32 %v1506_v44, %v1184_v7   ;;  %v793_v15 = vpop.f32.mrb[19].mxu0 }
 0x393   : >> { %v858_v17 = vmax.f32 %v1498_v57, %v809_v5   ;;  %v854_v29 = vmax.f32 %v1514_v42, %v793_v15   ;;  %v2091_v42 = vld [vmem:[#allocation22_spill] sm:$0xff]  ;;  %869 = vxpose.xlu0.b32.start [1/16] (narrow) (%p1965_p4), %v853_v2, 32 }
 0x397   : >> { %v1191_v23 = vpop.f32.mrb[4].mxu1  ;;  %870 = vxpose.xlu0.b32.cont [2/16] (narrow) (%p1965_p4), %v854_v29, 32 }
 0x398   : >> { %v863_v31 = vmax.f32 %v1478_v13, %v1191_v23   ;;  %v822_v45 = vpop.f32.mrb[5].mxu1  ;;  %v2092_v13 = vld [vmem:[#allocation23_spill] sm:$0xff]  ;;  %v2103_v23 = vmov %v859_v30 }
 0x399   : >> { %v861_v34 = vmax.f32 %v1486_v3, %v822_v45   ;;  %v1192_v52 = vpop.f32.mrb[6].mxu1  ;;  %v2107_v45 = vmov %v855_v22 }
 0x39a   : >> { %v864_v46 = vmax.f32 %v1474_v18, %v1192_v52   ;;  %v825_v43 = vpop.f32.mrb[7].mxu1  ;;  %v2105_v52 = vmov %v857_v20 }
 0x39b   : >> { %v862_v0 = vmax.f32 %v1482_v8, %v825_v43   ;;  %v2101_v3 = vmov %v861_v34  ;;  %v2109_v43 = vmov %v853_v2  ;;  %871 = vxpose.xlu0.b32.cont [3/16] (narrow) (%p1965_p4), %v855_v22, 32 }
 0x39c   : >> { %v2098_v18 = vmov %v864_v46 }
 0x39d   : >> { %v2100_v8 = vmov %v862_v0 }
 0x39f   : >> { %v1195_v62 = vpop.f32.mrb[8].mxu1  ;;  %528 = sbr.rel (!%p1965_p4) target bundleno = 434 (0x1b2), region = 97  ;;  %872 = vxpose.xlu0.b32.cont [4/16] (narrow) (%p1965_p4), %v856_v12, 32 }
 0x3a0   : >> { %v867_v7 = vmax.f32 %v1462_v26, %v1195_v62   ;;  %v838_v44 = vpop.f32.mrb[9].mxu1  ;;  %v2102_v62 = vmov %v860_v10 }
 0x3a1   : >> { %v865_v5 = vmax.f32 %v2090_v25, %v838_v44   ;;  %v1196_v57 = vpop.f32.mrb[10].mxu1  ;;  %v2106_v44 = vmov %v856_v12 }
 0x3a2   : >> { %v868_v15 = vmax.f32 %v2091_v42, %v1196_v57   ;;  %v841_v27 = vpop.f32.mrb[11].mxu1  ;;  %v2095_v26 = vmov %v867_v7  ;;  %v2104_v57 = vmov %v858_v17  ;;  %v2108_v42 = vmov %v854_v29 }
 0x3a3   : >> { %v866_v1 = vmax.f32 %v2092_v13, %v841_v27   ;;  %v2097_v28 = vmov %v865_v5  ;;  %v2099_v13 = vmov %v863_v31  ;;  %873 = vxpose.xlu0.b32.cont [5/16] (narrow) (%p1965_p4), %v857_v20, 32 }
 0x3a4   : >> { %v2094_v25 = vmov %v868_v15 }
 0x3a5   : >> { %v2096_v27 = vmov %v866_v1 }
 0x3a7   : > { %874 = vxpose.xlu0.b32.cont [6/16] (narrow) %v858_v17, 32 }
 0x3ab   : > { %875 = vxpose.xlu0.b32.cont [7/16] (narrow) %v859_v30, 32 }
 0x3af   : > { %876 = vxpose.xlu0.b32.cont [8/16] (narrow) %v860_v10, 32 }
 0x3b3   : > { %877 = vxpose.xlu0.b32.cont [9/16] (narrow) %v861_v34, 32 }
 0x3b7   : > { %878 = vxpose.xlu0.b32.cont [10/16] (narrow) %v862_v0, 32 }
 0x3bb   : > { %879 = vxpose.xlu0.b32.cont [11/16] (narrow) %v863_v31, 32 }
 0x3bf   : > { %880 = vxpose.xlu0.b32.cont [12/16] (narrow) %v864_v46, 32 }
 0x3c3   : > { %881 = vxpose.xlu0.b32.cont [13/16] (narrow) %v865_v5, 32 }
 0x3c7   : > { %882 = vxpose.xlu0.b32.cont [14/16] (narrow) %v866_v1, 32 }
 0x3cb   : > { %883 = vxpose.xlu0.b32.cont [15/16] (narrow) %v867_v7, 32 }
 0x3cf   : > { %884 = vxpose.xlu0.b32.end [16/16] (narrow) %v868_v15, 32 }
 0x413   : > { %v885_v33 = vpop.trf.xlu0 }
 0x414   : > { %v908_v35 = vadd.f32 %v1114_v32, %v885_v33 }
 0x416   : > { %912 = vst [vmem:[%s1601_s20] sm:$0xff] %v908_v35 }
 0x417   : > { %v886_v36 = vpop.trf.xlu0 }
 0x418   : > { %v909_v37 = vadd.f32 %v1114_v32, %v886_v36 }
 0x41a   : > { %913 = vst [vmem:[%s1601_s20 + $0x8] sm:$0xff] %v909_v37  ;;  %v916_v47 = vmax.f32 %v908_v35, %v909_v37 }
 0x41b   : > { %v887_v38 = vpop.trf.xlu0 }
 0x41c   : > { %v910_v39 = vadd.f32 %v1114_v32, %v887_v38 }
 0x41e   : > { %914 = vst [vmem:[%s1601_s20 + $0x10] sm:$0xff] %v910_v39 }
 0x41f   : > { %v888_v40 = vpop.trf.xlu0 }
 0x420   : > { %v911_v41 = vadd.f32 %v1114_v32, %v888_v40 }
 0x422   : > { %915 = vst [vmem:[%s1601_s20 + $0x18] sm:$0xff] %v911_v41  ;;  %v917_v48 = vmax.f32 %v910_v39, %v911_v41 }
 0x424   : > { %v918_v49 = vmax.f32 %v916_v47, %v917_v48 }
 0x426   : > { %v919_v50 = vrot.slane %v918_v49, 4 }
 0x428   : > { %v920_v51 = vmax.f32 %v918_v49, %v919_v50 }
 0x42a   : > { %v921_v53 = vrot.slane %v920_v51, 2 }
 0x42c   : > { %v922_v54 = vmax.f32 %v920_v51, %v921_v53 }
 0x42e   : > { %v923_v55 = vrot.slane %v922_v54, 1 }
 0x430   : > { %v924_v56 = vmax.f32 %v922_v54, %v923_v55 }
 0x432   : > { %925 = vst [vmem:[%s304_s23] sm:$0x1] %v924_v56 }
 0x433 PF: > { %s18_s24 = sadd.s32 1, %s1454_s24  }
 0x434   : > { %p15_p5 = scmp.ge.s32.totalorder %s18_s24, 4  }
 0x436   :  { %17 = sbr.rel (!%p15_p5) target bundleno = 1 (0x1), region = 108 }

// kernel: dgcnn_forward.15
= control target key start
LH: loop header
LB: loop body
LE: loop exit
PB: predicated region body
PF: predicated region fallthrough
CT: control target
= control target key end

     0   :  { %s506_s9 = smov 0   ;;  %s508_s10 = smov 0   ;;  %s546_s0 = inlined_call_operand.vmem [shape: f32[2,32,128], index: 0, kind: input, shape index: {}]   ;;  %s547_s1 = inlined_call_operand.vmem [shape: f32[2,1,32], index: 1, kind: input, shape index: {}]   ;;  %s548_s2 = inlined_call_operand.vmem [shape: f32[2,32,32], index: 2, kind: output, shape index: {}]  }
   0x1   :  { %s510_s11 = smov 0  }
   0x2 LB: > { %s24_s12 = sadd.s32 1, %s485_s10  ;;  %p399_p0 = scmp.ge.s32.totalorder %s489_s11, 1  ;;  %s489_s11 = sphi %s510_s11, %s12_s11   ;;  %s485_s10 = sphi %s508_s10, %s550_s10   ;;  %s481_s9 = sphi %s506_s9, %s549_s9  }
   0x3   : > { %p26_p1 = scmp.ge.s32.totalorder %s24_s12, 2  ;;  %p139_p2 = scmp.lt.s32.totalorder %s489_s11, 3 }
   0x5   : > { %s552_s12 = smov (%p26_p1, %s24_s12), 0  ;;  %p140_p3 = pnand %p399_p0, %p139_p2 }
   0x6   : > { %p170_p4 = scmp.lt.s32.totalorder (!%p140_p3), %s481_s9, 1  ;;  %vm299_vm0 = vcmask (!%p140_p3), 261120  }
   0x7   : > { %143 = sbr.rel (%p140_p3) target bundleno = 254 (0xfe), region = 28 }
   0xe   : > { %s554_s9 = smov (!%p170_p4, %s481_s9), 1 }
   0xf   : > { %s407_s13 = sshll.u32 %s554_s9, 5  ;;  %s180_s19 = scalar_lea.vmem %s547_s1, %s554_s9 }
  0x10   : > { %s174_s16 = scalar_lea.vmem %s546_s0, %s407_s13  ;;  %v404_v7 = vld [vmem:[%s180_s19] ss:$0 sm:$0xff]  ;;  %s188_s22 = scalar_lea.vmem %s548_s2, %s407_s13 }
  0x11   : > { %v195_v0 = vld [vmem:[%s174_s16] sm:$0xff]  ;;  %v196_v1 = vld [vmem:[%s174_s16 + $0x8] sm:$0xff]  ;;  %v197_v2 = vld [vmem:[%s174_s16 + $0x10] sm:$0xff] }
  0x12   : > { %v431_v3 = vpack.c.bf16 %v196_v1, %v195_v0  ;;  %v198_v4 = vld [vmem:[%s174_s16 + $0x18] sm:$0xff]  ;;  %425 = vmatprep.mubr.f32.mxu0 %v195_v0  ;;  %428 = vmatprep.mubr.f32.mxu1 %v197_v2 }
  0x13   : > { %v435_v5 = vpack.c.bf16 %v198_v4, %v197_v2 }
  0x14   : > { %432 = vmatprep.subr.bf16.mxu0 %v431_v3  ;;  %439 = vmatprep.subr.bf16.mxu1 %v431_v3 }
  0x15   : > { %434 = vmatpush3.bf16.xpose.msra.mxu0 %v431_v3  ;;  %441 = vmatpush3.bf16.xpose.msra.mxu1 %v431_v3 }
  0x16   : > { %436 = vmatprep.subr.bf16.mxu0 %v435_v5  ;;  %440 = vmatprep.subr.bf16.mxu1 %v435_v5 }
  0x1d   : > { %438 = vmatpush3.bf16.xpose.msra.mxu0 %v435_v5  ;;  %442 = vmatpush3.bf16.xpose.msra.mxu1 %v435_v5 }
  0x24   : > { %426 = vmatmul.mubr.f32.vlgmr.msra.gmra.mrb[0].mxu0 %v196_v1  ;;  %429 = vmatmul.mubr.f32.vlgmr.msra.gmra.mrb[0].mxu1 %v198_v4 }
  0xf7   : > { %v427_v6 = vpop.f32.mrb[0].mxu0  ;;  %v430_v8 = vpop.f32.mrb[0].mxu1 }
  0xf8   : > { %v285_v9 = vmul.f32 2.0, %v427_v6  ;;  %v287_v10 = vmul.f32 2.0, %v430_v8  ;;  %v265_v11 = vpop.f32.mrb[1].mxu0  ;;  %v275_v12 = vpop.f32.mrb[1].mxu1 }
  0xf9   : > { %v284_v13 = vmul.f32 2.0, %v265_v11  ;;  %v286_v14 = vmul.f32 2.0, %v275_v12 }
  0xfa   : > { %v296_v15 = vsub.f32 %v285_v9, %v404_v7  ;;  %v298_v16 = vsub.f32 %v287_v10, %v404_v7 }
  0xfb   : > { %v295_v17 = vsub.f32 %v284_v13, %v404_v7  ;;  %v297_v18 = vsub.f32 %v286_v14, %v404_v7 }
  0xfc   : > { %301 = vst.msk [vmem:[%s188_s22 + $0x8] sm:$0xff] %vm299_vm0, %v296_v15  ;;  %303 = vst.msk [vmem:[%s188_s22 + $0x18] sm:$0xff] %vm299_vm0, %v298_v16 }
  0xfd   : > { %300 = vst.msk [vmem:[%s188_s22] sm:$0xff] %vm299_vm0, %v295_v17  ;;  %302 = vst.msk [vmem:[%s188_s22 + $0x10] sm:$0xff] %vm299_vm0, %v297_v18 }
  0xfe PF: > { %s12_s11 = sadd.s32 1, %s489_s11   ;;  %s549_s9 = smov %s485_s10 }
  0xff   : > { %p9_p5 = scmp.ge.s32.totalorder %s12_s11, 4   ;;  %s550_s10 = smov %s552_s12 }
 0x101   :  { %11 = sbr.rel (!%p9_p5) target bundleno = 2 (0x2), region = 62 }

// kernel: dgcnn_forward.17
= control target key start
LH: loop header
LB: loop body
LE: loop exit
PB: predicated region body
PF: predicated region fallthrough
CT: control target
= control target key end

     0   :  { %v889_v1 = vmov 0.0   ;;  %vm890_vm0 = vmmov 0   ;;  %vm90_vm1 = vcmask 523264   ;;  %s1155_s0 = inlined_call_operand.vmem [shape: f32[2,64], index: 0, kind: input, shape index: {}]   ;;  %s1156_s1 = inlined_call_operand.vmem [shape: f32[2,64], index: 1, kind: input, shape index: {}]   ;;  %s1157_s2 = inlined_call_operand.vmem [shape: f32[2,128], index: 2, kind: input, shape index: {}]   ;;  %s1158_s3 = inlined_call_operand.vmem [shape: f32[2,256], index: 3, kind: input, shape index: {}]   ;;  %s1159_s4 = inlined_call_operand.vmem [shape: bf16[64,128], index: 4, kind: input, shape index: {}]   ;;  %s1160_s5 = inlined_call_operand.vmem [shape: bf16[64,128], index: 5, kind: input, shape index: {}]   ;;  %s1161_s6 = inlined_call_operand.vmem [shape: bf16[128,128], index: 6, kind: input, shape index: {}]   ;;  %s1162_s7 = inlined_call_operand.vmem [shape: bf16[256,128], index: 7, kind: input, shape index: {}]   ;;  %s1163_s8 = inlined_call_operand.vmem [shape: f32[1,128], index: 8, kind: input, shape index: {}]   ;;  %s1164_s9 = inlined_call_operand.vmem [shape: f32[1,128], index: 9, kind: input, shape index: {}]   ;;  %s1165_s10 = inlined_call_operand.vmem [shape: f32[1,128], index: 10, kind: input, shape index: {}]   ;;  %s1166_s11 = inlined_call_operand.vmem [shape: bf16[128,40], index: 11, kind: input, shape index: {}]   ;;  %s1167_s12 = inlined_call_operand.vmem [shape: f32[1,40], index: 12, kind: input, shape index: {}]   ;;  %s1168_s13 = inlined_call_operand.hbm [shape: f32[2,40], index: 13, kind: output, shape index: {}]  }
   0x1   :  { %v821_v0 = vld [vmem:[%s1160_s5] sm:$0xff]   ;;  %754 = vmatprep.subr.bf16.mxu1 %v889_v1  ;;  %778 = vmatprep.subr.bf16.mxu0 %v889_v1  ;;  %v823_v3 = vld [vmem:[%s1160_s5 + $0x8] sm:$0xff]   ;;  %v825_v5 = vld [vmem:[%s1160_s5 + $0x10] sm:$0xff]  }
   0x2   :  { %v822_v2 = vld [vmem:[%s1161_s6] sm:$0xff]   ;;  %755 = vmatpush3.bf16.msra.mxu1 %v821_v0  ;;  %762 = vmatprep.mubr.msk.bf16.mxu1 %vm890_vm0, %v889_v1  ;;  %v824_v4 = vld [vmem:[%s1161_s6 + $0x8] sm:$0xff]   ;;  %v826_v6 = vld [vmem:[%s1161_s6 + $0x10] sm:$0xff]  }
   0x3   :  { %779 = vmatpush3.bf16.msra.mxu0 %v822_v2  ;;  %756 = vmatprep.subr.bf16.mxu1 %v889_v1  ;;  %v827_v7 = vld [vmem:[%s1160_s5 + $0x18] sm:$0xff]   ;;  %v56_v8 = vld [vmem:[%s1156_s1] sm:$0x3]  ;;  %v831_v13 = vld [vmem:[%s1159_s4 + $0x8] sm:$0xff]  }
   0x4   :  { %780 = vmatprep.subr.bf16.mxu0 %v889_v1  ;;  %794 = vmatprep.mubr.msk.bf16.mxu0 %vm890_vm0, %v889_v1  ;;  %v828_v9 = vld [vmem:[%s1161_s6 + $0x18] sm:$0xff]   ;;  %v57_v10 = vpack.c.bf16 %v56_v8, %v56_v8  ;;  %v829_v11 = vld [vmem:[%s1159_s4] sm:$0xff]   ;;  %v832_v14 = vld [vmem:[%s1161_s6 + $0x28] sm:$0xff]  }
   0x5   :  { %v830_v12 = vld [vmem:[%s1161_s6 + $0x20] sm:$0xff]   ;;  %v833_v15 = vld [vmem:[%s1159_s4 + $0x10] sm:$0xff]   ;;  %v835_v17 = vld [vmem:[%s1159_s4 + $0x18] sm:$0xff]  }
   0x6   :  { %757 = vmatpush3.bf16.msra.mxu1 %v823_v3  ;;  %v834_v16 = vld [vmem:[%s1161_s6 + $0x30] sm:$0xff]   ;;  %v836_v18 = vld [vmem:[%s1161_s6 + $0x38] sm:$0xff]   ;;  %v46_v19 = vld [vmem:[%s1155_s0] sm:$0x3] }
   0x7   :  { %781 = vmatpush3.bf16.msra.mxu0 %v824_v4  ;;  %758 = vmatprep.subr.bf16.mxu1 %v889_v1  ;;  %v837_v20 = vld [vmem:[%s1162_s7 + $0x40] sm:$0xff]   ;;  %v47_v22 = vpack.c.bf16 %v46_v19, %v46_v19  ;;  %v839_v25 = vld [vmem:[%s1162_s7 + $0x48] sm:$0xff]   ;;  %v841_v27 = vld [vmem:[%s1162_s7 + $0x50] sm:$0xff]  }
   0x8   :  { %782 = vmatprep.subr.bf16.mxu0 %v889_v1  ;;  %v201_v21 = vld [vmem:[%s1157_s2] sm:$0x3]  ;;  %v840_v26 = vld [vmem:[%s1162_s7 + $0x8] sm:$0xff]   ;;  %v842_v30 = vld [vmem:[%s1162_s7 + $0x10] sm:$0xff]  }
   0x9   :  { %v838_v23 = vld [vmem:[%s1162_s7] sm:$0xff]   ;;  %v202_v24 = vpack.c.bf16 %v201_v21, %v201_v21  ;;  %v843_v32 = vld [vmem:[%s1162_s7 + $0x58] sm:$0xff]  }
   0xa   :  { %759 = vmatpush3.bf16.msra.mxu1 %v825_v5  ;;  %v675_v28 = vld.sshfl [vmem:[%s1158_s3] sm:$0x33 pattern:$0x76325410] }
   0xb   :  { %783 = vmatpush3.bf16.msra.mxu0 %v826_v6  ;;  %760 = vmatprep.subr.bf16.mxu1 %v889_v1  ;;  %v317_v29 = vcombine.high %v675_v28, %v675_v28 }
   0xc   :  { %784 = vmatprep.subr.bf16.mxu0 %v889_v1 }
   0xd   :  { %v321_v31 = vpack.c.bf16 %v317_v29, %v317_v29 }
   0xe   :  { %761 = vmatpush3.bf16.msra.mxu1 %v827_v7 }
   0xf   :  { %785 = vmatpush3.bf16.msra.mxu0 %v828_v9  ;;  %766 = vmatprep.subr.bf16.mxu1 %v889_v1 }
  0x10   :  { %786 = vmatprep.subr.bf16.mxu0 %v889_v1 }
  0x11   :  { %763 = vmatmul.mubr.msk.bf16.vlgmr.msra.gmra.mrb[0].mxu1 %vm90_vm1, %v57_v10 }
  0x12   :  { %767 = vmatpush3.bf16.msra.mxu1 %v829_v11  ;;  %774 = vmatprep.mubr.msk.bf16.mxu1 %vm890_vm0, %v889_v1 }
  0x13   :  { %787 = vmatpush3.bf16.msra.mxu0 %v830_v12  ;;  %768 = vmatprep.subr.bf16.mxu1 %v889_v1 }
  0x14   :  { %788 = vmatprep.subr.bf16.mxu0 %v889_v1 }
  0x16   :  { %769 = vmatpush3.bf16.msra.mxu1 %v831_v13 }
  0x17   :  { %789 = vmatpush3.bf16.msra.mxu0 %v832_v14  ;;  %770 = vmatprep.subr.bf16.mxu1 %v889_v1 }
  0x18   :  { %790 = vmatprep.subr.bf16.mxu0 %v889_v1 }
  0x1a   :  { %771 = vmatpush3.bf16.msra.mxu1 %v833_v15 }
  0x1b   :  { %791 = vmatpush3.bf16.msra.mxu0 %v834_v16  ;;  %772 = vmatprep.subr.bf16.mxu1 %v889_v1 }
  0x1c   :  { %792 = vmatprep.subr.bf16.mxu0 %v889_v1 }
  0x1e   :  { %773 = vmatpush3.bf16.msra.mxu1 %v835_v17 }
  0x1f   :  { %793 = vmatpush3.bf16.msra.mxu0 %v836_v18  ;;  %723 = vmatprep.subr.bf16.mxu1 %v837_v20 }
  0x20   :  { %798 = vmatprep.subr.bf16.mxu0 %v889_v1 }
  0x21   :  { %775 = vmatmul.mubr.msk.bf16.vlgmr.msra.gmra.mrb[4].mxu1 %vm90_vm1, %v47_v22 }
  0x22   :  { %724 = vmatpush3.bf16.msra.mxu1 %v838_v23  ;;  %795 = vmatmul.mubr.bf16.vlgmr.msra.gmra.mrb[0].mxu0 %v202_v24 }
  0x23   :  { %725 = vmatprep.subr.bf16.mxu1 %v839_v25  ;;  %814 = vmatprep.mubr.msk.bf16.mxu0 %vm890_vm0, %v889_v1 }
  0x24   :  { %482 = vmatprep.mubr.bf16.mxu1 %v321_v31 }
  0x26   :  { %726 = vmatpush3.bf16.msra.mxu1 %v840_v26 }
  0x27   :  { %727 = vmatprep.subr.bf16.mxu1 %v841_v27 }
  0x28   :  { %18 = vsyncpa [#allocation3], 0  ;;  %v844_v33 = vld [vmem:[%s1162_s7 + $0x18] sm:$0xff]   ;;  %v845_v34 = vld [vmem:[%s1162_s7 + $0x60] sm:$0xff]   ;;  %v320_v42 = vpack.c.bf16 %v675_v28, %v675_v28  ;;  %vm628_vm2 = vcmask 320512  }
  0x29   :  { %v846_v35 = vld [vmem:[%s1162_s7 + $0x20] sm:$0xff]   ;;  %v847_v36 = vld [vmem:[%s1162_s7 + $0x68] sm:$0xff]   ;;  %v849_v38 = vld [vmem:[%s1162_s7 + $0x70] sm:$0xff]  }
  0x2a   :  { %728 = vmatpush3.bf16.msra.mxu1 %v842_v30  ;;  %v848_v37 = vld [vmem:[%s1162_s7 + $0x28] sm:$0xff]   ;;  %v850_v39 = vld [vmem:[%s1162_s7 + $0x30] sm:$0xff]   ;;  %v851_v40 = vld [vmem:[%s1162_s7 + $0x78] sm:$0xff]  }
  0x2b   :  { %729 = vmatprep.subr.bf16.mxu1 %v843_v32  ;;  %v852_v41 = vld [vmem:[%s1162_s7 + $0x38] sm:$0xff]   ;;  %v853_v43 = vld [vmem:[%s1166_s11] sm:$0xff]   ;;  %v854_v44 = vld [vmem:[%s1166_s11 + $0x8] sm:$0xff]  }
  0x2c   :  { %799 = vmatpush3.bf16.msra.mxu0 %v853_v43  ;;  %v855_v45 = vld [vmem:[%s1166_s11 + $0x10] sm:$0xff]   ;;  %v856_v46 = vld [vmem:[%s1166_s11 + $0x18] sm:$0xff]   ;;  %v857_v47 = vld [vmem:[%s1166_s11 + $0x20] sm:$0xff]  }
  0x2d   :  { %800 = vmatprep.subr.bf16.mxu0 %v889_v1  ;;  %v858_v48 = vld [vmem:[%s1166_s11 + $0x28] sm:$0xff]   ;;  %v859_v49 = vld [vmem:[%s1166_s11 + $0x30] sm:$0xff]   ;;  %v860_v50 = vld [vmem:[%s1166_s11 + $0x38] sm:$0xff]  }
  0x2e   :  { %730 = vmatpush3.bf16.msra.mxu1 %v844_v33  ;;  %v693_v8 = vld [vmem:[%s1164_s9] ss:$0 sm:$0xff] }
  0x2f   :  { %731 = vmatprep.subr.bf16.mxu1 %v845_v34  ;;  %v694_v10 = vld [vmem:[%s1165_s10] ss:$0 sm:$0xff] }
  0x30   :  { %801 = vmatpush3.bf16.msra.mxu0 %v854_v44  ;;  %v695_v15 = vld [vmem:[%s1167_s12] ss:$0 sm:$0xff] }
  0x31   :  { %802 = vmatprep.subr.bf16.mxu0 %v889_v1 }
  0x32   :  { %732 = vmatpush3.bf16.msra.mxu1 %v846_v35 }
  0x33   :  { %733 = vmatprep.subr.bf16.mxu1 %v847_v36 }
  0x34   :  { %803 = vmatpush3.bf16.msra.mxu0 %v855_v45 }
  0x35   :  { %804 = vmatprep.subr.bf16.mxu0 %v889_v1 }
  0x36   :  { %734 = vmatpush3.bf16.msra.mxu1 %v848_v37 }
  0x37   :  { %735 = vmatprep.subr.bf16.mxu1 %v849_v38 }
  0x38   :  { %805 = vmatpush3.bf16.msra.mxu0 %v856_v46 }
  0x39   :  { %806 = vmatprep.subr.bf16.mxu0 %v889_v1 }
  0x3a   :  { %736 = vmatpush3.bf16.msra.mxu1 %v850_v39 }
  0x3b   :  { %737 = vmatprep.subr.bf16.mxu1 %v851_v40 }
  0x3c   :  { %807 = vmatpush3.bf16.msra.mxu0 %v857_v47 }
  0x3d   :  { %808 = vmatprep.subr.bf16.mxu0 %v889_v1 }
  0x3e   :  { %738 = vmatpush3.bf16.msra.mxu1 %v852_v41 }
  0x40   :  { %809 = vmatpush3.bf16.msra.mxu0 %v858_v48 }
  0x41   :  { %483 = vmatmul.mubr.bf16.vlgmr.msra.gmra.mrb[8].mxu1 %v320_v42  ;;  %810 = vmatprep.subr.bf16.mxu0 %v889_v1 }
  0x44   :  { %811 = vmatpush3.bf16.msra.mxu0 %v859_v49 }
  0x45   :  { %812 = vmatprep.subr.bf16.mxu0 %v889_v1  ;;  %v692_v1 = vld [vmem:[%s1163_s8] ss:$0 sm:$0xff]  ;;  %s891_s8 = smov [#allocation2]  }
  0x46   :  { %s649_s9 = sshll.u32 %s891_s8, 4  ;;  %s650_s9 = int_to_ptr.vmem [resolvable:$true] %s649_s9 }
  0x47   :  { %s865_s10 = scalar_lea.vmem %s650_s9, 32  ;;  %p870_p1 = scmp.lt.s32.totalorder %s650_s9, %s650_s9 }
  0x48   :  { %813 = vmatpush3.bf16.msra.mxu0 %v860_v50  ;;  %p866_p0 = scmp.ne.s32.totalorder %s650_s9, %s865_s10  ;;  %p871_p2 = scmp.lt.s32.totalorder %s865_s10, %s865_s10 }
  0x4a   :  { %p872_p3 = por %p871_p2, %p870_p1 }
  0x4c   :  { %p873_p4 = pnand %p872_p3, %p866_p0 }
  0xe4   :  { %v128_v51 = vpop.f32.mrb[0].mxu1 }
  0xe5   :  { %v764_v52 = vpop.f32.mrb[1].mxu1 }
  0xe6   :  { %v131_v53 = vpop.f32.mrb[2].mxu1 }
  0xe7   :  { %v765_v54 = vpop.f32.mrb[3].mxu1 }
  0xf4   :  { %v195_v55 = vpop.f32.mrb[4].mxu1 }
  0xf5   :  { %v196_v56 = vadd.f32 %v195_v55, %v128_v51  ;;  %v776_v57 = vpop.f32.mrb[5].mxu1  ;;  %v301_v58 = vpop.f32.mrb[0].mxu0 }
  0xf6   :  { %v198_v59 = vpop.f32.mrb[6].mxu1  ;;  %v796_v60 = vpop.f32.mrb[1].mxu0 }
  0xf7   :  { %v307_v61 = vadd.f32 %v301_v58, %v196_v56  ;;  %v777_v62 = vpop.f32.mrb[7].mxu1  ;;  %v304_v63 = vpop.f32.mrb[2].mxu0 }
  0xf8   :  { %v797_v0 = vpop.f32.mrb[3].mxu0 }
 0x114   :  { %v739_v2 = vpop.f32.mrb[8].mxu1 }
 0x115   :  { %v740_v3 = vpop.f32.mrb[9].mxu1 }
 0x116   :  { %v741_v4 = vadd.f32 %v740_v3, %v739_v2  ;;  %v742_v5 = vpop.f32.mrb[10].mxu1 }
 0x117   :  { %v743_v6 = vpop.f32.mrb[11].mxu1 }
 0x118   :  { %v490_v7 = vadd.f32 %v741_v4, %v307_v61 }
 0x11a   :  { %v498_v9 = vadd.f32 %v692_v1, %v490_v7 }
 0x11c   :  { %v506_v11 = vmul.f32 %v693_v8, %v498_v9 }
 0x11e   :  { %v514_v12 = vadd.f32 %v694_v10, %v506_v11 }
 0x120   :  { %v515_v13 = vmax.f32 %v514_v12, 0.0 }
 0x122   :  { %v516_v14 = vpack.c.bf16 %v515_v13, %v515_v13 }
 0x124   :  { %815 = vmatmul.mubr.bf16.vlgmr.msra.gmra.mrb[4].mxu0 %v516_v14 }
 0x1f7   :  { %v622_v16 = vpop.f32.mrb[4].mxu0 }
 0x1f8   :  { %v623_v17 = vadd.f32 %v695_v15, %v622_v16  ;;  %v816_v18 = vpop.f32.mrb[5].mxu0 }
 0x1f9   :  { %v625_v19 = vpop.f32.mrb[6].mxu0 }
 0x1fa   :  { %v817_v20 = vpop.f32.mrb[7].mxu0  ;;  %v629_v21 = vsel %vm628_vm2, %v623_v17, -inf }
 0x1fb   :  { %630 = vmax.xlane.f32.xlu0 %v629_v21 }
 0x288   :  { %v631_v22 = vpop.xlane.xlu0 %630 }
 0x289   :  { %v632_v23 = vsub.f32 %v623_v17, %v631_v22 }
 0x28b   :  { %v633_v24 = vmul.f32 1.442695, %v632_v23 }
 0x28d   :  { %861 = vpow2.f32 %v633_v24 }
 0x297   :  { %v862_v25 = vpop.eup %861 }
 0x298   :  { %v635_v26 = vsel %vm628_vm2, %v862_v25, 0.0 }
 0x299   :  { %636 = vadd.xlane.f32.xlu0 %v635_v26 }
 0x326   :  { %v637_v27 = vpop.xlane.xlu0 %636 }
 0x327   :  { %863 = vlog2.f32 %v637_v27 }
 0x331   :  { %v864_v28 = vpop.eup %863 }
 0x332   :  { %v639_v29 = vmul.f32 0.6931472, %v864_v28 }
 0x334   :  { %v640_v30 = vadd.f32 %v639_v29, %v631_v22 }
 0x336   :  { %v641_v31 = vsub.f32 %v623_v17, %v640_v30 }
 0x338   :  { %642 = vst.msk [vmem:[#allocation2] sm:$0x3] %vm628_vm2, %v641_v31 }
 0x339   :  { %876 = shalt.err (!%p873_p4)
}
 0x33a   :  { %s877_s30 = scalar_lea.hbm %s1168_s13, 32 }
 0x33b   :  { %p878_p5 = scmp.ne.s32.totalorder %s1168_s13, %s877_s30  ;;  %p881_p6 = scmp.lt.u32.totalorder %s877_s30, %s1168_s13 }
 0x33d   :  { %p883_p7 = pnand %p881_p6, %p878_p5 }
 0x33f   :  { %886 = shalt.err (!%p883_p7)
}
 0x340   :  { %652 = dma.vmem_to_hbm [thread:$0]  %s650_s9, 32, %s1168_s13, [#allocation3]  }
 0x341   :  { %887 = dma.done.wait [#allocation3], 32  }
 0x342   :  { %888 = vsyncadd [#allocation3], 4294967264 }
 0x343   :  { %656 = vsyncpa [#allocation3], 1 }

// kernel: dgcnn_forward.16
= control target key start
LH: loop header
LB: loop body
LE: loop exit
PB: predicated region body
PF: predicated region fallthrough
CT: control target
= control target key end

     0   :  { %s2731_s21 = smov 0   ;;  %s3715_s0 = inlined_call_operand.vmem [shape: f32[2,32,128], index: 0, kind: input, shape index: {}]   ;;  %s3716_s1 = inlined_call_operand.vmem [shape: s32[2,4,32], index: 1, kind: input, shape index: {}]   ;;  %s3717_s2 = inlined_call_operand.vmem [shape: bf16[128,512], index: 2, kind: input, shape index: {}]   ;;  %s3718_s3 = inlined_call_operand.vmem [shape: f32[1,256], index: 3, kind: input, shape index: {}]   ;;  %s3719_s4 = inlined_call_operand.vmem [shape: bf16[256,256], index: 4, kind: input, shape index: {}]   ;;  %s3720_s5 = inlined_call_operand.vmem [shape: f32[1,256], index: 5, kind: input, shape index: {}]   ;;  %s3721_s6 = inlined_call_operand.vmem [shape: f32[2,1,256], index: 6, kind: output, shape index: {}]  }
   0x1 LB: > { %s1730_s22 = sadd.s32 4294967295, %s2559_s21   ;;  %p1734_p0 = scmp.ge.s32.totalorder %s2559_s21, 1  ;;  %s2559_s21 = sphi %s2731_s21, %s16_s21  }
   0x2   : > { %p221_p1 = scmp.lt.s32.totalorder %s2559_s21, 3 }
   0x4   : > { %p222_p2 = pnand %p1734_p0, %p221_p1 }
   0x6   : > { %225 = sbr.rel (%p222_p2) target bundleno = 1227 (0x4cb), region = 44 }
   0xd   : > { %v2373_v0 = vld [vmem:[%s3717_s2 + $0x4] ss:$16 sps:$4 sm:$0xff]   ;;  %p254_p3 = scmp.lt.s32.totalorder %s1730_s22, 1  ;;  %v2375_v1 = vld [vmem:[%s3717_s2] ss:$16 sps:$4 sm:$0xff]   ;;  %v2693_v2 = vmov 0   ;;  %v3722_v39 = vlaneseq }
   0xe   : > { %498 = vmatprep.mubr.bf16.mxu0 %v2693_v2  ;;  %551 = vmatprep.mubr.bf16.mxu1 %v2693_v2  ;;  %v2376_v3 = vld [vmem:[%s3717_s2 + $0x24] ss:$16 sps:$4 sm:$0xff]   ;;  %v2378_v4 = vld [vmem:[%s3717_s2 + $0x20] ss:$16 sps:$4 sm:$0xff]   ;;  %v2397_v10 = vld [vmem:[%s3717_s2 + $0xc] ss:$16 sps:$4 sm:$0xff]  }
   0xf   : > { %466 = vmatprep.subr.bf16.mxu0 %v2373_v0  ;;  %s4035_s22 = smov (!%p254_p3, %s1730_s22), 1  ;;  %v2379_v5 = vld [vmem:[%s3717_s2 + $0x44] ss:$16 sps:$4 sm:$0xff]   ;;  %v2381_v6 = vld [vmem:[%s3717_s2 + $0x40] ss:$16 sps:$4 sm:$0xff]   ;;  %519 = vmatprep.subr.bf16.mxu1 %v2397_v10  ;;  %v2858_v40 = vshrl.u32 %v3722_v39, 7 }
  0x10   : > { %467 = vmatpush1.bf16.msra.mxu0 %v2375_v1  ;;  %s1737_s9 = sshll.u32 %s4035_s22, 2  ;;  %s1738_s13 = sshll.u32 %s4035_s22, 1  ;;  %v2382_v7 = vld [vmem:[%s3717_s2 + $0x64] ss:$16 sps:$4 sm:$0xff]   ;;  %v2384_v8 = vld [vmem:[%s3717_s2 + $0x60] ss:$16 sps:$4 sm:$0xff]  }
  0x11   : > { %468 = vmatprep.subr.bf16.mxu0 %v2376_v3  ;;  %s2762_s12 = scalar_lea.vmem %s3716_s1, %s1737_s9  ;;  %s2771_s18 = scalar_lea.vmem %s3721_s6, %s1738_s13  ;;  %v2385_v9 = vld [vmem:[%s3717_s2 + $0x84] ss:$16 sps:$4 sm:$0xff]   ;;  %v2399_v11 = vld [vmem:[%s3717_s2 + $0x8] ss:$16 sps:$4 sm:$0xff]   ;;  %v2387_v12 = vld [vmem:[%s3717_s2 + $0x80] ss:$16 sps:$4 sm:$0xff]  }
  0x12   : > { %v2400_v13 = vld [vmem:[%s3717_s2 + $0x2c] ss:$16 sps:$4 sm:$0xff]   ;;  %v2388_v14 = vld [vmem:[%s3717_s2 + $0xa4] ss:$16 sps:$4 sm:$0xff]   ;;  %520 = vmatpush1.bf16.msra.mxu1 %v2399_v11  ;;  %v2402_v15 = vld [vmem:[%s3717_s2 + $0x28] ss:$16 sps:$4 sm:$0xff]  }
  0x13   : > { %521 = vmatprep.subr.bf16.mxu1 %v2400_v13  ;;  %v2403_v16 = vld [vmem:[%s3717_s2 + $0x4c] ss:$16 sps:$4 sm:$0xff]   ;;  %v2390_v17 = vld [vmem:[%s3717_s2 + $0xa0] ss:$16 sps:$4 sm:$0xff]   ;;  %v2391_v18 = vld [vmem:[%s3717_s2 + $0xc4] ss:$16 sps:$4 sm:$0xff]  }
  0x14   : > { %469 = vmatpush1.bf16.msra.mxu0 %v2378_v4  ;;  %v2405_v19 = vld [vmem:[%s3717_s2 + $0x48] ss:$16 sps:$4 sm:$0xff]   ;;  %v2406_v20 = vld [vmem:[%s3717_s2 + $0x6c] ss:$16 sps:$4 sm:$0xff]   ;;  %s1826_s29 = sshll.u32 %s4035_s22, 5  ;;  %3787 = vst [vmem:[#allocation2_spill] sm:$0xff] %v2858_v40 }
  0x15   : > { %470 = vmatprep.subr.bf16.mxu0 %v2379_v5  ;;  %v2393_v21 = vld [vmem:[%s3717_s2 + $0xc0] ss:$16 sps:$4 sm:$0xff]   ;;  %v2408_v22 = vld [vmem:[%s3717_s2 + $0x68] ss:$16 sps:$4 sm:$0xff]   ;;  %v2394_v23 = vld [vmem:[%s3717_s2 + $0xe4] ss:$16 sps:$4 sm:$0xff]   ;;  %s258_s15 = scalar_lea.vmem %s3715_s0, %s1826_s29 }
  0x16   : > { %522 = vmatpush1.bf16.msra.mxu1 %v2402_v15  ;;  %v2409_v24 = vld [vmem:[%s3717_s2 + $0x8c] ss:$16 sps:$4 sm:$0xff]   ;;  %v2396_v25 = vld [vmem:[%s3717_s2 + $0xe0] ss:$16 sps:$4 sm:$0xff]   ;;  %v2411_v28 = vld [vmem:[%s3717_s2 + $0x88] ss:$16 sps:$4 sm:$0xff]  }
  0x17   : > { %523 = vmatprep.subr.bf16.mxu1 %v2403_v16  ;;  %v268_v26 = vld [vmem:[%s258_s15] sm:$0xff]  ;;  %v269_v27 = vld [vmem:[%s258_s15 + $0x8] sm:$0xff]  ;;  %v270_v33 = vld [vmem:[%s258_s15 + $0x10] sm:$0xff]  ;;  %v2861_v41 = vadd.s32 8, %v2858_v40  ;;  %v2864_v42 = vadd.s32 16, %v2858_v40  ;;  %v2867_v43 = vadd.s32 24, %v2858_v40 }
  0x18   : > { %471 = vmatpush1.bf16.msra.mxu0 %v2381_v6  ;;  %v2412_v29 = vld [vmem:[%s3717_s2 + $0xac] ss:$16 sps:$4 sm:$0xff]   ;;  %v272_v30 = vpack.c.bf16 %v269_v27, %v268_v26  ;;  %v2414_v31 = vld [vmem:[%s3717_s2 + $0xa8] ss:$16 sps:$4 sm:$0xff]   ;;  %v3723_v44 = vsub.s32 0, %v2858_v40  ;;  %v3724_v46 = vsub.s32 1, %v2858_v40 }
  0x19   : > { %472 = vmatprep.subr.bf16.mxu0 %v2382_v7  ;;  %v2415_v32 = vld [vmem:[%s3717_s2 + $0xcc] ss:$16 sps:$4 sm:$0xff]   ;;  %v2417_v35 = vld [vmem:[%s3717_s2 + $0xc8] ss:$16 sps:$4 sm:$0xff]   ;;  %3788 = vst [vmem:[#allocation3_spill] sm:$0xff] %v2861_v41  ;;  %3789 = vst [vmem:[#allocation4_spill] sm:$0xff] %v2864_v42 }
  0x1a   : > { %524 = vmatpush1.bf16.msra.mxu1 %v2405_v19  ;;  %v271_v34 = vld [vmem:[%s258_s15 + $0x18] sm:$0xff]  ;;  %3790 = vst [vmem:[#allocation5_spill] sm:$0xff] %v2867_v43  ;;  %v572_v45 = vld [vmem:[%s3718_s3] sm:$0x3]  ;;  %v2891_v15 = vld [vmem:[%s3719_s4 + $0x10] sm:$0xff]  ;;  %s3198_s22 = smov 0  }
  0x1b   : > { %525 = vmatprep.subr.bf16.mxu1 %v2406_v20  ;;  %v2418_v36 = vld [vmem:[%s3717_s2 + $0xec] ss:$16 sps:$4 sm:$0xff]   ;;  %v273_v37 = vpack.c.bf16 %v271_v34, %v270_v33  ;;  %v2420_v38 = vld [vmem:[%s3717_s2 + $0xe8] ss:$16 sps:$4 sm:$0xff]   ;;  %v577_v47 = vrot.slane %v572_v45, %v3723_v44  ;;  %v581_v48 = vrot.slane %v572_v45, %v3724_v46  ;;  %v2881_v13 = vld [vmem:[%s3719_s4] sm:$0xff]  ;;  %3793 = vst [vmem:[#allocation8_spill] sm:$0xff] %v2891_v15 }
  0x1c   : > { %473 = vmatpush1.bf16.msra.mxu0 %v2384_v8  ;;  %3791 = vst [vmem:[#allocation6_spill] sm:$0xff] %v2881_v13  ;;  %v2908_v19 = vld [vmem:[%s3719_s4 + $0x28] sm:$0xff]  ;;  %v2940_v26 = vld [vmem:[%s3719_s4 + $0x58] sm:$0xff]  ;;  %v2945_v27 = vld [vmem:[%s3719_s4 + $0x60] sm:$0xff] }
  0x1d   : > { %474 = vmatprep.subr.bf16.mxu0 %v2385_v9  ;;  %3797 = vst [vmem:[#allocation12_spill] sm:$0xff] %v2908_v19  ;;  %3804 = vst [vmem:[#allocation19_spill] sm:$0xff] %v2940_v26  ;;  %v2972_v33 = vld [vmem:[%s3719_s4 + $0x88] sm:$0xff]  ;;  %v2999_v45 = vld [vmem:[%s3719_s4 + $0xb0] sm:$0xff] }
  0x1e   : > { %526 = vmatpush1.bf16.msra.mxu1 %v2408_v22  ;;  %v2920_v22 = vld [vmem:[%s3719_s4 + $0x38] sm:$0xff]  ;;  %3805 = vst [vmem:[#allocation20_spill] sm:$0xff] %v2945_v27  ;;  %3811 = vst [vmem:[#allocation26_spill] sm:$0xff] %v2972_v33 }
  0x1f   : > { %527 = vmatprep.subr.bf16.mxu1 %v2409_v24  ;;  %3800 = vst [vmem:[#allocation15_spill] sm:$0xff] %v2920_v22  ;;  %v2930_v24 = vld [vmem:[%s3719_s4 + $0x48] sm:$0xff]  ;;  %3817 = vst [vmem:[#allocation32_spill] sm:$0xff] %v2999_v45 }
  0x20   : > { %475 = vmatpush1.bf16.msra.mxu0 %v2387_v12  ;;  %3802 = vst [vmem:[#allocation17_spill] sm:$0xff] %v2930_v24 }
  0x21   : > { %476 = vmatprep.subr.bf16.mxu0 %v2388_v14  ;;  %v2886_v14 = vld [vmem:[%s3719_s4 + $0x8] sm:$0xff] }
  0x22   : > { %528 = vmatpush1.bf16.msra.mxu1 %v2411_v28  ;;  %3792 = vst [vmem:[#allocation7_spill] sm:$0xff] %v2886_v14  ;;  %v2950_v28 = vld [vmem:[%s3719_s4 + $0x68] sm:$0xff] }
  0x23   : > { %529 = vmatprep.subr.bf16.mxu1 %v2412_v29  ;;  %3806 = vst [vmem:[#allocation21_spill] sm:$0xff] %v2950_v28  ;;  %v2955_v29 = vld [vmem:[%s3719_s4 + $0x70] sm:$0xff] }
  0x24   : > { %477 = vmatpush1.bf16.msra.mxu0 %v2390_v17  ;;  %v2898_v17 = vld [vmem:[%s3719_s4 + $0x18] sm:$0xff]  ;;  %3807 = vst [vmem:[#allocation22_spill] sm:$0xff] %v2955_v29 }
  0x25   : > { %478 = vmatprep.subr.bf16.mxu0 %v2391_v18  ;;  %3795 = vst [vmem:[#allocation10_spill] sm:$0xff] %v2898_v17  ;;  %v2903_v18 = vld [vmem:[%s3719_s4 + $0x20] sm:$0xff] }
  0x26   : > { %530 = vmatpush1.bf16.msra.mxu1 %v2414_v31  ;;  %3796 = vst [vmem:[#allocation11_spill] sm:$0xff] %v2903_v18  ;;  %v2962_v31 = vld [vmem:[%s3719_s4 + $0x78] sm:$0xff] }
  0x27   : > { %531 = vmatprep.subr.bf16.mxu1 %v2415_v32  ;;  %3809 = vst [vmem:[#allocation24_spill] sm:$0xff] %v2962_v31  ;;  %v2967_v32 = vld [vmem:[%s3719_s4 + $0x80] sm:$0xff] }
  0x28   : > { %479 = vmatpush1.bf16.msra.mxu0 %v2393_v21  ;;  %v2915_v21 = vld [vmem:[%s3719_s4 + $0x30] sm:$0xff]  ;;  %3810 = vst [vmem:[#allocation25_spill] sm:$0xff] %v2967_v32 }
  0x29   : > { %480 = vmatprep.subr.bf16.mxu0 %v2394_v23  ;;  %3799 = vst [vmem:[#allocation14_spill] sm:$0xff] %v2915_v21  ;;  %v2925_v23 = vld [vmem:[%s3719_s4 + $0x40] sm:$0xff] }
  0x2a   : > { %532 = vmatpush1.bf16.msra.mxu1 %v2417_v35  ;;  %3801 = vst [vmem:[#allocation16_spill] sm:$0xff] %v2925_v23  ;;  %v2979_v35 = vld [vmem:[%s3719_s4 + $0x90] sm:$0xff] }
  0x2b   : > { %533 = vmatprep.subr.bf16.mxu1 %v2418_v36  ;;  %3813 = vst [vmem:[#allocation28_spill] sm:$0xff] %v2979_v35  ;;  %v2984_v36 = vld [vmem:[%s3719_s4 + $0x98] sm:$0xff] }
  0x2c   : > { %481 = vmatpush1.bf16.msra.mxu0 %v2396_v25  ;;  %v2935_v25 = vld [vmem:[%s3719_s4 + $0x50] sm:$0xff]  ;;  %3814 = vst [vmem:[#allocation29_spill] sm:$0xff] %v2984_v36 }
  0x2d   : > { %3803 = vst [vmem:[#allocation18_spill] sm:$0xff] %v2935_v25 }
  0x2e   : > { %534 = vmatpush1.bf16.msra.mxu1 %v2420_v38  ;;  %v2994_v38 = vld [vmem:[%s3719_s4 + $0xa8] sm:$0xff] }
  0x2f   : > { %499 = vmatmul.mubr.bf16.vlgmr.msra.gmra.mrb[0].mxu0 %v272_v30  ;;  %3816 = vst [vmem:[#allocation31_spill] sm:$0xff] %v2994_v38 }
  0x30   : > { %508 = vmatprep.mubr.bf16.mxu0 %v2693_v2 }
  0x31   : > { %552 = vmatmul.mubr.bf16.vlgmr.msra.gmra.mrb[0].mxu1 %v272_v30 }
  0x32   : > { %561 = vmatprep.mubr.bf16.mxu1 %v2693_v2 }
  0x37   : > { %509 = vmatmul.mubr.bf16.gmra.mrb[4].mxu0 %v273_v37 }
  0x39   : > { %562 = vmatmul.mubr.bf16.gmra.mrb[4].mxu1 %v273_v37  ;;  %v2989_v37 = vld [vmem:[%s3719_s4 + $0xa0] sm:$0xff] }
  0x3a   : > { %3815 = vst [vmem:[#allocation30_spill] sm:$0xff] %v2989_v37 }
 0x102   : > { %v500_v49 = vpop.f32.mrb[0].mxu0 }
 0x103   : > { %v502_v50 = vpop.f32.mrb[1].mxu0  ;;  %v584_v51 = vadd.f32 %v577_v47, %v500_v49  ;;  %v3014_v49 = vld [vmem:[%s3719_s4 + $0xc8] sm:$0xff] }
 0x104   : > { %v504_v52 = vpop.f32.mrb[2].mxu0  ;;  %v585_v53 = vadd.f32 %v581_v48, %v502_v50  ;;  %v553_v63 = vpop.f32.mrb[0].mxu1  ;;  %3820 = vst [vmem:[#allocation35_spill] sm:$0xff] %v3014_v49  ;;  %v3019_v50 = vld [vmem:[%s3719_s4 + $0xd0] sm:$0xff] }
 0x105   : > { %592 = vxpose.xlu0.b32.start [1/4] (short) %v584_v51, 128  ;;  %v506_v54 = vpop.f32.mrb[3].mxu0  ;;  %v586_v55 = vadd.f32 %v577_v47, %v504_v52  ;;  %v555_v1 = vpop.f32.mrb[1].mxu1  ;;  %3821 = vst [vmem:[#allocation36_spill] sm:$0xff] %v3019_v50  ;;  %v3026_v52 = vld [vmem:[%s3719_s4 + $0xd8] sm:$0xff] }
 0x106   : > { %624 = vxpose.xlu1.b32.start [1/4] (short) %v585_v53, 128  ;;  %v587_v56 = vadd.f32 %v581_v48, %v506_v54  ;;  %v2285_v3 = vpack.i.bf16 %v555_v1, %v553_v63  ;;  %v557_v4 = vpop.f32.mrb[2].mxu1  ;;  %3823 = vst [vmem:[#allocation38_spill] sm:$0xff] %v3026_v52  ;;  %v3031_v53 = vld [vmem:[%s3719_s4 + $0xe0] sm:$0xff]  ;;  %v3036_v54 = vld [vmem:[%s3719_s4 + $0xe8] sm:$0xff] }
 0x107   : > { %v559_v5 = vpop.f32.mrb[3].mxu1  ;;  %3824 = vst [vmem:[#allocation39_spill] sm:$0xff] %v3031_v53  ;;  %3825 = vst [vmem:[#allocation40_spill] sm:$0xff] %v3036_v54 }
 0x108   : > { %v2287_v6 = vpack.i.bf16 %v559_v5, %v557_v4 }
 0x109   : > { %593 = vxpose.xlu0.b32.cont [2/4] (short) %v586_v55, 128 }
 0x10a   : > { %625 = vxpose.xlu1.b32.cont [2/4] (short) %v587_v56, 128  ;;  %v510_v57 = vpop.f32.mrb[4].mxu0  ;;  %v3043_v56 = vld [vmem:[%s3719_s4 + $0xf0] sm:$0xff] }
 0x10b   : > { %v588_v58 = vadd.f32 %v577_v47, %v510_v57  ;;  %v512_v59 = vpop.f32.mrb[5].mxu0  ;;  %3827 = vst [vmem:[#allocation42_spill] sm:$0xff] %v3043_v56  ;;  %v3048_v57 = vld [vmem:[%s3719_s4 + $0xf8] sm:$0xff] }
 0x10c   : > { %v589_v60 = vadd.f32 %v581_v48, %v512_v59  ;;  %v514_v61 = vpop.f32.mrb[6].mxu0  ;;  %v563_v7 = vpop.f32.mrb[4].mxu1  ;;  %3828 = vst [vmem:[#allocation43_spill] sm:$0xff] %v3048_v57 }
 0x10d   : > { %594 = vxpose.xlu0.b32.cont [3/4] (short) %v588_v58, 128  ;;  %v516_v62 = vpop.f32.mrb[7].mxu0  ;;  %v590_v0 = vadd.f32 %v577_v47, %v514_v61  ;;  %v565_v8 = vpop.f32.mrb[5].mxu1  ;;  %v3004_v47 = vld [vmem:[%s3719_s4 + $0xb8] sm:$0xff] }
 0x10e   : > { %626 = vxpose.xlu1.b32.cont [3/4] (short) %v589_v60, 128  ;;  %v591_v2 = vadd.f32 %v581_v48, %v516_v62  ;;  %v2289_v9 = vpack.i.bf16 %v565_v8, %v563_v7  ;;  %v567_v10 = vpop.f32.mrb[6].mxu1  ;;  %3818 = vst [vmem:[#allocation33_spill] sm:$0xff] %v3004_v47  ;;  %v3009_v48 = vld [vmem:[%s3719_s4 + $0xc0] sm:$0xff] }
 0x10f   : > { %v569_v11 = vpop.f32.mrb[7].mxu1  ;;  %3819 = vst [vmem:[#allocation34_spill] sm:$0xff] %v3009_v48 }
 0x110   : > { %v2291_v12 = vpack.i.bf16 %v569_v11, %v567_v10 }
 0x111   : > { %595 = vxpose.xlu0.b32.end [4/4] (short) %v590_v0, 128 }
 0x112   : > { %627 = vxpose.xlu1.b32.end [4/4] (short) %v591_v2, 128 }
 0x142   : > { %2286 = vxpose.xlu0.b32.start [1/4] (short) %v2285_v3, 128 }
 0x146   : > { %2288 = vxpose.xlu0.b32.cont [2/4] (short) %v2287_v6, 128 }
 0x14a   : > { %2290 = vxpose.xlu0.b32.cont [3/4] (short) %v2289_v9, 128 }
 0x14e   : > { %2292 = vxpose.xlu0.b32.end [4/4] (short) %v2291_v12, 128 }
 0x185   : > { %v2893_v16 = vpop.trf.xlu0 }
 0x186   : > { %3794 = vst [vmem:[#allocation9_spill] sm:$0xff] %v2893_v16  ;;  %v2910_v20 = vpop.trf.xlu1 }
 0x187   : > { %3798 = vst [vmem:[#allocation13_spill] sm:$0xff] %v2910_v20  ;;  %v3178_v20 = vmov -inf  }
 0x189   : > { %v2957_v30 = vpop.trf.xlu0 }
 0x18a   : > { %3808 = vst [vmem:[#allocation23_spill] sm:$0xff] %v2957_v30  ;;  %v2974_v34 = vpop.trf.xlu1 }
 0x18b   : > { %3812 = vst [vmem:[#allocation27_spill] sm:$0xff] %v2974_v34  ;;  %v3174_v34 = vmov -inf  }
 0x18d   : > { %v3021_v51 = vpop.trf.xlu0 }
 0x18e   : > { %3822 = vst [vmem:[#allocation37_spill] sm:$0xff] %v3021_v51  ;;  %v3038_v55 = vpop.trf.xlu1 }
 0x18f   : > { %3826 = vst [vmem:[#allocation41_spill] sm:$0xff] %v3038_v55  ;;  %v3180_v55 = vmov -inf  }
 0x191   : > { %v3050_v58 = vpop.trf.xlu0 }
 0x192   : > { %3829 = vst [vmem:[#allocation44_spill] sm:$0xff] %v3050_v58  ;;  %v3052_v59 = vpop.trf.xlu1 }
 0x193   : > { %3830 = vst [vmem:[#allocation45_spill] sm:$0xff] %v3052_v59  ;;  %v3176_v59 = vmov -inf  }
 0x195   : > { %v3054_v60 = vpop.trf.xlu0 }
 0x196   : > { %3831 = vst [vmem:[#allocation46_spill] sm:$0xff] %v3054_v60  ;;  %v3056_v61 = vpop.trf.xlu1 }
 0x197   : > { %3832 = vst [vmem:[#allocation47_spill] sm:$0xff] %v3056_v61  ;;  %v3170_v61 = vmov -inf  }
 0x199   : > { %v3058_v62 = vpop.trf.xlu0 }
 0x19a   : > { %3833 = vst [vmem:[#allocation48_spill] sm:$0xff] %v3058_v62  ;;  %v3060_v63 = vpop.trf.xlu1 }
 0x19b   : > { %3834 = vst [vmem:[#allocation49_spill] sm:$0xff] %v3060_v63  ;;  %v3166_v63 = vmov -inf  }
 0x19d   : > { %v3062_v0 = vpop.trf.xlu0 }
 0x19e   : > { %3835 = vst [vmem:[#allocation50_spill] sm:$0xff] %v3062_v0  ;;  %v3064_v1 = vpop.trf.xlu1 }
 0x19f   : > { %3836 = vst [vmem:[#allocation51_spill] sm:$0xff] %v3064_v1  ;;  %v3172_v1 = vmov -inf  }
 0x1a1   : > { %v3066_v2 = vpop.trf.xlu0 }
 0x1a2   : > { %3837 = vst [vmem:[#allocation52_spill] sm:$0xff] %v3066_v2  ;;  %v3068_v3 = vpop.trf.xlu1 }
 0x1a3   : > { %3838 = vst [vmem:[#allocation53_spill] sm:$0xff] %v3068_v3  ;;  %v3168_v3 = vmov -inf  }
 0x1a5   : > { %v3070_v4 = vpop.trf.xlu0 }
 0x1a6   : > { %3839 = vst [vmem:[#allocation54_spill] sm:$0xff] %v3070_v4  ;;  %v3072_v5 = vpop.trf.xlu1  ;;  %v3194_v4 = vmov -inf  }
 0x1a7   : > { %3840 = vst [vmem:[#allocation55_spill] sm:$0xff] %v3072_v5  ;;  %v3162_v5 = vmov -inf  }
 0x1a9   : > { %v3074_v6 = vpop.trf.xlu0 }
 0x1aa   : > { %3841 = vst [vmem:[#allocation56_spill] sm:$0xff] %v3074_v6  ;;  %v3076_v7 = vpop.trf.xlu1  ;;  %v3190_v6 = vmov -inf  }
 0x1ab   : > { %3842 = vst [vmem:[#allocation57_spill] sm:$0xff] %v3076_v7 }
 0x1ad   : > { %v3078_v8 = vpop.trf.xlu0 }
 0x1ae   : > { %3843 = vst [vmem:[#allocation58_spill] sm:$0xff] %v3078_v8  ;;  %v3080_v9 = vpop.trf.xlu1  ;;  %v3196_v8 = vmov -inf  }
 0x1af   : > { %3844 = vst [vmem:[#allocation59_spill] sm:$0xff] %v3080_v9  ;;  %v3164_v9 = vmov -inf  }
 0x1b1   : > { %v3082_v10 = vpop.trf.xlu0 }
 0x1b2   : > { %3845 = vst [vmem:[#allocation60_spill] sm:$0xff] %v3082_v10  ;;  %v3084_v11 = vpop.trf.xlu1  ;;  %v3192_v10 = vmov -inf  }
 0x1b3   : > { %3846 = vst [vmem:[#allocation61_spill] sm:$0xff] %v3084_v11 }
 0x1b5   : > { %v3086_v12 = vpop.trf.xlu0 }
 0x1b6   : > { %3847 = vst [vmem:[#allocation62_spill] sm:$0xff] %v3086_v12  ;;  %v3088_v39 = vpop.trf.xlu1  ;;  %v3186_v12 = vmov -inf  }
 0x1b7   : > { %3848 = vst [vmem:[#allocation63_spill] sm:$0xff] %v3088_v39 }
 0x1b9   : > { %v3090_v44 = vpop.trf.xlu0 }
 0x1ba   : > { %3849 = vst [vmem:[#allocation64_spill] sm:$0xff] %v3090_v44  ;;  %v3092_v46 = vpop.trf.xlu1  ;;  %v3182_v44 = vmov -inf  }
 0x1bb   : > { %3850 = vst [vmem:[#allocation65_spill] sm:$0xff] %v3092_v46 }
 0x1bd   : > { %v3094_v56 = vpop.trf.xlu0 }
 0x1be   : > { %3851 = vst [vmem:[#allocation66_spill] sm:$0xff] %v3094_v56  ;;  %v3096_v57 = vpop.trf.xlu1  ;;  %v3188_v56 = vmov -inf  }
 0x1bf   : > { %3852 = vst [vmem:[#allocation67_spill] sm:$0xff] %v3096_v57 }
 0x1c1   : > { %v3098_v53 = vpop.trf.xlu0 }
 0x1c2   : > { %3853 = vst [vmem:[#allocation68_spill] sm:$0xff] %v3098_v53  ;;  %v3100_v54 = vpop.trf.xlu1  ;;  %v3184_v53 = vmov -inf  }
 0x1c3   : > { %3854 = vst [vmem:[#allocation69_spill] sm:$0xff] %v3100_v54 }
 0x1c5   : > { %v2293_v50 = vpop.trf.xlu0 }
 0x1c6   : > { %v2297_v52 = vunpack.i.h.bf16 %v2293_v50  ;;  %v2294_v48 = vunpack.i.l.bf16 %v2293_v50 }
 0x1c9   : > { %v2298_v49 = vpop.trf.xlu0 }
 0x1ca   : > { %v2302_v45 = vunpack.i.h.bf16 %v2298_v49  ;;  %v2299_v47 = vunpack.i.l.bf16 %v2298_v49 }
 0x1cc   : > { %v3102_v37 = vpack.c.bf16 %v2299_v47, %v2294_v48  ;;  %v3104_v38 = vpack.c.bf16 %v2302_v45, %v2297_v52 }
 0x1cd   : > { %v2303_v23 = vpop.trf.xlu0 }
 0x1ce   : > { %3855 = vst [vmem:[#allocation70_spill] sm:$0xff] %v3102_v37  ;;  %3856 = vst [vmem:[#allocation71_spill] sm:$0xff] %v3104_v38  ;;  %v2307_v24 = vunpack.i.h.bf16 %v2303_v23  ;;  %v2304_v35 = vunpack.i.l.bf16 %v2303_v23 }
 0x1d1   : > { %v2308_v36 = vpop.trf.xlu0 }
 0x1d2   : > { %v2312_v21 = vunpack.i.h.bf16 %v2308_v36  ;;  %v2309_v22 = vunpack.i.l.bf16 %v2308_v36 }
 0x1d4   : > { %v3106_v32 = vpack.c.bf16 %v2309_v22, %v2304_v35  ;;  %v3108_v33 = vpack.c.bf16 %v2312_v21, %v2307_v24 }
 0x1d5   : > { %v2313_v18 = vpop.trf.xlu0 }
 0x1d6   : > { %3857 = vst [vmem:[#allocation72_spill] sm:$0xff] %v3106_v32  ;;  %3858 = vst [vmem:[#allocation73_spill] sm:$0xff] %v3108_v33  ;;  %v2317_v19 = vunpack.i.h.bf16 %v2313_v18  ;;  %v2314_v50 = vunpack.i.l.bf16 %v2313_v18 }
 0x1d9   : > { %v2318_v29 = vpop.trf.xlu0 }
 0x1da   : > { %v2322_v31 = vunpack.i.h.bf16 %v2318_v29  ;;  %v2319_v49 = vunpack.i.l.bf16 %v2318_v29 }
 0x1dc   : > { %v3110_v47 = vpack.c.bf16 %v2319_v49, %v2314_v50  ;;  %v3112_v45 = vpack.c.bf16 %v2322_v31, %v2317_v19 }
 0x1dd   : > { %v2323_v48 = vpop.trf.xlu0 }
 0x1de   : > { %3859 = vst [vmem:[#allocation74_spill] sm:$0xff] %v3110_v47  ;;  %3860 = vst [vmem:[#allocation75_spill] sm:$0xff] %v3112_v45  ;;  %v2327_v52 = vunpack.i.h.bf16 %v2323_v48  ;;  %v2324_v23 = vunpack.i.l.bf16 %v2323_v48 }
 0x1e1   : > { %v2328_v15 = vpop.trf.xlu0 }
 0x1e2   : > { %v2332_v17 = vunpack.i.h.bf16 %v2328_v15  ;;  %v2329_v36 = vunpack.i.l.bf16 %v2328_v15 }
 0x1e4   : > { %v3114_v22 = vpack.c.bf16 %v2329_v36, %v2324_v23  ;;  %v3116_v21 = vpack.c.bf16 %v2332_v17, %v2327_v52 }
 0x1e5   : > { %v2333_v24 = vpop.trf.xlu0 }
 0x1e6   : > { %3861 = vst [vmem:[#allocation76_spill] sm:$0xff] %v3114_v22  ;;  %3862 = vst [vmem:[#allocation77_spill] sm:$0xff] %v3116_v21  ;;  %v2337_v35 = vunpack.i.h.bf16 %v2333_v24  ;;  %v2334_v18 = vunpack.i.l.bf16 %v2333_v24 }
 0x1e9   : > { %v2338_v27 = vpop.trf.xlu0 }
 0x1ea   : > { %v2342_v28 = vunpack.i.h.bf16 %v2338_v27  ;;  %v2339_v29 = vunpack.i.l.bf16 %v2338_v27 }
 0x1ec   : > { %v3118_v50 = vpack.c.bf16 %v2339_v29, %v2334_v18  ;;  %v3120_v19 = vpack.c.bf16 %v2342_v28, %v2337_v35 }
 0x1ed   : > { %v2343_v31 = vpop.trf.xlu0 }
 0x1ee   : > { %3863 = vst [vmem:[#allocation78_spill] sm:$0xff] %v3118_v50  ;;  %3864 = vst [vmem:[#allocation79_spill] sm:$0xff] %v3120_v19  ;;  %v2347_v49 = vunpack.i.h.bf16 %v2343_v31  ;;  %v2344_v48 = vunpack.i.l.bf16 %v2343_v31 }
 0x1f1   : > { %v2348_v46 = vpop.trf.xlu0 }
 0x1f2   : > { %v2352_v54 = vunpack.i.h.bf16 %v2348_v46  ;;  %v2349_v15 = vunpack.i.l.bf16 %v2348_v46 }
 0x1f4   : > { %v3122_v23 = vpack.c.bf16 %v2349_v15, %v2344_v48  ;;  %v3124_v17 = vpack.c.bf16 %v2352_v54, %v2347_v49  ;;  %v3134_v49 = vmov -inf   ;;  %v3136_v15 = vmov -inf  }
 0x1f5   : > { %v2353_v52 = vpop.trf.xlu0 }
 0x1f6   : > { %3865 = vst [vmem:[#allocation80_spill] sm:$0xff] %v3122_v23  ;;  %3866 = vst [vmem:[#allocation81_spill] sm:$0xff] %v3124_v17  ;;  %v2357_v36 = vunpack.i.h.bf16 %v2353_v52  ;;  %v2354_v24 = vunpack.i.l.bf16 %v2353_v52  ;;  %v3138_v52 = vmov -inf  }
 0x1f9   : > { %v2358_v39 = vpop.trf.xlu0 }
 0x1fa   : > { %v2362_v57 = vunpack.i.h.bf16 %v2358_v39  ;;  %v2359_v27 = vunpack.i.l.bf16 %v2358_v39  ;;  %v3140_v39 = vmov -inf  }
 0x1fc   : > { %v3126_v18 = vpack.c.bf16 %v2359_v27, %v2354_v24  ;;  %v3128_v28 = vpack.c.bf16 %v2362_v57, %v2357_v36  ;;  %v3142_v57 = vmov -inf   ;;  %v3144_v36 = vmov -inf  }
 0x1fd   : > { %v2363_v35 = vpop.trf.xlu0  ;;  %v3146_v24 = vmov -inf   ;;  %v3148_v27 = vmov -inf  }
 0x1fe   : > { %3867 = vst [vmem:[#allocation82_spill] sm:$0xff] %v3126_v18  ;;  %3868 = vst [vmem:[#allocation83_spill] sm:$0xff] %v3128_v28  ;;  %v2367_v29 = vunpack.i.h.bf16 %v2363_v35  ;;  %v2364_v31 = vunpack.i.l.bf16 %v2363_v35  ;;  %v3154_v35 = vmov -inf  }
 0x201   : > { %v2368_v7 = vpop.trf.xlu0 }
 0x202   : > { %v2372_v11 = vunpack.i.h.bf16 %v2368_v7  ;;  %v2369_v46 = vunpack.i.l.bf16 %v2368_v7  ;;  %v3150_v7 = vmov -inf  }
 0x204   : > { %v3130_v48 = vpack.c.bf16 %v2369_v46, %v2364_v31  ;;  %v3132_v54 = vpack.c.bf16 %v2372_v11, %v2367_v29  ;;  %v3152_v11 = vmov -inf   ;;  %v3156_v29 = vmov -inf  }
 0x205   : > { %v3158_v31 = vmov -inf   ;;  %v3160_v46 = vmov -inf  }
 0x206   : > { %3869 = vst [vmem:[#allocation84_spill] sm:$0xff] %v3130_v48  ;;  %3870 = vst [vmem:[#allocation85_spill] sm:$0xff] %v3132_v54 }
 0x207 LB: >> { %v3871_v26 = vld [vmem:[#allocation19_spill] sm:$0xff]  ;;  %v3872_v25 = vld [vmem:[#allocation18_spill] sm:$0xff]  ;;  %3875 = vst [vmem:[#allocation86_spill] sm:$0xff] %v2563_v49  ;;  %3876 = vst [vmem:[#allocation87_spill] sm:$0xff] %v2567_v15  ;;  %vm827_vm0 = vcmask 261120   ;;  %s811_s16 = scalar_lea.vmem %s2762_s12, %s2691_s22  ;;  %s778_s17 = sadd.s32 1, %s2691_s22   ;;  %v2575_v39 = vphi %v3140_v39, %v4000_v39   ;;  %v2571_v52 = vphi %v3138_v52, %v3999_v52   ;;  %v2567_v15 = vphi %v3136_v15, %v3998_v15   ;;  %v2563_v49 = vphi %v3134_v49, %v3997_v49   ;;  %s2691_s22 = sphi %s3198_s22, %s4029_s22   ;;  %v2687_v8 = vphi %v3196_v8, %v4028_v8   ;;  %v2683_v4 = vphi %v3194_v4, %v4027_v4   ;;  %v2679_v10 = vphi %v3192_v10, %v4026_v10   ;;  %v2675_v6 = vphi %v3190_v6, %v4025_v6   ;;  %v2671_v56 = vphi %v3188_v56, %v4024_v56   ;;  %v2667_v12 = vphi %v3186_v12, %v4023_v12   ;;  %v2663_v53 = vphi %v3184_v53, %v4022_v53   ;;  %v2659_v44 = vphi %v3182_v44, %v4021_v44   ;;  %v2655_v55 = vphi %v3180_v55, %v4020_v55   ;;  %v2651_v20 = vphi %v3178_v20, %v4019_v20   ;;  %v2647_v59 = vphi %v3176_v59, %v4018_v59   ;;  %v2643_v34 = vphi %v3174_v34, %v4017_v34   ;;  %v2639_v1 = vphi %v3172_v1, %v4016_v1   ;;  %v2635_v61 = vphi %v3170_v61, %v4015_v61   ;;  %v2631_v3 = vphi %v3168_v3, %v4014_v3   ;;  %v2627_v63 = vphi %v3166_v63, %v4013_v63   ;;  %v2623_v9 = vphi %v3164_v9, %v4012_v9   ;;  %v2619_v5 = vphi %v3162_v5, %v4011_v5   ;;  %v2615_v46 = vphi %v3160_v46, %v4010_v46   ;;  %v2611_v31 = vphi %v3158_v31, %v4009_v31   ;;  %v2607_v29 = vphi %v3156_v29, %v4008_v29   ;;  %v2603_v35 = vphi %v3154_v35, %v4007_v35   ;;  %v2599_v11 = vphi %v3152_v11, %v4006_v11   ;;  %v2595_v7 = vphi %v3150_v7, %v4005_v7   ;;  %v2591_v27 = vphi %v3148_v27, %v4004_v27   ;;  %v2587_v24 = vphi %v3146_v24, %v4003_v24   ;;  %v2583_v36 = vphi %v3144_v36, %v4002_v36   ;;  %v2579_v57 = vphi %v3142_v57, %v4001_v57  }
 0x208   : >> { %v3873_v14 = vld [vmem:[#allocation7_spill] sm:$0xff]  ;;  %v3874_v13 = vld [vmem:[#allocation6_spill] sm:$0xff]  ;;  %3877 = vst [vmem:[#allocation88_spill] sm:$0xff] %v2571_v52  ;;  %v3881_v42 = vld [vmem:[#allocation4_spill] sm:$0xff]  ;;  %v2694_v15 = vmov 1.0|1.0   ;;  %s4029_s22 = smov %s778_s17 }
 0x209   : >> { %v3878_v37 = vld [vmem:[#allocation70_spill] sm:$0xff]  ;;  %v3880_v41 = vld [vmem:[#allocation3_spill] sm:$0xff]  ;;  %v3882_v43 = vld [vmem:[#allocation5_spill] sm:$0xff]  ;;  %p3564_p4 = scmp.ge.s32.totalorder %s778_s17, 4  }
 0x20a   : >> { %1961 = vmatprep.mubr.msk.bf16.mxu0 %vm827_vm0, %v3878_v37  ;;  %v1771_v49 = vld [vmem:[%s811_s16] ss:$0 sm:$0xff]  ;;  %v3883_v32 = vld [vmem:[#allocation72_spill] sm:$0xff]  ;;  %v3890_v38 = vld [vmem:[#allocation71_spill] sm:$0xff] }
 0x20b   : >> { %v3879_v40 = vld [vmem:[#allocation2_spill] sm:$0xff]  ;;  %vm818_vm2 = vcmp.eq.s32.totalorder %v3880_v41, %v1771_v49  ;;  %vm819_vm3 = vcmp.eq.s32.totalorder %v3881_v42, %v1771_v49  ;;  %vm820_vm4 = vcmp.eq.s32.totalorder %v3882_v43, %v1771_v49  ;;  %v3885_v22 = vld [vmem:[#allocation76_spill] sm:$0xff]  ;;  %v3891_v33 = vld [vmem:[#allocation73_spill] sm:$0xff] }
 0x20c   : >> { %vm817_vm1 = vcmp.eq.s32.totalorder %v3879_v40, %v1771_v49  ;;  %vm1774_vm6 = vmpackc.low %vm820_vm4, %vm819_vm3  ;;  %v3884_v47 = vld [vmem:[#allocation74_spill] sm:$0xff]  ;;  %v3887_v23 = vld [vmem:[#allocation80_spill] sm:$0xff]  ;;  %v1803_v49 = vcombine.high %v3872_v25, %v3871_v26 }
 0x20d   : >> { %vm1772_vm5 = vmpackc.low %vm818_vm2, %vm817_vm1  ;;  %v3886_v50 = vld [vmem:[#allocation78_spill] sm:$0xff]  ;;  %v3889_v48 = vld [vmem:[#allocation84_spill] sm:$0xff] }
 0x20e   : >> { %1957 = vmatprep.subr.msk.bf16.mxu0 %vm1772_vm5, %v2694_v15  ;;  %v3888_v18 = vld [vmem:[#allocation82_spill] sm:$0xff]  ;;  %v3892_v45 = vld [vmem:[#allocation75_spill] sm:$0xff]  ;;  %v3893_v21 = vld [vmem:[#allocation77_spill] sm:$0xff]  ;;  %1317 = vmatprep.mubr.bf16.mxu1 %v1803_v49 }
 0x20f   : >> { %1958 = vmatpush3.bf16.msk.msra.mxu0 %vm1772_vm5, %v2694_v15  ;;  %v3894_v19 = vld [vmem:[#allocation79_spill] sm:$0xff]  ;;  %v3895_v17 = vld [vmem:[#allocation81_spill] sm:$0xff]  ;;  %v3900_v58 = vld [vmem:[#allocation44_spill] sm:$0xff] }
 0x210   : >> { %1959 = vmatprep.subr.msk.bf16.mxu0 %vm1774_vm6, %v2694_v15  ;;  %v3896_v28 = vld [vmem:[#allocation83_spill] sm:$0xff]  ;;  %v3897_v54 = vld [vmem:[#allocation85_spill] sm:$0xff]  ;;  %v3902_v0 = vld [vmem:[#allocation50_spill] sm:$0xff] }
 0x211   : >> { %v3898_v51 = vld [vmem:[#allocation37_spill] sm:$0xff]  ;;  %v3901_v30 = vld [vmem:[#allocation23_spill] sm:$0xff]  ;;  %v3903_v60 = vld [vmem:[#allocation46_spill] sm:$0xff] }
 0x212   : >> { %v3899_v16 = vld [vmem:[#allocation9_spill] sm:$0xff]  ;;  %v3904_v2 = vld [vmem:[#allocation52_spill] sm:$0xff] }
 0x213   : >> { %1960 = vmatpush3.bf16.msk.msra.mxu0 %vm1774_vm6, %v2694_v15  ;;  %v1793_v15 = vcombine.high %v3874_v13, %v3873_v14  ;;  %v3905_v62 = vld [vmem:[#allocation48_spill] sm:$0xff] }
 0x216   : >> { %1962 = vmatmul.mubr.msk.bf16.vlgmr.msra.gmra.mrb[0].mxu0 %vm827_vm0, %v3883_v32 }
 0x217   : >> { %1965 = vmatprep.mubr.msk.bf16.mxu0 %vm827_vm0, %v3884_v47 }
 0x21e   : >> { %1966 = vmatmul.mubr.msk.bf16.gmra.mrb[4].mxu0 %vm827_vm0, %v3885_v22 }
 0x21f   : >> { %1969 = vmatprep.mubr.msk.bf16.mxu0 %vm827_vm0, %v3886_v50  ;;  %v3909_v50 = vld [vmem:[#allocation56_spill] sm:$0xff] }
 0x226   : >> { %1970 = vmatmul.mubr.msk.bf16.gmra.mrb[8].mxu0 %vm827_vm0, %v3887_v23 }
 0x227   : >> { %1973 = vmatprep.mubr.msk.bf16.mxu0 %vm827_vm0, %v3888_v18 }
 0x22e   : >> { %1974 = vmatmul.mubr.msk.bf16.gmra.mrb[12].mxu0 %vm827_vm0, %v3889_v48  ;;  %v3908_v48 = vld [vmem:[#allocation60_spill] sm:$0xff] }
 0x22f   : >> { %1977 = vmatprep.mubr.msk.bf16.mxu0 %vm827_vm0, %v3890_v38 }
 0x236   : >> { %1978 = vmatmul.mubr.msk.bf16.gmra.mrb[16].mxu0 %vm827_vm0, %v3891_v33 }
 0x237   : >> { %1981 = vmatprep.mubr.msk.bf16.mxu0 %vm827_vm0, %v3892_v45 }
 0x23e   : >> { %1982 = vmatmul.mubr.msk.bf16.gmra.mrb[20].mxu0 %vm827_vm0, %v3893_v21 }
 0x23f   : >> { %1985 = vmatprep.mubr.msk.bf16.mxu0 %vm827_vm0, %v3894_v19 }
 0x246   : >> { %1986 = vmatmul.mubr.msk.bf16.gmra.mrb[24].mxu0 %vm827_vm0, %v3895_v17 }
 0x247   : >> { %1989 = vmatprep.mubr.msk.bf16.mxu0 %vm827_vm0, %v3896_v28 }
 0x24e   : >> { %1990 = vmatmul.mubr.msk.bf16.gmra.mrb[28].mxu0 %vm827_vm0, %v3897_v54  ;;  %v3912_v54 = vld [vmem:[#allocation68_spill] sm:$0xff] }
 0x24f   : >> { %1277 = vmatprep.mubr.bf16.mxu0 %v1793_v15 }
 0x2e9   : >> { %v1963_v18 = vpop.f32.mrb[0].mxu0 }
 0x2ea   : >> { %v919_v19 = vadd.f32 %v1963_v18, %v3898_v51  ;;  %v910_v21 = vpop.f32.mrb[1].mxu0  ;;  %v3911_v51 = vld [vmem:[#allocation62_spill] sm:$0xff] }
 0x2eb   : >> { %v911_v17 = vadd.f32 %v910_v21, %v3899_v16  ;;  %v1964_v22 = vpop.f32.mrb[2].mxu0 }
 0x2ec   : >> { %v922_v23 = vadd.f32 %v1964_v22, %v3900_v58  ;;  %v913_v28 = vpop.f32.mrb[3].mxu0  ;;  %v1039_v33 = vmax.f32 %v919_v19, 0.0  ;;  %v3913_v58 = vld [vmem:[#allocation64_spill] sm:$0xff] }
 0x2ed   : >> { %v914_v32 = vadd.f32 %v913_v28, %v3901_v30  ;;  %v1037_v38 = vmax.f32 %v911_v17, 0.0  ;;  %v3907_v30 = vld [vmem:[#allocation54_spill] sm:$0xff] }
 0x2ee   : >> { %v1040_v37 = vmax.f32 %v922_v23, 0.0 }
 0x2ef   : >> { %v1038_v49 = vmax.f32 %v914_v32, 0.0 }
 0x2f0   : >> { %v3345_v41 = vpack.c.bf16 %v1040_v37, %v1039_v33 }
 0x2f1   : >> { %v3347_v42 = vpack.c.bf16 %v1038_v49, %v1037_v38  ;;  %v1967_v15 = vpop.f32.mrb[4].mxu0  ;;  %v3906_v49 = vld [vmem:[#allocation58_spill] sm:$0xff] }
 0x2f2   : >> { %v935_v18 = vadd.f32 %v1967_v15, %v3902_v0  ;;  %v926_v43 = vpop.f32.mrb[5].mxu0 }
 0x2f3   : >> { %v927_v21 = vadd.f32 %v926_v43, %v3903_v60  ;;  %v1968_v16 = vpop.f32.mrb[6].mxu0  ;;  %v3916_v60 = vld [vmem:[#allocation45_spill] sm:$0xff] }
 0x2f4   : >> { %v938_v22 = vadd.f32 %v1968_v16, %v3904_v2  ;;  %v929_v45 = vpop.f32.mrb[7].mxu0  ;;  %v1043_v19 = vmax.f32 %v935_v18, 0.0 }
 0x2f5   : >> { %v930_v28 = vadd.f32 %v929_v45, %v3905_v62  ;;  %v1041_v17 = vmax.f32 %v927_v21, 0.0  ;;  %v3917_v62 = vld [vmem:[#allocation27_spill] sm:$0xff] }
 0x2f6   : >> { %v1044_v23 = vmax.f32 %v938_v22, 0.0 }
 0x2f7   : >> { %v1042_v32 = vmax.f32 %v930_v28, 0.0 }
 0x2f8   : >> { %v3353_v33 = vpack.c.bf16 %v1044_v23, %v1043_v19 }
 0x2f9   : >> { %v3355_v37 = vpack.c.bf16 %v1042_v32, %v1041_v17  ;;  %v1971_v38 = vpop.f32.mrb[8].mxu0  ;;  %v3910_v32 = vld [vmem:[#allocation66_spill] sm:$0xff] }
 0x2fa   : >> { %v951_v15 = vadd.f32 %v1971_v38, %v3906_v49  ;;  %v942_v0 = vpop.f32.mrb[9].mxu0 }
 0x2fb   : >> { %v943_v43 = vadd.f32 %v942_v0, %v3907_v30  ;;  %v1972_v47 = vpop.f32.mrb[10].mxu0 }
 0x2fc   : >> { %v954_v16 = vadd.f32 %v1972_v47, %v3908_v48  ;;  %v945_v2 = vpop.f32.mrb[11].mxu0  ;;  %v1047_v18 = vmax.f32 %v951_v15, 0.0 }
 0x2fd   : >> { %v946_v45 = vadd.f32 %v945_v2, %v3909_v50  ;;  %v1045_v21 = vmax.f32 %v943_v43, 0.0 }
 0x2fe   : >> { %v1048_v22 = vmax.f32 %v954_v16, 0.0 }
 0x2ff   : >> { %v1046_v28 = vmax.f32 %v946_v45, 0.0 }
 0x300   : >> { %v3361_v19 = vpack.c.bf16 %v1048_v22, %v1047_v18 }
 0x301   : >> { %v3363_v23 = vpack.c.bf16 %v1046_v28, %v1045_v21  ;;  %v1975_v17 = vpop.f32.mrb[12].mxu0  ;;  %v3914_v21 = vld [vmem:[#allocation41_spill] sm:$0xff] }
 0x302   : >> { %v967_v38 = vadd.f32 %v1975_v17, %v3910_v32  ;;  %v958_v49 = vpop.f32.mrb[13].mxu0  ;;  %v3915_v32 = vld [vmem:[#allocation13_spill] sm:$0xff] }
 0x303   : >> { %v959_v30 = vadd.f32 %v958_v49, %v3911_v51  ;;  %v1976_v0 = vpop.f32.mrb[14].mxu0 }
 0x304   : >> { %v970_v47 = vadd.f32 %v1976_v0, %v3912_v54  ;;  %v961_v48 = vpop.f32.mrb[15].mxu0  ;;  %v1051_v50 = vmax.f32 %v967_v38, 0.0 }
 0x305   : >> { %v962_v2 = vadd.f32 %v961_v48, %v3913_v58  ;;  %v1049_v43 = vmax.f32 %v959_v30, 0.0 }
 0x306   : >> { %v1052_v15 = vmax.f32 %v970_v47, 0.0 }
 0x307   : >> { %v1050_v16 = vmax.f32 %v962_v2, 0.0 }
 0x308   : >> { %v3369_v45 = vpack.c.bf16 %v1052_v15, %v1051_v50 }
 0x309   : >> { %v3371_v18 = vpack.c.bf16 %v1050_v16, %v1049_v43  ;;  %v1979_v22 = vpop.f32.mrb[16].mxu0  ;;  %v3918_v43 = vld [vmem:[#allocation51_spill] sm:$0xff] }
 0x30a   : >> { %v983_v28 = vadd.f32 %v1979_v22, %v3914_v21  ;;  %v974_v17 = vpop.f32.mrb[17].mxu0  ;;  %v3919_v22 = vld [vmem:[#allocation47_spill] sm:$0xff] }
 0x30b   : >> { %v975_v51 = vadd.f32 %v974_v17, %v3915_v32  ;;  %v1980_v49 = vpop.f32.mrb[18].mxu0  ;;  %v3920_v17 = vld [vmem:[#allocation53_spill] sm:$0xff] }
 0x30c   : >> { %v986_v54 = vadd.f32 %v1980_v49, %v3916_v60  ;;  %v977_v0 = vpop.f32.mrb[19].mxu0  ;;  %v1055_v38 = vmax.f32 %v983_v28, 0.0 }
 0x30d   : >> { %v978_v58 = vadd.f32 %v977_v0, %v3917_v62  ;;  %v1053_v30 = vmax.f32 %v975_v51, 0.0  ;;  %v3921_v62 = vld [vmem:[#allocation49_spill] sm:$0xff] }
 0x30e   : >> { %v1056_v47 = vmax.f32 %v986_v54, 0.0 }
 0x30f   : >> { %v1054_v48 = vmax.f32 %v978_v58, 0.0 }
 0x310   : >> { %v1078_v2 = vpack.c.bf16 %v1056_v47, %v1055_v38  ;;  %v3922_v38 = vld [vmem:[#allocation59_spill] sm:$0xff] }
 0x311   : >> { %v1077_v50 = vpack.c.bf16 %v1054_v48, %v1053_v30  ;;  %v1983_v15 = vpop.f32.mrb[20].mxu0  ;;  %v3923_v48 = vld [vmem:[#allocation55_spill] sm:$0xff] }
 0x312   : >> { %v999_v16 = vadd.f32 %v1983_v15, %v3918_v43  ;;  %v990_v40 = vpop.f32.mrb[21].mxu0 }
 0x313   : >> { %v991_v21 = vadd.f32 %v990_v40, %v3919_v22  ;;  %v1984_v52 = vpop.f32.mrb[22].mxu0  ;;  %1845 = vmatprep.subr.bf16.mxu0 %v1077_v50  ;;  %1993 = vmatprep.subr.bf16.mxu1 %v1077_v50 }
 0x314   : >> { %v1002_v60 = vadd.f32 %v1984_v52, %v3920_v17  ;;  %v993_v32 = vpop.f32.mrb[23].mxu0  ;;  %1846 = vmatpush3.bf16.msra.mxu0 %v3347_v42  ;;  %2001 = vmatpush3.bf16.msra.mxu1 %v3347_v42  ;;  %v1059_v51 = vmax.f32 %v999_v16, 0.0  ;;  %v3925_v16 = vld [vmem:[#allocation57_spill] sm:$0xff] }
 0x315   : >> { %v994_v28 = vadd.f32 %v993_v32, %v3921_v62  ;;  %1847 = vmatprep.subr.bf16.mxu0 %v1078_v2  ;;  %1994 = vmatprep.subr.bf16.mxu1 %v1078_v2  ;;  %v1057_v54 = vmax.f32 %v991_v21, 0.0  ;;  %v3924_v2 = vld [vmem:[#allocation61_spill] sm:$0xff] }
 0x316   : >> { %v1060_v49 = vmax.f32 %v1002_v60, 0.0 }
 0x317   : >> { %v1058_v0 = vmax.f32 %v994_v28, 0.0 }
 0x318   : >> { %v1080_v58 = vpack.c.bf16 %v1060_v49, %v1059_v51  ;;  %1848 = vmatpush3.bf16.msra.mxu0 %v3345_v41  ;;  %2002 = vmatpush3.bf16.msra.mxu1 %v3345_v41  ;;  %v3926_v51 = vld [vmem:[#allocation67_spill] sm:$0xff] }
 0x319   : >> { %v1079_v40 = vpack.c.bf16 %v1058_v0, %v1057_v54  ;;  %v1987_v52 = vpop.f32.mrb[24].mxu0  ;;  %v3927_v0 = vld [vmem:[#allocation63_spill] sm:$0xff] }
 0x31a   : >> { %v1015_v47 = vadd.f32 %v1987_v52, %v3922_v38  ;;  %v1006_v30 = vpop.f32.mrb[25].mxu0 }
 0x31b   : >> { %v1007_v42 = vadd.f32 %v1006_v30, %v3923_v48  ;;  %v1988_v50 = vpop.f32.mrb[26].mxu0  ;;  %1849 = vmatprep.subr.bf16.mxu0 %v1079_v40  ;;  %1995 = vmatprep.subr.bf16.mxu1 %v1079_v40 }
 0x31c   : >> { %v1018_v15 = vadd.f32 %v1988_v50, %v3924_v2  ;;  %v1009_v43 = vpop.f32.mrb[27].mxu0  ;;  %1850 = vmatpush3.bf16.msra.mxu0 %v3355_v37  ;;  %2003 = vmatpush3.bf16.msra.mxu1 %v3355_v37  ;;  %v1063_v41 = vmax.f32 %v1015_v47, 0.0  ;;  %v3929_v47 = vld [vmem:[#allocation65_spill] sm:$0xff] }
 0x31d   : >> { %v1010_v22 = vadd.f32 %v1009_v43, %v3925_v16  ;;  %1851 = vmatprep.subr.bf16.mxu0 %v1080_v58  ;;  %1996 = vmatprep.subr.bf16.mxu1 %v1080_v58  ;;  %v1061_v17 = vmax.f32 %v1007_v42, 0.0  ;;  %v3928_v58 = vld [vmem:[#allocation69_spill] sm:$0xff]  ;;  %v1792_v43 = vcombine.low %v3874_v13, %v3873_v14  ;;  %v3931_v16 = vld [vmem:[#allocation20_spill] sm:$0xff] }
 0x31e   : >> { %v1064_v21 = vmax.f32 %v1018_v15, 0.0 }
 0x31f   : >> { %v1062_v60 = vmax.f32 %v1010_v22, 0.0 }
 0x320   : >> { %v1082_v32 = vpack.c.bf16 %v1064_v21, %v1063_v41  ;;  %1852 = vmatpush3.bf16.msra.mxu0 %v3353_v33  ;;  %2004 = vmatpush3.bf16.msra.mxu1 %v3353_v33  ;;  %v3932_v41 = vld [vmem:[#allocation10_spill] sm:$0xff]  ;;  %v3933_v21 = vld [vmem:[#allocation8_spill] sm:$0xff] }
 0x321   : >> { %v1081_v62 = vpack.c.bf16 %v1062_v60, %v1061_v17  ;;  %v1991_v28 = vpop.f32.mrb[28].mxu0  ;;  %v1795_v17 = vcombine.high %v3933_v21, %v3932_v41  ;;  %v1794_v60 = vcombine.low %v3933_v21, %v3932_v41 }
 0x322   : >> { %v1031_v49 = vadd.f32 %v1991_v28, %v3926_v51  ;;  %v1022_v54 = vpop.f32.mrb[29].mxu0  ;;  %v3937_v51 = vld [vmem:[#allocation11_spill] sm:$0xff] }
 0x323   : >> { %v1023_v37 = vadd.f32 %v1022_v54, %v3927_v0  ;;  %v1992_v40 = vpop.f32.mrb[30].mxu0  ;;  %1853 = vmatprep.subr.bf16.mxu0 %v1081_v62  ;;  %1997 = vmatprep.subr.bf16.mxu1 %v1081_v62  ;;  %v3935_v62 = vld [vmem:[#allocation22_spill] sm:$0xff] }
 0x324   : >> { %v1034_v52 = vadd.f32 %v1992_v40, %v3928_v58  ;;  %v1025_v38 = vpop.f32.mrb[31].mxu0  ;;  %1854 = vmatpush3.bf16.msra.mxu0 %v3363_v23  ;;  %2005 = vmatpush3.bf16.msra.mxu1 %v3363_v23  ;;  %v1067_v33 = vmax.f32 %v1031_v49, 0.0  ;;  %v1802_v23 = vcombine.low %v3872_v25, %v3871_v26  ;;  %v3939_v40 = vld [vmem:[#allocation25_spill] sm:$0xff] }
 0x325   : >> { %v1026_v30 = vadd.f32 %v1025_v38, %v3929_v47  ;;  %1855 = vmatprep.subr.bf16.mxu0 %v1082_v32  ;;  %1998 = vmatprep.subr.bf16.mxu1 %v1082_v32  ;;  %v1065_v42 = vmax.f32 %v1023_v37, 0.0  ;;  %v3934_v32 = vld [vmem:[#allocation24_spill] sm:$0xff]  ;;  %v3938_v37 = vld [vmem:[#allocation26_spill] sm:$0xff] }
 0x326   : >> { %v1068_v48 = vmax.f32 %v1034_v52, 0.0  ;;  %v1807_v28 = vcombine.high %v3935_v62, %v3934_v32  ;;  %v1806_v54 = vcombine.low %v3935_v62, %v3934_v32  ;;  %v1809_v58 = vcombine.high %v3939_v40, %v3938_v37  ;;  %v3940_v52 = vld [vmem:[#allocation15_spill] sm:$0xff]  ;;  %v3942_v47 = vld [vmem:[#allocation14_spill] sm:$0xff] }
 0x327   : >> { %v1066_v50 = vmax.f32 %v1026_v30, 0.0  ;;  %v3941_v38 = vmov %v3940_v52  ;;  %v1799_v30 = vcombine.high %v3942_v47, %v3940_v52 }
 0x328   : >> { %v1084_v2 = vpack.c.bf16 %v1068_v48, %v1067_v33  ;;  %1856 = vmatpush3.bf16.msra.mxu0 %v3361_v19  ;;  %2006 = vmatpush3.bf16.msra.mxu1 %v3361_v19  ;;  %v3930_v19 = vld [vmem:[#allocation21_spill] sm:$0xff]  ;;  %v1808_v33 = vcombine.low %v3939_v40, %v3938_v37  ;;  %v1798_v48 = vcombine.low %v3942_v47, %v3941_v38 }
 0x329   : >> { %v1083_v15 = vpack.c.bf16 %v1066_v50, %v1065_v42  ;;  %v1805_v22 = vcombine.high %v3931_v16, %v3930_v19  ;;  %v3943_v42 = vld [vmem:[#allocation29_spill] sm:$0xff]  ;;  %v3944_v50 = vld [vmem:[#allocation28_spill] sm:$0xff] }
 0x32b   : >> { %1857 = vmatprep.subr.bf16.mxu0 %v1083_v15  ;;  %1999 = vmatprep.subr.bf16.mxu1 %v1083_v15  ;;  %v3945_v15 = vld [vmem:[#allocation17_spill] sm:$0xff] }
 0x32c   : >> { %1858 = vmatpush3.bf16.msra.mxu0 %v3371_v18  ;;  %2007 = vmatpush3.bf16.msra.mxu1 %v3371_v18  ;;  %v1804_v18 = vcombine.low %v3931_v16, %v3930_v19 }
 0x32d   : >> { %1859 = vmatprep.subr.bf16.mxu0 %v1084_v2  ;;  %2000 = vmatprep.subr.bf16.mxu1 %v1084_v2  ;;  %v1811_v2 = vcombine.high %v3944_v50, %v3943_v42 }
 0x330   : >> { %1860 = vmatpush3.bf16.msra.mxu0 %v3369_v45  ;;  %2008 = vmatpush3.bf16.msra.mxu1 %v3369_v45  ;;  %v3936_v45 = vld [vmem:[#allocation12_spill] sm:$0xff] }
 0x331   : >> { %v1797_v49 = vcombine.high %v3937_v51, %v3936_v45  ;;  %v1796_v0 = vcombine.low %v3937_v51, %v3936_v45 }
 0x333   : >> { %1318 = vmatmul.mubr.bf16.vlgmr.msra.gmra.mrb[0].mxu1 %v1802_v23  ;;  %1278 = vmatmul.mubr.bf16.vlgmr.msra.gmra.mrb[32].mxu0 %v1792_v43  ;;  %v3946_v23 = vmov %v3945_v15  ;;  %v3947_v43 = vld [vmem:[#allocation16_spill] sm:$0xff] }
 0x334   : >> { %1325 = vmatprep.mubr.bf16.mxu1 %v1805_v22  ;;  %1285 = vmatprep.mubr.bf16.mxu0 %v1795_v17  ;;  %v1801_v22 = vcombine.high %v3947_v43, %v3945_v15  ;;  %v1810_v17 = vcombine.low %v3944_v50, %v3943_v42 }
 0x33b   : >> { %1326 = vmatmul.mubr.bf16.gmra.mrb[4].mxu1 %v1804_v18  ;;  %1286 = vmatmul.mubr.bf16.gmra.mrb[36].mxu0 %v1794_v60  ;;  %v1800_v18 = vcombine.low %v3947_v43, %v3946_v23  ;;  %v3948_v60 = vld [vmem:[#allocation31_spill] sm:$0xff] }
 0x33c   : >> { %1333 = vmatprep.mubr.bf16.mxu1 %v1807_v28  ;;  %1293 = vmatprep.mubr.bf16.mxu0 %v1797_v49  ;;  %v3949_v28 = vld [vmem:[#allocation30_spill] sm:$0xff] }
 0x33d   : >> { %v1813_v49 = vcombine.high %v3949_v28, %v3948_v60 }
 0x343   : >> { %1334 = vmatmul.mubr.bf16.gmra.mrb[8].mxu1 %v1806_v54  ;;  %1294 = vmatmul.mubr.bf16.gmra.mrb[40].mxu0 %v1796_v0  ;;  %v1812_v54 = vcombine.low %v3949_v28, %v3948_v60  ;;  %v3950_v0 = vld [vmem:[#allocation33_spill] sm:$0xff] }
 0x344   : >> { %1341 = vmatprep.mubr.bf16.mxu1 %v1809_v58  ;;  %1301 = vmatprep.mubr.bf16.mxu0 %v1799_v30  ;;  %v3951_v58 = vld [vmem:[#allocation32_spill] sm:$0xff] }
 0x345   : >> { %v1815_v52 = vcombine.high %v3951_v58, %v3950_v0  ;;  %v1814_v30 = vcombine.low %v3951_v58, %v3950_v0  ;;  %v3960_v0 = vld [vmem:[#allocation42_spill] sm:$0xff] }
 0x34b   : >> { %1342 = vmatmul.mubr.bf16.gmra.mrb[12].mxu1 %v1808_v33  ;;  %1302 = vmatmul.mubr.bf16.gmra.mrb[44].mxu0 %v1798_v48  ;;  %v3952_v33 = vld [vmem:[#allocation35_spill] sm:$0xff]  ;;  %v3953_v48 = vld [vmem:[#allocation34_spill] sm:$0xff] }
 0x34c   : >> { %1349 = vmatprep.mubr.bf16.mxu1 %v1811_v2  ;;  %1309 = vmatprep.mubr.bf16.mxu0 %v1801_v22  ;;  %v1817_v2 = vcombine.high %v3953_v48, %v3952_v33  ;;  %v1816_v15 = vcombine.low %v3953_v48, %v3952_v33  ;;  %v3954_v22 = vld [vmem:[#allocation38_spill] sm:$0xff] }
 0x353   : >> { %1350 = vmatmul.mubr.bf16.gmra.mrb[16].mxu1 %v1810_v17  ;;  %1310 = vmatmul.mubr.bf16.gmra.mrb[48].mxu0 %v1800_v18  ;;  %v3955_v17 = vld [vmem:[#allocation36_spill] sm:$0xff] }
 0x354   : >> { %1357 = vmatprep.mubr.bf16.mxu1 %v1813_v49  ;;  %v1819_v18 = vcombine.high %v3955_v17, %v3954_v22  ;;  %v1818_v49 = vcombine.low %v3955_v17, %v3954_v22 }
 0x35b   : >> { %1358 = vmatmul.mubr.bf16.gmra.mrb[20].mxu1 %v1812_v54  ;;  %v3956_v54 = vld [vmem:[#allocation40_spill] sm:$0xff] }
 0x35c   : >> { %1365 = vmatprep.mubr.bf16.mxu1 %v1815_v52  ;;  %v3957_v52 = vld [vmem:[#allocation39_spill] sm:$0xff] }
 0x35d   : >> { %v3958_v13 = vmov %v3957_v52  ;;  %v1821_v14 = vcombine.high %v3957_v52, %v3956_v54 }
 0x363   : >> { %1366 = vmatmul.mubr.bf16.gmra.mrb[24].mxu1 %v1814_v30  ;;  %v1820_v30 = vcombine.low %v3958_v13, %v3956_v54 }
 0x364   : >> { %1373 = vmatprep.mubr.bf16.mxu1 %v1817_v2  ;;  %v3959_v2 = vld [vmem:[#allocation43_spill] sm:$0xff] }
 0x365   : >> { %v1823_v16 = vcombine.high %v3960_v0, %v3959_v2 }
 0x36b   : >> { %1374 = vmatmul.mubr.bf16.gmra.mrb[28].mxu1 %v1816_v15  ;;  %v1822_v15 = vcombine.low %v3960_v0, %v3959_v2 }
 0x36c   : >> { %1381 = vmatprep.mubr.bf16.mxu1 %v1819_v18 }
 0x373   : >> { %1382 = vmatmul.mubr.bf16.gmra.mrb[32].mxu1 %v1818_v49 }
 0x374   : >> { %1389 = vmatprep.mubr.bf16.mxu1 %v1821_v14 }
 0x37b   : >> { %1390 = vmatmul.mubr.bf16.gmra.mrb[36].mxu1 %v1820_v30 }
 0x37c   : >> { %1397 = vmatprep.mubr.bf16.mxu1 %v1823_v16 }
 0x383   : >> { %1398 = vmatmul.mubr.bf16.gmra.mrb[40].mxu1 %v1822_v15 }
 0x406   : >> { %v1891_v18 = vpop.f32.mrb[0].mxu1  ;;  %v1861_v19 = vpop.f32.mrb[32].mxu0 }
 0x407   : >> { %v1892_v17 = vpop.f32.mrb[1].mxu1  ;;  %v1862_v21 = vpop.f32.mrb[33].mxu0 }
 0x408   : >> { %v1893_v22 = vadd.f32 %v1892_v17, %v1891_v18  ;;  %v1894_v52 = vpop.f32.mrb[2].mxu1  ;;  %v1863_v49 = vadd.f32 %v1862_v21, %v1861_v19  ;;  %v1864_v14 = vpop.f32.mrb[34].mxu0 }
 0x409   : >> { %v1895_v23 = vpop.f32.mrb[3].mxu1  ;;  %v1865_v25 = vpop.f32.mrb[35].mxu0 }
 0x40a   : >> { %v3466_v59 = vmax.f32 %v2647_v59, %v1893_v22   ;;  %v1896_v26 = vadd.f32 %v1895_v23, %v1894_v52  ;;  %v3469_v8 = vmax.f32 %v2687_v8, %v1863_v49   ;;  %v1866_v30 = vadd.f32 %v1865_v25, %v1864_v14 }
 0x40c   : >> { %v3961_v13 = vmov %v3466_v59  ;;  %v3962_v16 = vmov %v3469_v8  ;;  %v3472_v34 = vmax.f32 %v2643_v34, %v1896_v26   ;;  %v3475_v4 = vmax.f32 %v2683_v4, %v1866_v30  }
 0x40d   : > { %1438 = vxpose.xlu0.b32.start [1/16] (narrow) (%p3564_p4), %v3962_v16, 32 }
 0x40e   : >> { %v3963_v0 = vmov %v3472_v34  ;;  %v3964_v2 = vmov %v3475_v4  ;;  %v1897_v17 = vpop.f32.mrb[4].mxu1  ;;  %v1867_v15 = vpop.f32.mrb[36].mxu0 }
 0x40f   : >> { %v1898_v19 = vpop.f32.mrb[5].mxu1  ;;  %v1868_v21 = vpop.f32.mrb[37].mxu0 }
 0x410   : >> { %v1899_v18 = vadd.f32 %v1898_v19, %v1897_v17  ;;  %v1900_v28 = vpop.f32.mrb[6].mxu1  ;;  %v1869_v32 = vadd.f32 %v1868_v21, %v1867_v15  ;;  %v1870_v22 = vpop.f32.mrb[38].mxu0 }
 0x411   : >> { %v1901_v59 = vpop.f32.mrb[7].mxu1  ;;  %v1871_v23 = vpop.f32.mrb[39].mxu0  ;;  %1439 = vxpose.xlu0.b32.cont [2/16] (narrow) (%p3564_p4), %v3964_v2, 32 }
 0x412   : >> { %v3478_v1 = vmax.f32 %v2639_v1, %v1899_v18   ;;  %v1902_v25 = vadd.f32 %v1901_v59, %v1900_v28  ;;  %v3481_v10 = vmax.f32 %v2679_v10, %v1869_v32   ;;  %v1872_v34 = vadd.f32 %v1871_v23, %v1870_v22 }
 0x414   : >> { %v3965_v33 = vmov %v3478_v1  ;;  %v3966_v26 = vmov %v3481_v10  ;;  %v3484_v61 = vmax.f32 %v2635_v61, %v1902_v25   ;;  %v3487_v6 = vmax.f32 %v2675_v6, %v1872_v34  }
 0x415   : > { %1440 = vxpose.xlu0.b32.cont [3/16] (narrow) (%p3564_p4), %v3966_v26, 32 }
 0x416   : >> { %v3967_v14 = vmov %v3484_v61  ;;  %v3968_v30 = vmov %v3487_v6  ;;  %v1903_v4 = vpop.f32.mrb[8].mxu1  ;;  %v1873_v8 = vpop.f32.mrb[40].mxu0 }
 0x417   : >> { %v1904_v52 = vpop.f32.mrb[9].mxu1  ;;  %v1874_v49 = vpop.f32.mrb[41].mxu0 }
 0x418   : >> { %v1905_v17 = vadd.f32 %v1904_v52, %v1903_v4  ;;  %v1906_v15 = vpop.f32.mrb[10].mxu1  ;;  %v1875_v19 = vadd.f32 %v1874_v49, %v1873_v8  ;;  %v1876_v21 = vpop.f32.mrb[42].mxu0 }
 0x419   : >> { %v1907_v1 = vpop.f32.mrb[11].mxu1  ;;  %v1877_v28 = vpop.f32.mrb[43].mxu0  ;;  %1441 = vxpose.xlu0.b32.cont [4/16] (narrow) (%p3564_p4), %v3968_v30, 32 }
 0x41a   : >> { %v3490_v3 = vmax.f32 %v2631_v3, %v1905_v17   ;;  %v1908_v10 = vadd.f32 %v1907_v1, %v1906_v15  ;;  %v3493_v56 = vmax.f32 %v2671_v56, %v1875_v19   ;;  %v1878_v61 = vadd.f32 %v1877_v28, %v1876_v21 }
 0x41c   : >> { %v3969_v32 = vmov %v3490_v3  ;;  %v3970_v18 = vmov %v3493_v56  ;;  %v3496_v63 = vmax.f32 %v2627_v63, %v1908_v10   ;;  %v3499_v12 = vmax.f32 %v2667_v12, %v1878_v61  }
 0x41d   : > { %1442 = vxpose.xlu0.b32.cont [5/16] (narrow) (%p3564_p4), %v3970_v18, 32 }
 0x41e   : >> { %v3971_v22 = vmov %v3496_v63  ;;  %v3972_v23 = vmov %v3499_v12  ;;  %v1909_v6 = vpop.f32.mrb[12].mxu1  ;;  %v1879_v59 = vpop.f32.mrb[44].mxu0 }
 0x41f   : >> { %v1910_v25 = vpop.f32.mrb[13].mxu1  ;;  %v1880_v34 = vpop.f32.mrb[45].mxu0 }
 0x420   : >> { %v1911_v4 = vadd.f32 %v1910_v25, %v1909_v6  ;;  %v1912_v8 = vpop.f32.mrb[14].mxu1  ;;  %v1881_v52 = vadd.f32 %v1880_v34, %v1879_v59  ;;  %v1882_v49 = vpop.f32.mrb[46].mxu0 }
 0x421   : >> { %v1913_v3 = vpop.f32.mrb[15].mxu1  ;;  %v1883_v17 = vpop.f32.mrb[47].mxu0  ;;  %1443 = vxpose.xlu0.b32.cont [6/16] (narrow) (%p3564_p4), %v3972_v23, 32 }
 0x422   : >> { %v3502_v9 = vmax.f32 %v2623_v9, %v1911_v4   ;;  %v1914_v56 = vadd.f32 %v1913_v3, %v1912_v8  ;;  %v3505_v53 = vmax.f32 %v2663_v53, %v1881_v52   ;;  %v1884_v63 = vadd.f32 %v1883_v17, %v1882_v49 }
 0x424   : >> { %v3973_v19 = vmov %v3502_v9  ;;  %v3974_v21 = vmov %v3505_v53  ;;  %v3508_v5 = vmax.f32 %v2619_v5, %v1914_v56   ;;  %v3511_v44 = vmax.f32 %v2659_v44, %v1884_v63  }
 0x425   : > { %1470 = vxpose.xlu1.b32.start [1/16] (narrow) (%p3564_p4), %v3973_v19, 32  ;;  %1444 = vxpose.xlu0.b32.cont [7/16] (narrow) (%p3564_p4), %v3974_v21, 32 }
 0x426   : >> { %v3975_v28 = vmov %v3508_v5  ;;  %v3976_v37 = vmov %v3511_v44  ;;  %v1915_v12 = vpop.f32.mrb[16].mxu1  ;;  %v1885_v15 = vpop.f32.mrb[48].mxu0 }
 0x427   : >> { %v1916_v1 = vpop.f32.mrb[17].mxu1  ;;  %v1886_v10 = vpop.f32.mrb[49].mxu0 }
 0x428   : >> { %v1917_v61 = vadd.f32 %v1916_v1, %v1915_v12  ;;  %v1918_v6 = vpop.f32.mrb[18].mxu1  ;;  %v1887_v59 = vadd.f32 %v1886_v10, %v1885_v15  ;;  %v1888_v25 = vpop.f32.mrb[50].mxu0 }
 0x429   : >> { %v1919_v9 = vpop.f32.mrb[19].mxu1  ;;  %v1889_v34 = vpop.f32.mrb[51].mxu0  ;;  %1471 = vxpose.xlu1.b32.cont [2/16] (narrow) (%p3564_p4), %v3975_v28, 32  ;;  %1445 = vxpose.xlu0.b32.cont [8/16] (narrow) (%p3564_p4), %v3976_v37, 32 }
 0x42a   : >> { %v3514_v46 = vmax.f32 %v2615_v46, %v1917_v61   ;;  %v1920_v53 = vadd.f32 %v1919_v9, %v1918_v6  ;;  %v3517_v55 = vmax.f32 %v2655_v55, %v1887_v59   ;;  %v1890_v5 = vadd.f32 %v1889_v34, %v1888_v25 }
 0x42c   : >> { %v3977_v38 = vmov %v3514_v46  ;;  %v3978_v17 = vmov %v3517_v55  ;;  %v3520_v31 = vmax.f32 %v2611_v31, %v1920_v53   ;;  %v3523_v20 = vmax.f32 %v2651_v20, %v1890_v5  }
 0x42d   : > { %1472 = vxpose.xlu1.b32.cont [3/16] (narrow) (%p3564_p4), %v3977_v38, 32  ;;  %1446 = vxpose.xlu0.b32.cont [9/16] (narrow) (%p3564_p4), %v3978_v17, 32 }
 0x42e   : >> { %v3979_v40 = vmov %v3520_v31  ;;  %v3980_v41 = vmov %v3523_v20  ;;  %v1921_v44 = vpop.f32.mrb[20].mxu1 }
 0x42f   : >> { %v1922_v4 = vpop.f32.mrb[21].mxu1 }
 0x430   : >> { %v1923_v8 = vadd.f32 %v1922_v4, %v1921_v44  ;;  %v1924_v52 = vpop.f32.mrb[22].mxu1  ;;  %v3990_v4 = vld [vmem:[#allocation88_spill] sm:$0xff] }
 0x431   : >> { %v1925_v49 = vpop.f32.mrb[23].mxu1  ;;  %1473 = vxpose.xlu1.b32.cont [4/16] (narrow) (%p3564_p4), %v3979_v40, 32  ;;  %1447 = vxpose.xlu0.b32.cont [10/16] (narrow) (%p3564_p4), %v3980_v41, 32 }
 0x432   : >> { %v3526_v29 = vmax.f32 %v2607_v29, %v1923_v8   ;;  %v1926_v46 = vadd.f32 %v1925_v49, %v1924_v52 }
 0x434   : >> { %v3981_v42 = vmov %v3526_v29  ;;  %v3529_v35 = vmax.f32 %v2603_v35, %v1926_v46  }
 0x435   : > { %1474 = vxpose.xlu1.b32.cont [5/16] (narrow) (%p3564_p4), %v3981_v42, 32  ;;  %1448 = vxpose.xlu0.b32.cont [11/16] (narrow) (%p3564_p4), %v3961_v13, 32 }
 0x436   : >> { %v3982_v43 = vmov %v3529_v35  ;;  %v1927_v55 = vpop.f32.mrb[24].mxu1 }
 0x437   : >> { %v1928_v3 = vpop.f32.mrb[25].mxu1 }
 0x438   : >> { %v1929_v56 = vadd.f32 %v1928_v3, %v1927_v55  ;;  %v1930_v63 = vpop.f32.mrb[26].mxu1  ;;  %v3992_v3 = vld [vmem:[#allocation87_spill] sm:$0xff] }
 0x439   : >> { %v1931_v31 = vpop.f32.mrb[27].mxu1  ;;  %1475 = vxpose.xlu1.b32.cont [6/16] (narrow) (%p3564_p4), %v3982_v43, 32  ;;  %1449 = vxpose.xlu0.b32.cont [12/16] (narrow) (%p3564_p4), %v3963_v0, 32 }
 0x43a   : >> { %v3532_v11 = vmax.f32 %v2599_v11, %v1929_v56   ;;  %v1932_v20 = vadd.f32 %v1931_v31, %v1930_v63  ;;  %v3994_v56 = vld [vmem:[#allocation86_spill] sm:$0xff]  ;;  %v4009_v31 = vmov %v3979_v40  ;;  %v4013_v63 = vmov %v3971_v22 }
 0x43c   : >> { %v3983_v25 = vmov %v3532_v11  ;;  %v3535_v7 = vmax.f32 %v2595_v7, %v1932_v20   ;;  %v4019_v20 = vmov %v3980_v41 }
 0x43d   : > { %1476 = vxpose.xlu1.b32.cont [7/16] (narrow) (%p3564_p4), %v3983_v25, 32  ;;  %1450 = vxpose.xlu0.b32.cont [13/16] (narrow) (%p3564_p4), %v3965_v33, 32 }
 0x43e   : >> { %v3984_v45 = vmov %v3535_v7  ;;  %v1933_v12 = vpop.f32.mrb[28].mxu1 }
 0x43f   : >> { %v1934_v15 = vpop.f32.mrb[29].mxu1 }
 0x440   : >> { %v1935_v1 = vadd.f32 %v1934_v15, %v1933_v12  ;;  %v1936_v29 = vpop.f32.mrb[30].mxu1  ;;  %v4023_v12 = vmov %v3972_v23 }
 0x441   : >> { %v1937_v10 = vpop.f32.mrb[31].mxu1  ;;  %1477 = vxpose.xlu1.b32.cont [8/16] (narrow) (%p3564_p4), %v3984_v45, 32  ;;  %1451 = vxpose.xlu0.b32.cont [14/16] (narrow) (%p3564_p4), %v3967_v14, 32 }
 0x442   : >> { %v3538_v27 = vmax.f32 %v2591_v27, %v1935_v1   ;;  %v1938_v35 = vadd.f32 %v1937_v10, %v1936_v29  ;;  %v4008_v29 = vmov %v3981_v42  ;;  %v4016_v1 = vmov %v3965_v33 }
 0x443   : >> { %v4026_v10 = vmov %v3966_v26 }
 0x444   : >> { %v3985_v47 = vmov %v3538_v27  ;;  %v3541_v24 = vmax.f32 %v2587_v24, %v1938_v35   ;;  %v4007_v35 = vmov %v3982_v43 }
 0x445   : > { %1478 = vxpose.xlu1.b32.cont [9/16] (narrow) (%p3564_p4), %v3985_v47, 32  ;;  %1452 = vxpose.xlu0.b32.cont [15/16] (narrow) (%p3564_p4), %v3969_v32, 32 }
 0x446   : >> { %v3986_v48 = vmov %v3541_v24  ;;  %v1939_v61 = vpop.f32.mrb[32].mxu1 }
 0x447   : >> { %v1940_v6 = vpop.f32.mrb[33].mxu1 }
 0x448   : >> { %v1941_v59 = vadd.f32 %v1940_v6, %v1939_v61  ;;  %v1942_v11 = vpop.f32.mrb[34].mxu1  ;;  %v4015_v61 = vmov %v3967_v14  ;;  %v4025_v6 = vmov %v3968_v30 }
 0x449   : >> { %v1943_v9 = vpop.f32.mrb[35].mxu1  ;;  %1479 = vxpose.xlu1.b32.cont [10/16] (narrow) (%p3564_p4), %v3986_v48, 32  ;;  %1453 = vxpose.xlu0.b32.end [16/16] (narrow) (%p3564_p4), %v3971_v22, 32 }
 0x44a   : >> { %v3544_v36 = vmax.f32 %v2583_v36, %v1941_v59   ;;  %v1944_v7 = vadd.f32 %v1943_v9, %v1942_v11  ;;  %v4006_v11 = vmov %v3983_v25  ;;  %v4012_v9 = vmov %v3973_v19 }
 0x44b   : >> { %v4018_v59 = vmov %v3961_v13  ;;  %v4033_v11 = vlaneseq (%p3564_p4) }
 0x44c   : >> { %v3987_v50 = vmov %v3544_v36  ;;  %v3547_v57 = vmax.f32 %v2579_v57, %v1944_v7   ;;  %v4005_v7 = vmov %v3984_v45 }
 0x44d   : > { %1480 = vxpose.xlu1.b32.cont [11/16] (narrow) (%p3564_p4), %v3987_v50, 32  ;;  %vm1560_vm7 = vcmp.lt.s32.totalorder (%p3564_p4), %v4033_v11, 256 }
 0x44e   : >> { %v3988_v51 = vmov %v3547_v57  ;;  %v1945_v34 = vpop.f32.mrb[36].mxu1 }
 0x44f   : >> { %v1946_v53 = vpop.f32.mrb[37].mxu1 }
 0x450   : >> { %v1947_v5 = vadd.f32 %v1946_v53, %v1945_v34  ;;  %v1948_v27 = vpop.f32.mrb[38].mxu1  ;;  %v4017_v34 = vmov %v3963_v0  ;;  %v4022_v53 = vmov %v3974_v21 }
 0x451   : >> { %v1949_v44 = vpop.f32.mrb[39].mxu1  ;;  %1481 = vxpose.xlu1.b32.cont [12/16] (narrow) (%p3564_p4), %v3988_v51, 32 }
 0x452   : >> { %v3550_v39 = vmax.f32 %v2575_v39, %v1947_v5   ;;  %v1950_v24 = vadd.f32 %v1949_v44, %v1948_v27  ;;  %v4004_v27 = vmov %v3985_v47  ;;  %v4011_v5 = vmov %v3975_v28 }
 0x453   : >> { %v4021_v44 = vmov %v3976_v37  ;;  %v4030_v37 = vld [vmem:[#allocation2_spill] sm:$0xff] (%p3564_p4) }
 0x454   : >> { %v3989_v54 = vmov %v3550_v39  ;;  %v3553_v52 = vmax.f32 %v3990_v4, %v1950_v24   ;;  %v4003_v24 = vmov %v3986_v48  ;;  %v4027_v4 = vmov %v3964_v2 }
 0x455   : >> { %v4000_v39 = vmov %v3989_v54  ;;  %1482 = vxpose.xlu1.b32.cont [13/16] (narrow) (%p3564_p4), %v3989_v54, 32  ;;  %v4031_v40 = vsub.s32 (%p3564_p4), 1, %v4030_v37  ;;  %v4032_v47 = vsub.s32 (%p3564_p4), 0, %v4030_v37 }
 0x456   : >> { %v3991_v58 = vmov %v3553_v52  ;;  %v1951_v8 = vpop.f32.mrb[40].mxu1 }
 0x457   : >> { %v1952_v49 = vpop.f32.mrb[41].mxu1  ;;  %v3999_v52 = vmov %v3991_v58 }
 0x458   : >> { %v1953_v46 = vadd.f32 %v1952_v49, %v1951_v8  ;;  %v1954_v36 = vpop.f32.mrb[42].mxu1  ;;  %v4028_v8 = vmov %v3962_v16  ;;  %v2695_v52 = vmov (%p3564_p4), 1966171168  }
 0x459   : >> { %v1955_v55 = vpop.f32.mrb[43].mxu1  ;;  %777 = sbr.rel (!%p3564_p4) target bundleno = 519 (0x207), region = 85  ;;  %1483 = vxpose.xlu1.b32.cont [14/16] (narrow) (%p3564_p4), %v3991_v58, 32  ;;  %v1544_v63 = vunpack.c.l.s4 (%p3564_p4), %v2695_v52 }
 0x45a   : >> { %v3556_v15 = vmax.f32 %v3992_v3, %v1953_v46   ;;  %v1956_v57 = vadd.f32 %v1955_v55, %v1954_v36  ;;  %v4002_v36 = vmov %v3987_v50  ;;  %v4010_v46 = vmov %v3977_v38 }
 0x45b   : >> { %v4014_v3 = vmov %v3969_v32  ;;  %v4020_v55 = vmov %v3978_v17 }
 0x45c   : >> { %v3993_v60 = vmov %v3556_v15  ;;  %v3559_v49 = vmax.f32 %v3994_v56, %v1956_v57   ;;  %v4001_v57 = vmov %v3988_v51  ;;  %v4024_v56 = vmov %v3970_v18  ;;  %v1502_v51 = vld [vmem:[%s3720_s5] sm:$0x3] (%p3564_p4) }
 0x45d   : >> { %v3998_v15 = vmov %v3993_v60  ;;  %1484 = vxpose.xlu1.b32.cont [15/16] (narrow) (%p3564_p4), %v3993_v60, 32  ;;  %v1511_v38 = vrot.slane (%p3564_p4), %v1502_v51, %v4031_v40  ;;  %v1507_v42 = vrot.slane (%p3564_p4), %v1502_v51, %v4032_v47 }
 0x45e   : >> { %v3995_v62 = vmov %v3559_v49  ;;  %v1545_v15 = vunpack.c.0.s8 (%p3564_p4), %v1544_v63 }
 0x45f   : >> { %v3997_v49 = vmov %v3995_v62 }
 0x460   : > { %v1548_v61 = vsub.s32 %v1545_v15, %v4030_v37 }
 0x461   : > { %1485 = vxpose.xlu1.b32.end [16/16] (narrow) %v3995_v62, 32 }
 0x48d   : > { %v1454_v39 = vpop.trf.xlu0 }
 0x48e   : > { %v1514_v58 = vadd.f32 %v1507_v42, %v1454_v39 }
 0x491   : > { %v1455_v45 = vpop.trf.xlu0 }
 0x492   : > { %v1516_v2 = vadd.f32 %v1507_v42, %v1455_v45 }
 0x495   : > { %v1456_v43 = vpop.trf.xlu0 }
 0x496   : > { %v1518_v62 = vadd.f32 %v1507_v42, %v1456_v43 }
 0x498   : > { %v1522_v30 = vmax.f32 %v1514_v58, %v1518_v62 }
 0x499   : > { %v1457_v48 = vpop.trf.xlu0 }
 0x49a   : > { %v1520_v26 = vadd.f32 %v1507_v42, %v1457_v48 }
 0x49c   : > { %v1523_v18 = vmax.f32 %v1516_v2, %v1520_v26 }
 0x49e   : > { %v1524_v23 = vmax.f32 %v1522_v30, %v1523_v18 }
 0x4a0   : > { %v1525_v21 = vrot.slane %v1524_v23, 4 }
 0x4a2   : > { %v1526_v17 = vmax.f32 %v1524_v23, %v1525_v21 }
 0x4a4   : > { %v1527_v25 = vrot.slane %v1526_v17, 2 }
 0x4a5   : > { %v1486_v13 = vpop.trf.xlu1 }
 0x4a6   : > { %v1515_v0 = vadd.f32 %v1511_v38, %v1486_v13  ;;  %v1528_v12 = vmax.f32 %v1526_v17, %v1527_v25 }
 0x4a8   : > { %v1529_v29 = vrot.slane %v1528_v12, 1 }
 0x4a9   : > { %v1487_v41 = vpop.trf.xlu1 }
 0x4aa   : > { %v1517_v54 = vadd.f32 %v1511_v38, %v1487_v41  ;;  %v1530_v35 = vmax.f32 %v1528_v12, %v1529_v29 }
 0x4ad   : > { %v1488_v50 = vpop.trf.xlu1 }
 0x4ae   : > { %v1519_v60 = vadd.f32 %v1511_v38, %v1488_v50 }
 0x4b0   : > { %v1531_v14 = vmax.f32 %v1515_v0, %v1519_v60 }
 0x4b1   : > { %v1489_v33 = vpop.trf.xlu1 }
 0x4b2   : > { %v1521_v16 = vadd.f32 %v1511_v38, %v1489_v33 }
 0x4b4   : > { %v1532_v32 = vmax.f32 %v1517_v54, %v1521_v16 }
 0x4b6   : > { %v1533_v22 = vmax.f32 %v1531_v14, %v1532_v32 }
 0x4b8   : > { %v1534_v19 = vrot.slane %v1533_v22, 4 }
 0x4ba   : > { %v1535_v28 = vmax.f32 %v1533_v22, %v1534_v19 }
 0x4bc   : > { %v1536_v31 = vrot.slane %v1535_v28, 2 }
 0x4be   : > { %v1537_v20 = vmax.f32 %v1535_v28, %v1536_v31 }
 0x4c0   : > { %v1538_v1 = vrot.slane %v1537_v20, 1 }
 0x4c2   : > { %v1539_v10 = vmax.f32 %v1537_v20, %v1538_v1 }
 0x4c4   : > { %v1542_v6 = vcombine.low %v1530_v35, %v1539_v10 }
 0x4c6   : > { %v1549_v59 = vrot.slane %v1542_v6, %v1548_v61 }
 0x4c8   : > { %v1556_v9 = vrot.slane %v1549_v59, %v1548_v61 }
 0x4ca   : > { %1562 = vst.msk [vmem:[%s2771_s18] sm:$0x3] %vm1560_vm7, %v1556_v9 }
 0x4cb PF: > { %s16_s21 = sadd.s32 1, %s2559_s21  }
 0x4cc   : > { %p13_p5 = scmp.ge.s32.totalorder %s16_s21, 4  }
 0x4ce   :  { %15 = sbr.rel (!%p13_p5) target bundleno = 1 (0x1), region = 96 }

</bundles_post_ra>
